<compile_context>
chip_gen: v5e
topology: v5e:2x2
jax: 0.10.0
libtpu: 0.0.40
codegen_flags: <defaults>
</compile_context>

<pallas_src>
import functools

import jax
import jax.numpy as jnp
import numpy as np
from jax.experimental import pallas as pl
from jax.experimental.pallas import tpu as pltpu

FUTURE_STEPS = 432
HIDDEN = 50
INPUT_SIZE = 1
NUM_LAYERS = 2

HIDDEN_P = 64          # hidden padded so each gate block is 64-lane aligned (never straddles a vreg)
OUT_P = 512            # FC output padded to a multiple of 128 lanes (unmasked stores)

# torch gate order is (i, f, g, o); packed block order is [i, f, o, g] so that the three
# sigmoid gates are contiguous.  GATE_POS[torch_gate_index] = packed block index.
GATE_POS = (0, 1, 3, 2)


def _lstm_fc_kernel(x_ref,                        # (B, T, 1)  f32
                    wih0_ref, whh0_ref, b0_ref,   # (1,4Hp) f32, (Hp,4Hp) bf16, (1,4Hp) f32
                    wih1_ref, whh1_ref, b1_ref,   # (Hp,4Hp) bf16, (Hp,4Hp) bf16, (1,4Hp) f32
                    fcb_ref,                      # (1, OUT_P) f32
                    fcw_hbm_ref,                  # (Hp, OUT_P) bf16, lives in HBM (pl.ANY)
                    out_ref,                      # (B, OUT_P) f32
                    fcw_vmem, fcw_sem):           # scratch: VMEM landing buffer + DMA sem
    """2-layer LSTM recurrence + final Linear, fully in VMEM."""
    B, T, _ = x_ref.shape
    Hp = whh0_ref.shape[0]
    G = 4 * Hp
    f32, bf16 = jnp.float32, jnp.bfloat16

    # Overlap the FC-weight DMA with the whole recurrence; it's only needed at the epilogue.
    fcw_copy = pltpu.make_async_copy(fcw_hbm_ref, fcw_vmem, fcw_sem)
    fcw_copy.start()

    # Hoisted layer-0 input projection (+ combined bias) for ALL timesteps.
    # INPUT_SIZE == 1 => x_t @ W_ih0 degenerates to a broadcast multiply (pure VPU, no MXU).
    xg0 = x_ref[...] * wih0_ref[...] + b0_ref[...]            # (B, T, 4Hp) value, no scratch ref

    whh0 = whh0_ref[...]                                      # (Hp, 4Hp) bf16
    wih1 = wih1_ref[...]                                      # (Hp, 4Hp) bf16
    whh1 = whh1_ref[...]                                      # (Hp, 4Hp) bf16
    b1 = jnp.broadcast_to(b1_ref[...], (B, G))                # hoisted (no per-iter broadcast)

    def gates_to_hc(gates, c):
        # packed gate order [i, f, o, g]: one sigmoid on a contiguous (B, 3Hp) slab,
        # one tanh on (B, Hp).  Slices are 64-aligned (Hp = 64), no vreg straddle.
        ifo = jax.nn.sigmoid(gates[:, :3 * Hp])
        g = jnp.tanh(gates[:, 3 * Hp:])
        i = ifo[:, 0 * Hp:1 * Hp]
        f = ifo[:, 1 * Hp:2 * Hp]
        o = ifo[:, 2 * Hp:3 * Hp]
        c_new = f * c + i * g
        return o * jnp.tanh(c_new), c_new

    zeros = jnp.zeros((B, Hp), f32)
    h0 = c0 = h1 = c1 = zeros

    # Fully static (unrolled) time loop: static `t` gives static slices of xg0 and lets the
    # scheduler hoist rec1 (depends only on h1[t-1]) off the serial per-step chain.
    # TODO(synk): for large T, switch to a T-chunked grid (dimension_semantics=("arbitrary",))
    # with h/c carried in persistent VMEM scratch to bound vreg live ranges / VMEM growth
    # (matters first on v7x with its 64 MiB VMEM).
    for t in range(T):
        # layer-1 recurrence term: only depends on the previous step's h1, so it can issue
        # alongside / ahead of this step's layer-0 work.
        rec1 = jnp.dot(h1.astype(bf16), whh1, preferred_element_type=f32)

        # layer 0: input term precomputed; one recurrence matmul remains.
        g0 = xg0[:, t, :] + jnp.dot(h0.astype(bf16), whh0, preferred_element_type=f32)
        h0, c0 = gates_to_hc(g0, c0)

        # TODO(synk): nn.LSTM applies dropout(p=0.2) to h0 between layers only in train mode;
        # this kernel reproduces the eval-mode forward (no dropout).
        g1 = jnp.dot(h0.astype(bf16), wih1, preferred_element_type=f32) + rec1 + b1
        h1, c1 = gates_to_hc(g1, c1)
        # TODO(synk): optional further fusion: [h0(t), h1(t-1)] @ [[whh0, wih1],[0, whh1]]
        # to halve MXU push/pop per step; verify with a bundle dump before committing.

    # fc(out[:, -1, :]) — h1 is the last hidden state of the top LSTM layer.
    fcw_copy.wait()
    out_ref[...] = (jnp.dot(h1.astype(bf16), fcw_vmem[...], preferred_element_type=f32)
                    + fcb_ref[...])


def lstm_model_forward(x, p):
    """x: (B, T, 1) float32 -> (B, FUTURE_STEPS) float32."""
    B, T, _ = x.shape
    Hp = p["whh0"].shape[0]
    out_p = p["fcw"].shape[1]

    vmem = functools.partial(pl.BlockSpec, memory_space=pltpu.MemorySpace.VMEM)
    args = (x.astype(jnp.float32),
            p["wih0"], p["whh0"], p["b0"],
            p["wih1"], p["whh1"], p["b1"],
            p["fcb"], p["fcw"])
    in_specs = [vmem() for _ in range(len(args) - 1)] + [pl.BlockSpec(memory_space=pl.ANY)]

    # TODO(synk): for large batch, tile B with a grid + dimension_semantics=("parallel",);
    # at B=2 the recurrence is a serial latency chain and a single invocation is optimal.
    out = pl.pallas_call(
        _lstm_fc_kernel,
        out_shape=jax.ShapeDtypeStruct((B, out_p), jnp.float32),
        in_specs=in_specs,
        out_specs=vmem(),
        scratch_shapes=[pltpu.VMEM((Hp, out_p), jnp.bfloat16),
                        pltpu.SemaphoreType.DMA(())],
    )(*args)
    return out[:, :FUTURE_STEPS]


def init_raw_params(key, input_size=INPUT_SIZE, hidden=HIDDEN, out_size=FUTURE_STEPS):
    """PyTorch-layout raw weights with torch-style uniform init."""
    ks = jax.random.split(key, 10)
    k = 1.0 / np.sqrt(hidden)

    def u(kk, shape):
        return jax.random.uniform(kk, shape, jnp.float32, -k, k)

    return {
        "w_ih0": u(ks[0], (4 * hidden, input_size)),
        "w_hh0": u(ks[1], (4 * hidden, hidden)),
        "b_ih0": u(ks[2], (4 * hidden,)),
        "b_hh0": u(ks[3], (4 * hidden,)),
        "w_ih1": u(ks[4], (4 * hidden, hidden)),
        "w_hh1": u(ks[5], (4 * hidden, hidden)),
        "b_ih1": u(ks[6], (4 * hidden,)),
        "b_hh1": u(ks[7], (4 * hidden,)),
        "fc_w": u(ks[8], (out_size, hidden)),
        "fc_b": u(ks[9], (out_size,)),
    }


def pack_params(raw, hidden=HIDDEN, hidden_p=HIDDEN_P, out_size=FUTURE_STEPS, out_p=OUT_P):
    """Transpose + zero-pad + gate-reorder weights into the kernel's lane-aligned layout.

    Gate blocks are placed in order [i, f, o, g] (see GATE_POS) and each padded 50 -> 64
    columns; extra rows/cols are zero, so padded state lanes stay exactly 0 through the
    recurrence.  Matmul operands are stored in bf16; VPU-path terms stay f32.
    """
    H, Hp = hidden, hidden_p

    def pad_gates_t(w):                       # torch (4H, in) -> (in, 4Hp), reordered + padded
        w_t = w.T
        out = jnp.zeros((w_t.shape[0], 4 * Hp), jnp.float32)
        for tg, pg in enumerate(GATE_POS):
            out = out.at[:, pg * Hp:pg * Hp + H].set(w_t[:, tg * H:(tg + 1) * H])
        return out

    def pad_bias(b):                          # (4H,) -> (1, 4Hp), reordered + padded
        out = jnp.zeros((4 * Hp,), jnp.float32)
        for tg, pg in enumerate(GATE_POS):
            out = out.at[pg * Hp:pg * Hp + H].set(b[tg * H:(tg + 1) * H])
        return out.reshape(1, 4 * Hp)

    def pad_rows(w):
        return jnp.pad(w, ((0, Hp - w.shape[0]), (0, 0)))

    wih0 = pad_gates_t(raw["w_ih0"])                                        # (1, 4Hp) f32
    whh0 = pad_rows(pad_gates_t(raw["w_hh0"])).astype(jnp.bfloat16)         # (Hp, 4Hp) bf16
    b0 = pad_bias(raw["b_ih0"] + raw["b_hh0"])                              # (1, 4Hp) f32

    wih1 = pad_rows(pad_gates_t(raw["w_ih1"])).astype(jnp.bfloat16)         # (Hp, 4Hp) bf16
    whh1 = pad_rows(pad_gates_t(raw["w_hh1"])).astype(jnp.bfloat16)         # (Hp, 4Hp) bf16
    b1 = pad_bias(raw["b_ih1"] + raw["b_hh1"])                              # (1, 4Hp) f32

    fcw = (jnp.zeros((Hp, out_p), jnp.float32)
           .at[:H, :out_size].set(raw["fc_w"].T)).astype(jnp.bfloat16)      # (Hp, OUT_P) bf16
    fcb = jnp.zeros((1, out_p), jnp.float32).at[0, :out_size].set(raw["fc_b"])

    return {"wih0": wih0, "whh0": whh0, "b0": b0,
            "wih1": wih1, "whh1": whh1, "b1": b1,
            "fcw": fcw, "fcb": fcb}


def reference_forward(x, raw):
    """Pure-JAX f32 reference with identical (unpadded) math, for sanity-checking the kernel."""
    B, T, _ = x.shape
    H = HIDDEN
    wih0, whh0 = raw["w_ih0"].T, raw["w_hh0"].T
    b0 = (raw["b_ih0"] + raw["b_hh0"])[None, :]
    wih1, whh1 = raw["w_ih1"].T, raw["w_hh1"].T
    b1 = (raw["b_ih1"] + raw["b_hh1"])[None, :]

    def cell(x_t, h, c, wih, whh, b):
        gates = x_t @ wih + h @ whh + b
        i = jax.nn.sigmoid(gates[:, :H])
        f = jax.nn.sigmoid(gates[:, H:2 * H])
        g = jnp.tanh(gates[:, 2 * H:3 * H])
        o = jax.nn.sigmoid(gates[:, 3 * H:])
        c = f * c + i * g
        return o * jnp.tanh(c), c

    h0 = c0 = h1 = c1 = jnp.zeros((B, H), jnp.float32)
    for t in range(T):
        h0, c0 = cell(x[:, t, :], h0, c0, wih0, whh0, b0)
        h1, c1 = cell(h0, h1, c1, wih1, whh1, b1)
    return h1 @ raw["fc_w"].T + raw["fc_b"][None, :]


if __name__ == "__main__":
    key = jax.random.PRNGKey(0)
    k_param, k_x = jax.random.split(key)

    B, T = 2, 8
    raw = init_raw_params(k_param)
    params = pack_params(raw)
    x = jax.random.normal(k_x, (B, T, INPUT_SIZE), jnp.float32)

    out = jax.block_until_ready(lstm_model_forward(x, params))
    ref = reference_forward(x, raw)

    assert out.shape == (B, FUTURE_STEPS), out.shape
    # bf16 MXU operands (f32 accumulation) => compare against the f32 reference at a
    # bf16-appropriate tolerance; observed error is O(1e-3).
    np.testing.assert_allclose(np.asarray(out), np.asarray(ref), rtol=2e-2, atol=2e-2)

    print("KERNEL_OK")
</pallas_src>

<mosaic_0001>
module attributes {stable_mosaic.version = 11 : i64} {
  func.func @_lstm_fc_kernel(%arg0: memref<2x8x1xf32, #tpu.memory_space<vmem>>, %arg1: memref<1x256xf32, #tpu.memory_space<vmem>>, %arg2: memref<64x256xbf16, #tpu.memory_space<vmem>>, %arg3: memref<1x256xf32, #tpu.memory_space<vmem>>, %arg4: memref<64x256xbf16, #tpu.memory_space<vmem>>, %arg5: memref<64x256xbf16, #tpu.memory_space<vmem>>, %arg6: memref<1x256xf32, #tpu.memory_space<vmem>>, %arg7: memref<1x512xf32, #tpu.memory_space<vmem>>, %arg8: memref<64x512xbf16, #tpu.memory_space<any>>, %arg9: memref<2x512xf32, #tpu.memory_space<vmem>>, %arg10: memref<64x512xbf16, #tpu.memory_space<vmem>>, %arg11: memref<!tpu.dma_semaphore, #tpu.memory_space<semaphore_mem>>) attributes {dimension_semantics = [], scalar_prefetch = 0 : i64, scratch_operands = 2 : i64, tpu.core_type = #tpu.core_type<tc>} {
    tpu.enqueue_dma source(%arg8 : memref<64x512xbf16, #tpu.memory_space<any>>) target(%arg10 : memref<64x512xbf16, #tpu.memory_space<vmem>>) target_semaphore(%arg11 : memref<!tpu.dma_semaphore, #tpu.memory_space<semaphore_mem>>)
    %c0 = arith.constant 0 : index
    %c0_0 = arith.constant 0 : index
    %c0_1 = arith.constant 0 : index
    %0 = vector.load %arg0[%c0, %c0_0, %c0_1] : memref<2x8x1xf32, #tpu.memory_space<vmem>>, vector<2x8x1xf32>
    %c0_2 = arith.constant 0 : index
    %c0_3 = arith.constant 0 : index
    %1 = vector.load %arg1[%c0_2, %c0_3] : memref<1x256xf32, #tpu.memory_space<vmem>>, vector<1x256xf32>
    %2 = vector.shape_cast %1 : vector<1x256xf32> to vector<1x1x256xf32>
    %3 = vector.broadcast %0 : vector<2x8x1xf32> to vector<2x8x256xf32>
    %4 = vector.broadcast %2 : vector<1x1x256xf32> to vector<2x8x256xf32>
    %5 = arith.mulf %3, %4 : vector<2x8x256xf32>
    %c0_4 = arith.constant 0 : index
    %c0_5 = arith.constant 0 : index
    %6 = vector.load %arg3[%c0_4, %c0_5] : memref<1x256xf32, #tpu.memory_space<vmem>>, vector<1x256xf32>
    %7 = vector.shape_cast %6 : vector<1x256xf32> to vector<1x1x256xf32>
    %8 = vector.broadcast %7 : vector<1x1x256xf32> to vector<2x8x256xf32>
    %9 = arith.addf %5, %8 : vector<2x8x256xf32>
    %c0_6 = arith.constant 0 : index
    %c0_7 = arith.constant 0 : index
    %10 = vector.load %arg2[%c0_6, %c0_7] : memref<64x256xbf16, #tpu.memory_space<vmem>>, vector<64x256xbf16>
    %c0_8 = arith.constant 0 : index
    %c0_9 = arith.constant 0 : index
    %11 = vector.load %arg4[%c0_8, %c0_9] : memref<64x256xbf16, #tpu.memory_space<vmem>>, vector<64x256xbf16>
    %c0_10 = arith.constant 0 : index
    %c0_11 = arith.constant 0 : index
    %12 = vector.load %arg5[%c0_10, %c0_11] : memref<64x256xbf16, #tpu.memory_space<vmem>>, vector<64x256xbf16>
    %c0_12 = arith.constant 0 : index
    %c0_13 = arith.constant 0 : index
    %13 = vector.load %arg6[%c0_12, %c0_13] : memref<1x256xf32, #tpu.memory_space<vmem>>, vector<1x256xf32>
    %14 = vector.shape_cast %13 : vector<1x256xf32> to vector<1x256xf32>
    %15 = vector.broadcast %14 : vector<1x256xf32> to vector<2x256xf32>
    %cst = arith.constant 0.000000e+00 : f32
    %16 = vector.broadcast %cst : f32 to vector<2x64xf32>
    %17 = arith.truncf %16 : vector<2x64xf32> to vector<2x64xbf16>
    %cst_14 = arith.constant dense<0.000000e+00> : vector<2x256xf32>
    %18 = tpu.matmul %17, %12, %cst_14 {dimension_numbers = #tpu.dot_dimension_numbers<[1], [0], [0], [1], [0, 0, 1, 1], [], []>} : vector<2x64xbf16>, vector<64x256xbf16>, vector<2x256xf32> -> vector<2x256xf32>
    %19 = vector.extract_strided_slice %9 {offsets = [0, 0, 0], sizes = [2, 1, 256], strides = [1, 1, 1]} : vector<2x8x256xf32> to vector<2x1x256xf32>
    %20 = vector.shape_cast %19 : vector<2x1x256xf32> to vector<2x256xf32>
    %21 = arith.truncf %16 : vector<2x64xf32> to vector<2x64xbf16>
    %cst_15 = arith.constant dense<0.000000e+00> : vector<2x256xf32>
    %22 = tpu.matmul %21, %10, %cst_15 {dimension_numbers = #tpu.dot_dimension_numbers<[1], [0], [0], [1], [0, 0, 1, 1], [], []>} : vector<2x64xbf16>, vector<64x256xbf16>, vector<2x256xf32> -> vector<2x256xf32>
    %23 = arith.addf %20, %22 : vector<2x256xf32>
    %24 = vector.extract_strided_slice %23 {offsets = [0, 0], sizes = [2, 192], strides = [1, 1]} : vector<2x256xf32> to vector<2x192xf32>
    %25 = arith.negf %24 : vector<2x192xf32>
    %26 = math.exp %25 : vector<2x192xf32>
    %cst_16 = arith.constant 1.000000e+00 : f32
    %27 = vector.broadcast %cst_16 : f32 to vector<2x192xf32>
    %28 = arith.addf %27, %26 : vector<2x192xf32>
    %29 = arith.divf %27, %28 : vector<2x192xf32>
    %30 = vector.extract_strided_slice %23 {offsets = [0, 192], sizes = [2, 64], strides = [1, 1]} : vector<2x256xf32> to vector<2x64xf32>
    %31 = math.tanh %30 : vector<2x64xf32>
    %32 = vector.extract_strided_slice %29 {offsets = [0, 0], sizes = [2, 64], strides = [1, 1]} : vector<2x192xf32> to vector<2x64xf32>
    %33 = vector.extract_strided_slice %29 {offsets = [0, 64], sizes = [2, 64], strides = [1, 1]} : vector<2x192xf32> to vector<2x64xf32>
    %34 = vector.extract_strided_slice %29 {offsets = [0, 128], sizes = [2, 64], strides = [1, 1]} : vector<2x192xf32> to vector<2x64xf32>
    %35 = arith.mulf %33, %16 : vector<2x64xf32>
    %36 = arith.mulf %32, %31 : vector<2x64xf32>
    %37 = arith.addf %35, %36 : vector<2x64xf32>
    %38 = math.tanh %37 : vector<2x64xf32>
    %39 = arith.mulf %34, %38 : vector<2x64xf32>
    %40 = arith.truncf %39 : vector<2x64xf32> to vector<2x64xbf16>
    %cst_17 = arith.constant dense<0.000000e+00> : vector<2x256xf32>
    %41 = tpu.matmul %40, %11, %cst_17 {dimension_numbers = #tpu.dot_dimension_numbers<[1], [0], [0], [1], [0, 0, 1, 1], [], []>} : vector<2x64xbf16>, vector<64x256xbf16>, vector<2x256xf32> -> vector<2x256xf32>
    %42 = arith.addf %41, %18 : vector<2x256xf32>
    %43 = arith.addf %42, %15 : vector<2x256xf32>
    %44 = vector.extract_strided_slice %43 {offsets = [0, 0], sizes = [2, 192], strides = [1, 1]} : vector<2x256xf32> to vector<2x192xf32>
    %45 = arith.negf %44 : vector<2x192xf32>
    %46 = math.exp %45 : vector<2x192xf32>
    %cst_18 = arith.constant 1.000000e+00 : f32
    %47 = vector.broadcast %cst_18 : f32 to vector<2x192xf32>
    %48 = arith.addf %47, %46 : vector<2x192xf32>
    %49 = arith.divf %47, %48 : vector<2x192xf32>
    %50 = vector.extract_strided_slice %43 {offsets = [0, 192], sizes = [2, 64], strides = [1, 1]} : vector<2x256xf32> to vector<2x64xf32>
    %51 = math.tanh %50 : vector<2x64xf32>
    %52 = vector.extract_strided_slice %49 {offsets = [0, 0], sizes = [2, 64], strides = [1, 1]} : vector<2x192xf32> to vector<2x64xf32>
    %53 = vector.extract_strided_slice %49 {offsets = [0, 64], sizes = [2, 64], strides = [1, 1]} : vector<2x192xf32> to vector<2x64xf32>
    %54 = vector.extract_strided_slice %49 {offsets = [0, 128], sizes = [2, 64], strides = [1, 1]} : vector<2x192xf32> to vector<2x64xf32>
    %55 = arith.mulf %53, %16 : vector<2x64xf32>
    %56 = arith.mulf %52, %51 : vector<2x64xf32>
    %57 = arith.addf %55, %56 : vector<2x64xf32>
    %58 = math.tanh %57 : vector<2x64xf32>
    %59 = arith.mulf %54, %58 : vector<2x64xf32>
    %60 = arith.truncf %59 : vector<2x64xf32> to vector<2x64xbf16>
    %cst_19 = arith.constant dense<0.000000e+00> : vector<2x256xf32>
    %61 = tpu.matmul %60, %12, %cst_19 {dimension_numbers = #tpu.dot_dimension_numbers<[1], [0], [0], [1], [0, 0, 1, 1], [], []>} : vector<2x64xbf16>, vector<64x256xbf16>, vector<2x256xf32> -> vector<2x256xf32>
    %62 = vector.extract_strided_slice %9 {offsets = [0, 1, 0], sizes = [2, 1, 256], strides = [1, 1, 1]} : vector<2x8x256xf32> to vector<2x1x256xf32>
    %63 = vector.shape_cast %62 : vector<2x1x256xf32> to vector<2x256xf32>
    %64 = arith.truncf %39 : vector<2x64xf32> to vector<2x64xbf16>
    %cst_20 = arith.constant dense<0.000000e+00> : vector<2x256xf32>
    %65 = tpu.matmul %64, %10, %cst_20 {dimension_numbers = #tpu.dot_dimension_numbers<[1], [0], [0], [1], [0, 0, 1, 1], [], []>} : vector<2x64xbf16>, vector<64x256xbf16>, vector<2x256xf32> -> vector<2x256xf32>
    %66 = arith.addf %63, %65 : vector<2x256xf32>
    %67 = vector.extract_strided_slice %66 {offsets = [0, 0], sizes = [2, 192], strides = [1, 1]} : vector<2x256xf32> to vector<2x192xf32>
    %68 = arith.negf %67 : vector<2x192xf32>
    %69 = math.exp %68 : vector<2x192xf32>
    %cst_21 = arith.constant 1.000000e+00 : f32
    %70 = vector.broadcast %cst_21 : f32 to vector<2x192xf32>
    %71 = arith.addf %70, %69 : vector<2x192xf32>
    %72 = arith.divf %70, %71 : vector<2x192xf32>
    %73 = vector.extract_strided_slice %66 {offsets = [0, 192], sizes = [2, 64], strides = [1, 1]} : vector<2x256xf32> to vector<2x64xf32>
    %74 = math.tanh %73 : vector<2x64xf32>
    %75 = vector.extract_strided_slice %72 {offsets = [0, 0], sizes = [2, 64], strides = [1, 1]} : vector<2x192xf32> to vector<2x64xf32>
    %76 = vector.extract_strided_slice %72 {offsets = [0, 64], sizes = [2, 64], strides = [1, 1]} : vector<2x192xf32> to vector<2x64xf32>
    %77 = vector.extract_strided_slice %72 {offsets = [0, 128], sizes = [2, 64], strides = [1, 1]} : vector<2x192xf32> to vector<2x64xf32>
    %78 = arith.mulf %76, %37 : vector<2x64xf32>
    %79 = arith.mulf %75, %74 : vector<2x64xf32>
    %80 = arith.addf %78, %79 : vector<2x64xf32>
    %81 = math.tanh %80 : vector<2x64xf32>
    %82 = arith.mulf %77, %81 : vector<2x64xf32>
    %83 = arith.truncf %82 : vector<2x64xf32> to vector<2x64xbf16>
    %cst_22 = arith.constant dense<0.000000e+00> : vector<2x256xf32>
    %84 = tpu.matmul %83, %11, %cst_22 {dimension_numbers = #tpu.dot_dimension_numbers<[1], [0], [0], [1], [0, 0, 1, 1], [], []>} : vector<2x64xbf16>, vector<64x256xbf16>, vector<2x256xf32> -> vector<2x256xf32>
    %85 = arith.addf %84, %61 : vector<2x256xf32>
    %86 = arith.addf %85, %15 : vector<2x256xf32>
    %87 = vector.extract_strided_slice %86 {offsets = [0, 0], sizes = [2, 192], strides = [1, 1]} : vector<2x256xf32> to vector<2x192xf32>
    %88 = arith.negf %87 : vector<2x192xf32>
    %89 = math.exp %88 : vector<2x192xf32>
    %cst_23 = arith.constant 1.000000e+00 : f32
    %90 = vector.broadcast %cst_23 : f32 to vector<2x192xf32>
    %91 = arith.addf %90, %89 : vector<2x192xf32>
    %92 = arith.divf %90, %91 : vector<2x192xf32>
    %93 = vector.extract_strided_slice %86 {offsets = [0, 192], sizes = [2, 64], strides = [1, 1]} : vector<2x256xf32> to vector<2x64xf32>
    %94 = math.tanh %93 : vector<2x64xf32>
    %95 = vector.extract_strided_slice %92 {offsets = [0, 0], sizes = [2, 64], strides = [1, 1]} : vector<2x192xf32> to vector<2x64xf32>
    %96 = vector.extract_strided_slice %92 {offsets = [0, 64], sizes = [2, 64], strides = [1, 1]} : vector<2x192xf32> to vector<2x64xf32>
    %97 = vector.extract_strided_slice %92 {offsets = [0, 128], sizes = [2, 64], strides = [1, 1]} : vector<2x192xf32> to vector<2x64xf32>
    %98 = arith.mulf %96, %57 : vector<2x64xf32>
    %99 = arith.mulf %95, %94 : vector<2x64xf32>
    %100 = arith.addf %98, %99 : vector<2x64xf32>
    %101 = math.tanh %100 : vector<2x64xf32>
    %102 = arith.mulf %97, %101 : vector<2x64xf32>
    %103 = arith.truncf %102 : vector<2x64xf32> to vector<2x64xbf16>
    %cst_24 = arith.constant dense<0.000000e+00> : vector<2x256xf32>
    %104 = tpu.matmul %103, %12, %cst_24 {dimension_numbers = #tpu.dot_dimension_numbers<[1], [0], [0], [1], [0, 0, 1, 1], [], []>} : vector<2x64xbf16>, vector<64x256xbf16>, vector<2x256xf32> -> vector<2x256xf32>
    %105 = vector.extract_strided_slice %9 {offsets = [0, 2, 0], sizes = [2, 1, 256], strides = [1, 1, 1]} : vector<2x8x256xf32> to vector<2x1x256xf32>
    %106 = vector.shape_cast %105 : vector<2x1x256xf32> to vector<2x256xf32>
    %107 = arith.truncf %82 : vector<2x64xf32> to vector<2x64xbf16>
    %cst_25 = arith.constant dense<0.000000e+00> : vector<2x256xf32>
    %108 = tpu.matmul %107, %10, %cst_25 {dimension_numbers = #tpu.dot_dimension_numbers<[1], [0], [0], [1], [0, 0, 1, 1], [], []>} : vector<2x64xbf16>, vector<64x256xbf16>, vector<2x256xf32> -> vector<2x256xf32>
    %109 = arith.addf %106, %108 : vector<2x256xf32>
    %110 = vector.extract_strided_slice %109 {offsets = [0, 0], sizes = [2, 192], strides = [1, 1]} : vector<2x256xf32> to vector<2x192xf32>
    %111 = arith.negf %110 : vector<2x192xf32>
    %112 = math.exp %111 : vector<2x192xf32>
    %cst_26 = arith.constant 1.000000e+00 : f32
    %113 = vector.broadcast %cst_26 : f32 to vector<2x192xf32>
    %114 = arith.addf %113, %112 : vector<2x192xf32>
    %115 = arith.divf %113, %114 : vector<2x192xf32>
    %116 = vector.extract_strided_slice %109 {offsets = [0, 192], sizes = [2, 64], strides = [1, 1]} : vector<2x256xf32> to vector<2x64xf32>
    %117 = math.tanh %116 : vector<2x64xf32>
    %118 = vector.extract_strided_slice %115 {offsets = [0, 0], sizes = [2, 64], strides = [1, 1]} : vector<2x192xf32> to vector<2x64xf32>
    %119 = vector.extract_strided_slice %115 {offsets = [0, 64], sizes = [2, 64], strides = [1, 1]} : vector<2x192xf32> to vector<2x64xf32>
    %120 = vector.extract_strided_slice %115 {offsets = [0, 128], sizes = [2, 64], strides = [1, 1]} : vector<2x192xf32> to vector<2x64xf32>
    %121 = arith.mulf %119, %80 : vector<2x64xf32>
    %122 = arith.mulf %118, %117 : vector<2x64xf32>
    %123 = arith.addf %121, %122 : vector<2x64xf32>
    %124 = math.tanh %123 : vector<2x64xf32>
    %125 = arith.mulf %120, %124 : vector<2x64xf32>
    %126 = arith.truncf %125 : vector<2x64xf32> to vector<2x64xbf16>
    %cst_27 = arith.constant dense<0.000000e+00> : vector<2x256xf32>
    %127 = tpu.matmul %126, %11, %cst_27 {dimension_numbers = #tpu.dot_dimension_numbers<[1], [0], [0], [1], [0, 0, 1, 1], [], []>} : vector<2x64xbf16>, vector<64x256xbf16>, vector<2x256xf32> -> vector<2x256xf32>
    %128 = arith.addf %127, %104 : vector<2x256xf32>
    %129 = arith.addf %128, %15 : vector<2x256xf32>
    %130 = vector.extract_strided_slice %129 {offsets = [0, 0], sizes = [2, 192], strides = [1, 1]} : vector<2x256xf32> to vector<2x192xf32>
    %131 = arith.negf %130 : vector<2x192xf32>
    %132 = math.exp %131 : vector<2x192xf32>
    %cst_28 = arith.constant 1.000000e+00 : f32
    %133 = vector.broadcast %cst_28 : f32 to vector<2x192xf32>
    %134 = arith.addf %133, %132 : vector<2x192xf32>
    %135 = arith.divf %133, %134 : vector<2x192xf32>
    %136 = vector.extract_strided_slice %129 {offsets = [0, 192], sizes = [2, 64], strides = [1, 1]} : vector<2x256xf32> to vector<2x64xf32>
    %137 = math.tanh %136 : vector<2x64xf32>
    %138 = vector.extract_strided_slice %135 {offsets = [0, 0], sizes = [2, 64], strides = [1, 1]} : vector<2x192xf32> to vector<2x64xf32>
    %139 = vector.extract_strided_slice %135 {offsets = [0, 64], sizes = [2, 64], strides = [1, 1]} : vector<2x192xf32> to vector<2x64xf32>
    %140 = vector.extract_strided_slice %135 {offsets = [0, 128], sizes = [2, 64], strides = [1, 1]} : vector<2x192xf32> to vector<2x64xf32>
    %141 = arith.mulf %139, %100 : vector<2x64xf32>
    %142 = arith.mulf %138, %137 : vector<2x64xf32>
    %143 = arith.addf %141, %142 : vector<2x64xf32>
    %144 = math.tanh %143 : vector<2x64xf32>
    %145 = arith.mulf %140, %144 : vector<2x64xf32>
    %146 = arith.truncf %145 : vector<2x64xf32> to vector<2x64xbf16>
    %cst_29 = arith.constant dense<0.000000e+00> : vector<2x256xf32>
    %147 = tpu.matmul %146, %12, %cst_29 {dimension_numbers = #tpu.dot_dimension_numbers<[1], [0], [0], [1], [0, 0, 1, 1], [], []>} : vector<2x64xbf16>, vector<64x256xbf16>, vector<2x256xf32> -> vector<2x256xf32>
    %148 = vector.extract_strided_slice %9 {offsets = [0, 3, 0], sizes = [2, 1, 256], strides = [1, 1, 1]} : vector<2x8x256xf32> to vector<2x1x256xf32>
    %149 = vector.shape_cast %148 : vector<2x1x256xf32> to vector<2x256xf32>
    %150 = arith.truncf %125 : vector<2x64xf32> to vector<2x64xbf16>
    %cst_30 = arith.constant dense<0.000000e+00> : vector<2x256xf32>
    %151 = tpu.matmul %150, %10, %cst_30 {dimension_numbers = #tpu.dot_dimension_numbers<[1], [0], [0], [1], [0, 0, 1, 1], [], []>} : vector<2x64xbf16>, vector<64x256xbf16>, vector<2x256xf32> -> vector<2x256xf32>
    %152 = arith.addf %149, %151 : vector<2x256xf32>
    %153 = vector.extract_strided_slice %152 {offsets = [0, 0], sizes = [2, 192], strides = [1, 1]} : vector<2x256xf32> to vector<2x192xf32>
    %154 = arith.negf %153 : vector<2x192xf32>
    %155 = math.exp %154 : vector<2x192xf32>
    %cst_31 = arith.constant 1.000000e+00 : f32
    %156 = vector.broadcast %cst_31 : f32 to vector<2x192xf32>
    %157 = arith.addf %156, %155 : vector<2x192xf32>
    %158 = arith.divf %156, %157 : vector<2x192xf32>
    %159 = vector.extract_strided_slice %152 {offsets = [0, 192], sizes = [2, 64], strides = [1, 1]} : vector<2x256xf32> to vector<2x64xf32>
    %160 = math.tanh %159 : vector<2x64xf32>
    %161 = vector.extract_strided_slice %158 {offsets = [0, 0], sizes = [2, 64], strides = [1, 1]} : vector<2x192xf32> to vector<2x64xf32>
    %162 = vector.extract_strided_slice %158 {offsets = [0, 64], sizes = [2, 64], strides = [1, 1]} : vector<2x192xf32> to vector<2x64xf32>
    %163 = vector.extract_strided_slice %158 {offsets = [0, 128], sizes = [2, 64], strides = [1, 1]} : vector<2x192xf32> to vector<2x64xf32>
    %164 = arith.mulf %162, %123 : vector<2x64xf32>
    %165 = arith.mulf %161, %160 : vector<2x64xf32>
    %166 = arith.addf %164, %165 : vector<2x64xf32>
    %167 = math.tanh %166 : vector<2x64xf32>
    %168 = arith.mulf %163, %167 : vector<2x64xf32>
    %169 = arith.truncf %168 : vector<2x64xf32> to vector<2x64xbf16>
    %cst_32 = arith.constant dense<0.000000e+00> : vector<2x256xf32>
    %170 = tpu.matmul %169, %11, %cst_32 {dimension_numbers = #tpu.dot_dimension_numbers<[1], [0], [0], [1], [0, 0, 1, 1], [], []>} : vector<2x64xbf16>, vector<64x256xbf16>, vector<2x256xf32> -> vector<2x256xf32>
    %171 = arith.addf %170, %147 : vector<2x256xf32>
    %172 = arith.addf %171, %15 : vector<2x256xf32>
    %173 = vector.extract_strided_slice %172 {offsets = [0, 0], sizes = [2, 192], strides = [1, 1]} : vector<2x256xf32> to vector<2x192xf32>
    %174 = arith.negf %173 : vector<2x192xf32>
    %175 = math.exp %174 : vector<2x192xf32>
    %cst_33 = arith.constant 1.000000e+00 : f32
    %176 = vector.broadcast %cst_33 : f32 to vector<2x192xf32>
    %177 = arith.addf %176, %175 : vector<2x192xf32>
    %178 = arith.divf %176, %177 : vector<2x192xf32>
    %179 = vector.extract_strided_slice %172 {offsets = [0, 192], sizes = [2, 64], strides = [1, 1]} : vector<2x256xf32> to vector<2x64xf32>
    %180 = math.tanh %179 : vector<2x64xf32>
    %181 = vector.extract_strided_slice %178 {offsets = [0, 0], sizes = [2, 64], strides = [1, 1]} : vector<2x192xf32> to vector<2x64xf32>
    %182 = vector.extract_strided_slice %178 {offsets = [0, 64], sizes = [2, 64], strides = [1, 1]} : vector<2x192xf32> to vector<2x64xf32>
    %183 = vector.extract_strided_slice %178 {offsets = [0, 128], sizes = [2, 64], strides = [1, 1]} : vector<2x192xf32> to vector<2x64xf32>
    %184 = arith.mulf %182, %143 : vector<2x64xf32>
    %185 = arith.mulf %181, %180 : vector<2x64xf32>
    %186 = arith.addf %184, %185 : vector<2x64xf32>
    %187 = math.tanh %186 : vector<2x64xf32>
    %188 = arith.mulf %183, %187 : vector<2x64xf32>
    %189 = arith.truncf %188 : vector<2x64xf32> to vector<2x64xbf16>
    %cst_34 = arith.constant dense<0.000000e+00> : vector<2x256xf32>
    %190 = tpu.matmul %189, %12, %cst_34 {dimension_numbers = #tpu.dot_dimension_numbers<[1], [0], [0], [1], [0, 0, 1, 1], [], []>} : vector<2x64xbf16>, vector<64x256xbf16>, vector<2x256xf32> -> vector<2x256xf32>
    %191 = vector.extract_strided_slice %9 {offsets = [0, 4, 0], sizes = [2, 1, 256], strides = [1, 1, 1]} : vector<2x8x256xf32> to vector<2x1x256xf32>
    %192 = vector.shape_cast %191 : vector<2x1x256xf32> to vector<2x256xf32>
    %193 = arith.truncf %168 : vector<2x64xf32> to vector<2x64xbf16>
    %cst_35 = arith.constant dense<0.000000e+00> : vector<2x256xf32>
    %194 = tpu.matmul %193, %10, %cst_35 {dimension_numbers = #tpu.dot_dimension_numbers<[1], [0], [0], [1], [0, 0, 1, 1], [], []>} : vector<2x64xbf16>, vector<64x256xbf16>, vector<2x256xf32> -> vector<2x256xf32>
    %195 = arith.addf %192, %194 : vector<2x256xf32>
    %196 = vector.extract_strided_slice %195 {offsets = [0, 0], sizes = [2, 192], strides = [1, 1]} : vector<2x256xf32> to vector<2x192xf32>
    %197 = arith.negf %196 : vector<2x192xf32>
    %198 = math.exp %197 : vector<2x192xf32>
    %cst_36 = arith.constant 1.000000e+00 : f32
    %199 = vector.broadcast %cst_36 : f32 to vector<2x192xf32>
    %200 = arith.addf %199, %198 : vector<2x192xf32>
    %201 = arith.divf %199, %200 : vector<2x192xf32>
    %202 = vector.extract_strided_slice %195 {offsets = [0, 192], sizes = [2, 64], strides = [1, 1]} : vector<2x256xf32> to vector<2x64xf32>
    %203 = math.tanh %202 : vector<2x64xf32>
    %204 = vector.extract_strided_slice %201 {offsets = [0, 0], sizes = [2, 64], strides = [1, 1]} : vector<2x192xf32> to vector<2x64xf32>
    %205 = vector.extract_strided_slice %201 {offsets = [0, 64], sizes = [2, 64], strides = [1, 1]} : vector<2x192xf32> to vector<2x64xf32>
    %206 = vector.extract_strided_slice %201 {offsets = [0, 128], sizes = [2, 64], strides = [1, 1]} : vector<2x192xf32> to vector<2x64xf32>
    %207 = arith.mulf %205, %166 : vector<2x64xf32>
    %208 = arith.mulf %204, %203 : vector<2x64xf32>
    %209 = arith.addf %207, %208 : vector<2x64xf32>
    %210 = math.tanh %209 : vector<2x64xf32>
    %211 = arith.mulf %206, %210 : vector<2x64xf32>
    %212 = arith.truncf %211 : vector<2x64xf32> to vector<2x64xbf16>
    %cst_37 = arith.constant dense<0.000000e+00> : vector<2x256xf32>
    %213 = tpu.matmul %212, %11, %cst_37 {dimension_numbers = #tpu.dot_dimension_numbers<[1], [0], [0], [1], [0, 0, 1, 1], [], []>} : vector<2x64xbf16>, vector<64x256xbf16>, vector<2x256xf32> -> vector<2x256xf32>
    %214 = arith.addf %213, %190 : vector<2x256xf32>
    %215 = arith.addf %214, %15 : vector<2x256xf32>
    %216 = vector.extract_strided_slice %215 {offsets = [0, 0], sizes = [2, 192], strides = [1, 1]} : vector<2x256xf32> to vector<2x192xf32>
    %217 = arith.negf %216 : vector<2x192xf32>
    %218 = math.exp %217 : vector<2x192xf32>
    %cst_38 = arith.constant 1.000000e+00 : f32
    %219 = vector.broadcast %cst_38 : f32 to vector<2x192xf32>
    %220 = arith.addf %219, %218 : vector<2x192xf32>
    %221 = arith.divf %219, %220 : vector<2x192xf32>
    %222 = vector.extract_strided_slice %215 {offsets = [0, 192], sizes = [2, 64], strides = [1, 1]} : vector<2x256xf32> to vector<2x64xf32>
    %223 = math.tanh %222 : vector<2x64xf32>
    %224 = vector.extract_strided_slice %221 {offsets = [0, 0], sizes = [2, 64], strides = [1, 1]} : vector<2x192xf32> to vector<2x64xf32>
    %225 = vector.extract_strided_slice %221 {offsets = [0, 64], sizes = [2, 64], strides = [1, 1]} : vector<2x192xf32> to vector<2x64xf32>
    %226 = vector.extract_strided_slice %221 {offsets = [0, 128], sizes = [2, 64], strides = [1, 1]} : vector<2x192xf32> to vector<2x64xf32>
    %227 = arith.mulf %225, %186 : vector<2x64xf32>
    %228 = arith.mulf %224, %223 : vector<2x64xf32>
    %229 = arith.addf %227, %228 : vector<2x64xf32>
    %230 = math.tanh %229 : vector<2x64xf32>
    %231 = arith.mulf %226, %230 : vector<2x64xf32>
    %232 = arith.truncf %231 : vector<2x64xf32> to vector<2x64xbf16>
    %cst_39 = arith.constant dense<0.000000e+00> : vector<2x256xf32>
    %233 = tpu.matmul %232, %12, %cst_39 {dimension_numbers = #tpu.dot_dimension_numbers<[1], [0], [0], [1], [0, 0, 1, 1], [], []>} : vector<2x64xbf16>, vector<64x256xbf16>, vector<2x256xf32> -> vector<2x256xf32>
    %234 = vector.extract_strided_slice %9 {offsets = [0, 5, 0], sizes = [2, 1, 256], strides = [1, 1, 1]} : vector<2x8x256xf32> to vector<2x1x256xf32>
    %235 = vector.shape_cast %234 : vector<2x1x256xf32> to vector<2x256xf32>
    %236 = arith.truncf %211 : vector<2x64xf32> to vector<2x64xbf16>
    %cst_40 = arith.constant dense<0.000000e+00> : vector<2x256xf32>
    %237 = tpu.matmul %236, %10, %cst_40 {dimension_numbers = #tpu.dot_dimension_numbers<[1], [0], [0], [1], [0, 0, 1, 1], [], []>} : vector<2x64xbf16>, vector<64x256xbf16>, vector<2x256xf32> -> vector<2x256xf32>
    %238 = arith.addf %235, %237 : vector<2x256xf32>
    %239 = vector.extract_strided_slice %238 {offsets = [0, 0], sizes = [2, 192], strides = [1, 1]} : vector<2x256xf32> to vector<2x192xf32>
    %240 = arith.negf %239 : vector<2x192xf32>
    %241 = math.exp %240 : vector<2x192xf32>
    %cst_41 = arith.constant 1.000000e+00 : f32
    %242 = vector.broadcast %cst_41 : f32 to vector<2x192xf32>
    %243 = arith.addf %242, %241 : vector<2x192xf32>
    %244 = arith.divf %242, %243 : vector<2x192xf32>
    %245 = vector.extract_strided_slice %238 {offsets = [0, 192], sizes = [2, 64], strides = [1, 1]} : vector<2x256xf32> to vector<2x64xf32>
    %246 = math.tanh %245 : vector<2x64xf32>
    %247 = vector.extract_strided_slice %244 {offsets = [0, 0], sizes = [2, 64], strides = [1, 1]} : vector<2x192xf32> to vector<2x64xf32>
    %248 = vector.extract_strided_slice %244 {offsets = [0, 64], sizes = [2, 64], strides = [1, 1]} : vector<2x192xf32> to vector<2x64xf32>
    %249 = vector.extract_strided_slice %244 {offsets = [0, 128], sizes = [2, 64], strides = [1, 1]} : vector<2x192xf32> to vector<2x64xf32>
    %250 = arith.mulf %248, %209 : vector<2x64xf32>
    %251 = arith.mulf %247, %246 : vector<2x64xf32>
    %252 = arith.addf %250, %251 : vector<2x64xf32>
    %253 = math.tanh %252 : vector<2x64xf32>
    %254 = arith.mulf %249, %253 : vector<2x64xf32>
    %255 = arith.truncf %254 : vector<2x64xf32> to vector<2x64xbf16>
    %cst_42 = arith.constant dense<0.000000e+00> : vector<2x256xf32>
    %256 = tpu.matmul %255, %11, %cst_42 {dimension_numbers = #tpu.dot_dimension_numbers<[1], [0], [0], [1], [0, 0, 1, 1], [], []>} : vector<2x64xbf16>, vector<64x256xbf16>, vector<2x256xf32> -> vector<2x256xf32>
    %257 = arith.addf %256, %233 : vector<2x256xf32>
    %258 = arith.addf %257, %15 : vector<2x256xf32>
    %259 = vector.extract_strided_slice %258 {offsets = [0, 0], sizes = [2, 192], strides = [1, 1]} : vector<2x256xf32> to vector<2x192xf32>
    %260 = arith.negf %259 : vector<2x192xf32>
    %261 = math.exp %260 : vector<2x192xf32>
    %cst_43 = arith.constant 1.000000e+00 : f32
    %262 = vector.broadcast %cst_43 : f32 to vector<2x192xf32>
    %263 = arith.addf %262, %261 : vector<2x192xf32>
    %264 = arith.divf %262, %263 : vector<2x192xf32>
    %265 = vector.extract_strided_slice %258 {offsets = [0, 192], sizes = [2, 64], strides = [1, 1]} : vector<2x256xf32> to vector<2x64xf32>
    %266 = math.tanh %265 : vector<2x64xf32>
    %267 = vector.extract_strided_slice %264 {offsets = [0, 0], sizes = [2, 64], strides = [1, 1]} : vector<2x192xf32> to vector<2x64xf32>
    %268 = vector.extract_strided_slice %264 {offsets = [0, 64], sizes = [2, 64], strides = [1, 1]} : vector<2x192xf32> to vector<2x64xf32>
    %269 = vector.extract_strided_slice %264 {offsets = [0, 128], sizes = [2, 64], strides = [1, 1]} : vector<2x192xf32> to vector<2x64xf32>
    %270 = arith.mulf %268, %229 : vector<2x64xf32>
    %271 = arith.mulf %267, %266 : vector<2x64xf32>
    %272 = arith.addf %270, %271 : vector<2x64xf32>
    %273 = math.tanh %272 : vector<2x64xf32>
    %274 = arith.mulf %269, %273 : vector<2x64xf32>
    %275 = arith.truncf %274 : vector<2x64xf32> to vector<2x64xbf16>
    %cst_44 = arith.constant dense<0.000000e+00> : vector<2x256xf32>
    %276 = tpu.matmul %275, %12, %cst_44 {dimension_numbers = #tpu.dot_dimension_numbers<[1], [0], [0], [1], [0, 0, 1, 1], [], []>} : vector<2x64xbf16>, vector<64x256xbf16>, vector<2x256xf32> -> vector<2x256xf32>
    %277 = vector.extract_strided_slice %9 {offsets = [0, 6, 0], sizes = [2, 1, 256], strides = [1, 1, 1]} : vector<2x8x256xf32> to vector<2x1x256xf32>
    %278 = vector.shape_cast %277 : vector<2x1x256xf32> to vector<2x256xf32>
    %279 = arith.truncf %254 : vector<2x64xf32> to vector<2x64xbf16>
    %cst_45 = arith.constant dense<0.000000e+00> : vector<2x256xf32>
    %280 = tpu.matmul %279, %10, %cst_45 {dimension_numbers = #tpu.dot_dimension_numbers<[1], [0], [0], [1], [0, 0, 1, 1], [], []>} : vector<2x64xbf16>, vector<64x256xbf16>, vector<2x256xf32> -> vector<2x256xf32>
    %281 = arith.addf %278, %280 : vector<2x256xf32>
    %282 = vector.extract_strided_slice %281 {offsets = [0, 0], sizes = [2, 192], strides = [1, 1]} : vector<2x256xf32> to vector<2x192xf32>
    %283 = arith.negf %282 : vector<2x192xf32>
    %284 = math.exp %283 : vector<2x192xf32>
    %cst_46 = arith.constant 1.000000e+00 : f32
    %285 = vector.broadcast %cst_46 : f32 to vector<2x192xf32>
    %286 = arith.addf %285, %284 : vector<2x192xf32>
    %287 = arith.divf %285, %286 : vector<2x192xf32>
    %288 = vector.extract_strided_slice %281 {offsets = [0, 192], sizes = [2, 64], strides = [1, 1]} : vector<2x256xf32> to vector<2x64xf32>
    %289 = math.tanh %288 : vector<2x64xf32>
    %290 = vector.extract_strided_slice %287 {offsets = [0, 0], sizes = [2, 64], strides = [1, 1]} : vector<2x192xf32> to vector<2x64xf32>
    %291 = vector.extract_strided_slice %287 {offsets = [0, 64], sizes = [2, 64], strides = [1, 1]} : vector<2x192xf32> to vector<2x64xf32>
    %292 = vector.extract_strided_slice %287 {offsets = [0, 128], sizes = [2, 64], strides = [1, 1]} : vector<2x192xf32> to vector<2x64xf32>
    %293 = arith.mulf %291, %252 : vector<2x64xf32>
    %294 = arith.mulf %290, %289 : vector<2x64xf32>
    %295 = arith.addf %293, %294 : vector<2x64xf32>
    %296 = math.tanh %295 : vector<2x64xf32>
    %297 = arith.mulf %292, %296 : vector<2x64xf32>
    %298 = arith.truncf %297 : vector<2x64xf32> to vector<2x64xbf16>
    %cst_47 = arith.constant dense<0.000000e+00> : vector<2x256xf32>
    %299 = tpu.matmul %298, %11, %cst_47 {dimension_numbers = #tpu.dot_dimension_numbers<[1], [0], [0], [1], [0, 0, 1, 1], [], []>} : vector<2x64xbf16>, vector<64x256xbf16>, vector<2x256xf32> -> vector<2x256xf32>
    %300 = arith.addf %299, %276 : vector<2x256xf32>
    %301 = arith.addf %300, %15 : vector<2x256xf32>
    %302 = vector.extract_strided_slice %301 {offsets = [0, 0], sizes = [2, 192], strides = [1, 1]} : vector<2x256xf32> to vector<2x192xf32>
    %303 = arith.negf %302 : vector<2x192xf32>
    %304 = math.exp %303 : vector<2x192xf32>
    %cst_48 = arith.constant 1.000000e+00 : f32
    %305 = vector.broadcast %cst_48 : f32 to vector<2x192xf32>
    %306 = arith.addf %305, %304 : vector<2x192xf32>
    %307 = arith.divf %305, %306 : vector<2x192xf32>
    %308 = vector.extract_strided_slice %301 {offsets = [0, 192], sizes = [2, 64], strides = [1, 1]} : vector<2x256xf32> to vector<2x64xf32>
    %309 = math.tanh %308 : vector<2x64xf32>
    %310 = vector.extract_strided_slice %307 {offsets = [0, 0], sizes = [2, 64], strides = [1, 1]} : vector<2x192xf32> to vector<2x64xf32>
    %311 = vector.extract_strided_slice %307 {offsets = [0, 64], sizes = [2, 64], strides = [1, 1]} : vector<2x192xf32> to vector<2x64xf32>
    %312 = vector.extract_strided_slice %307 {offsets = [0, 128], sizes = [2, 64], strides = [1, 1]} : vector<2x192xf32> to vector<2x64xf32>
    %313 = arith.mulf %311, %272 : vector<2x64xf32>
    %314 = arith.mulf %310, %309 : vector<2x64xf32>
    %315 = arith.addf %313, %314 : vector<2x64xf32>
    %316 = math.tanh %315 : vector<2x64xf32>
    %317 = arith.mulf %312, %316 : vector<2x64xf32>
    %318 = arith.truncf %317 : vector<2x64xf32> to vector<2x64xbf16>
    %cst_49 = arith.constant dense<0.000000e+00> : vector<2x256xf32>
    %319 = tpu.matmul %318, %12, %cst_49 {dimension_numbers = #tpu.dot_dimension_numbers<[1], [0], [0], [1], [0, 0, 1, 1], [], []>} : vector<2x64xbf16>, vector<64x256xbf16>, vector<2x256xf32> -> vector<2x256xf32>
    %320 = vector.extract_strided_slice %9 {offsets = [0, 7, 0], sizes = [2, 1, 256], strides = [1, 1, 1]} : vector<2x8x256xf32> to vector<2x1x256xf32>
    %321 = vector.shape_cast %320 : vector<2x1x256xf32> to vector<2x256xf32>
    %322 = arith.truncf %297 : vector<2x64xf32> to vector<2x64xbf16>
    %cst_50 = arith.constant dense<0.000000e+00> : vector<2x256xf32>
    %323 = tpu.matmul %322, %10, %cst_50 {dimension_numbers = #tpu.dot_dimension_numbers<[1], [0], [0], [1], [0, 0, 1, 1], [], []>} : vector<2x64xbf16>, vector<64x256xbf16>, vector<2x256xf32> -> vector<2x256xf32>
    %324 = arith.addf %321, %323 : vector<2x256xf32>
    %325 = vector.extract_strided_slice %324 {offsets = [0, 0], sizes = [2, 192], strides = [1, 1]} : vector<2x256xf32> to vector<2x192xf32>
    %326 = arith.negf %325 : vector<2x192xf32>
    %327 = math.exp %326 : vector<2x192xf32>
    %cst_51 = arith.constant 1.000000e+00 : f32
    %328 = vector.broadcast %cst_51 : f32 to vector<2x192xf32>
    %329 = arith.addf %328, %327 : vector<2x192xf32>
    %330 = arith.divf %328, %329 : vector<2x192xf32>
    %331 = vector.extract_strided_slice %324 {offsets = [0, 192], sizes = [2, 64], strides = [1, 1]} : vector<2x256xf32> to vector<2x64xf32>
    %332 = math.tanh %331 : vector<2x64xf32>
    %333 = vector.extract_strided_slice %330 {offsets = [0, 0], sizes = [2, 64], strides = [1, 1]} : vector<2x192xf32> to vector<2x64xf32>
    %334 = vector.extract_strided_slice %330 {offsets = [0, 64], sizes = [2, 64], strides = [1, 1]} : vector<2x192xf32> to vector<2x64xf32>
    %335 = vector.extract_strided_slice %330 {offsets = [0, 128], sizes = [2, 64], strides = [1, 1]} : vector<2x192xf32> to vector<2x64xf32>
    %336 = arith.mulf %334, %295 : vector<2x64xf32>
    %337 = arith.mulf %333, %332 : vector<2x64xf32>
    %338 = arith.addf %336, %337 : vector<2x64xf32>
    %339 = math.tanh %338 : vector<2x64xf32>
    %340 = arith.mulf %335, %339 : vector<2x64xf32>
    %341 = arith.truncf %340 : vector<2x64xf32> to vector<2x64xbf16>
    %cst_52 = arith.constant dense<0.000000e+00> : vector<2x256xf32>
    %342 = tpu.matmul %341, %11, %cst_52 {dimension_numbers = #tpu.dot_dimension_numbers<[1], [0], [0], [1], [0, 0, 1, 1], [], []>} : vector<2x64xbf16>, vector<64x256xbf16>, vector<2x256xf32> -> vector<2x256xf32>
    %343 = arith.addf %342, %319 : vector<2x256xf32>
    %344 = arith.addf %343, %15 : vector<2x256xf32>
    %345 = vector.extract_strided_slice %344 {offsets = [0, 0], sizes = [2, 192], strides = [1, 1]} : vector<2x256xf32> to vector<2x192xf32>
    %346 = arith.negf %345 : vector<2x192xf32>
    %347 = math.exp %346 : vector<2x192xf32>
    %cst_53 = arith.constant 1.000000e+00 : f32
    %348 = vector.broadcast %cst_53 : f32 to vector<2x192xf32>
    %349 = arith.addf %348, %347 : vector<2x192xf32>
    %350 = arith.divf %348, %349 : vector<2x192xf32>
    %351 = vector.extract_strided_slice %344 {offsets = [0, 192], sizes = [2, 64], strides = [1, 1]} : vector<2x256xf32> to vector<2x64xf32>
    %352 = math.tanh %351 : vector<2x64xf32>
    %353 = vector.extract_strided_slice %350 {offsets = [0, 0], sizes = [2, 64], strides = [1, 1]} : vector<2x192xf32> to vector<2x64xf32>
    %354 = vector.extract_strided_slice %350 {offsets = [0, 64], sizes = [2, 64], strides = [1, 1]} : vector<2x192xf32> to vector<2x64xf32>
    %355 = vector.extract_strided_slice %350 {offsets = [0, 128], sizes = [2, 64], strides = [1, 1]} : vector<2x192xf32> to vector<2x64xf32>
    %356 = arith.mulf %354, %315 : vector<2x64xf32>
    %357 = arith.mulf %353, %352 : vector<2x64xf32>
    %358 = arith.addf %356, %357 : vector<2x64xf32>
    %359 = math.tanh %358 : vector<2x64xf32>
    %360 = arith.mulf %355, %359 : vector<2x64xf32>
    tpu.wait_dma2 semaphore(%arg11 : memref<!tpu.dma_semaphore, #tpu.memory_space<semaphore_mem>>) src(%arg8 : memref<64x512xbf16, #tpu.memory_space<any>>) dst(%arg10 : memref<64x512xbf16, #tpu.memory_space<vmem>>)
    %361 = arith.truncf %360 : vector<2x64xf32> to vector<2x64xbf16>
    %c0_54 = arith.constant 0 : index
    %c0_55 = arith.constant 0 : index
    %362 = vector.load %arg10[%c0_54, %c0_55] : memref<64x512xbf16, #tpu.memory_space<vmem>>, vector<64x512xbf16>
    %cst_56 = arith.constant dense<0.000000e+00> : vector<2x512xf32>
    %363 = tpu.matmul %361, %362, %cst_56 {dimension_numbers = #tpu.dot_dimension_numbers<[1], [0], [0], [1], [0, 0, 1, 1], [], []>} : vector<2x64xbf16>, vector<64x512xbf16>, vector<2x512xf32> -> vector<2x512xf32>
    %c0_57 = arith.constant 0 : index
    %c0_58 = arith.constant 0 : index
    %364 = vector.load %arg7[%c0_57, %c0_58] : memref<1x512xf32, #tpu.memory_space<vmem>>, vector<1x512xf32>
    %365 = vector.broadcast %364 : vector<1x512xf32> to vector<2x512xf32>
    %366 = arith.addf %363, %365 : vector<2x512xf32>
    %c0_59 = arith.constant 0 : index
    %c0_60 = arith.constant 0 : index
    %367 = vector.load %arg9[%c0_59, %c0_60] : memref<2x512xf32, #tpu.memory_space<vmem>>, vector<2x512xf32>
    tpu.vector_store %arg9[%c0_59, %c0_60], %366 {strides = array<i32>} : memref<2x512xf32, #tpu.memory_space<vmem>>, vector<2x512xf32>,
    return
  }
}

</mosaic_0001>

<bundles_post_ra>
// kernel: tpu_custom_call.1
= control target key start
LH: loop header
LB: loop body
LE: loop exit
PB: predicated region body
PF: predicated region fallthrough
CT: control target
= control target key end

     0   :  { %14 = vsyncpa [#allocation5], 0  ;;  %s4190_s0 = inlined_call_operand.vmem [shape: f32[2,8,1], index: 0, kind: input, shape index: {}]   ;;  %s4191_s1 = inlined_call_operand.vmem [shape: f32[1,256], index: 1, kind: input, shape index: {}]   ;;  %s4192_s2 = inlined_call_operand.hbm [shape: bf16[64,256], index: 2, kind: input, shape index: {}]   ;;  %s4193_s3 = inlined_call_operand.vmem [shape: f32[1,256], index: 3, kind: input, shape index: {}]   ;;  %s4194_s4 = inlined_call_operand.hbm [shape: bf16[64,256], index: 4, kind: input, shape index: {}]   ;;  %s4195_s5 = inlined_call_operand.hbm [shape: bf16[64,256], index: 5, kind: input, shape index: {}]   ;;  %s4196_s6 = inlined_call_operand.vmem [shape: f32[1,256], index: 6, kind: input, shape index: {}]   ;;  %s4197_s7 = inlined_call_operand.vmem [shape: f32[1,512], index: 7, kind: input, shape index: {}]   ;;  %s4198_s8 = inlined_call_operand.hbm [shape: bf16[64,512], index: 8, kind: input, shape index: {}]   ;;  %s4199_s9 = inlined_call_operand.hbm [shape: f32[2,512], index: 9, kind: output, shape index: {}]  }
   0x1   :  { %15 = vsyncpa [#allocation8], 0 }
   0x2   :  { %16 = vsyncpa [#allocation6], 0  ;;  %s40_s11 = sshll.u32 %s4194_s4, 4  ;;  %s3471_s12 = smov [#allocation7]   ;;  %s41_s11 = int_to_ptr.hbm [resolvable:$true] %s40_s11 }
   0x3   :  { %s42_s13 = sshll.u32 %s3471_s12, 4  ;;  %s25_s16 = sshll.u32 %s4192_s2, 4  ;;  %s43_s13 = int_to_ptr.vmem [resolvable:$true] %s42_s13  ;;  %s26_s16 = int_to_ptr.hbm [resolvable:$true] %s25_s16 }
   0x4   :  { %s3472_s17 = smov 128   ;;  %s3473_s18 = smov 8  }
   0x5   :  { %48 = dma.hbm_to_vmem [thread:$0]  %s41_s11, 1024, %s43_s13, [#allocation8], %s3472_s17, %s3472_s17, %s3473_s18  }
   0x6   :  { %s3474_s19 = smov [#allocation4]   ;;  %s53_s23 = sshll.u32 %s4195_s5, 4  ;;  %s54_s23 = int_to_ptr.hbm [resolvable:$true] %s53_s23 }
   0x7   :  { %s27_s20 = sshll.u32 %s3474_s19, 4  ;;  %s3475_s4 = smov [#allocation9]   ;;  %s28_s20 = int_to_ptr.vmem [resolvable:$true] %s27_s20 }
   0x8   :  { %33 = dma.hbm_to_vmem [thread:$0]  %s26_s16, 1024, %s28_s20, [#allocation5], %s3472_s17, %s3472_s17, %s3473_s18  }
   0x9   :  { %s55_s24 = sshll.u32 %s3475_s4, 4  ;;  %s56_s24 = int_to_ptr.vmem [resolvable:$true] %s55_s24 }
   0xa   :  { %61 = dma.hbm_to_vmem [thread:$0]  %s54_s23, 1024, %s56_s24, [#allocation8], %s3472_s17, %s3472_s17, %s3473_s18  }
   0xb   :  { %3463 = dma.done.wait [#allocation5], 1024  }
   0xc   :  { %3464 = vsyncadd [#allocation5], 4294966272 }
   0xd   :  { %3465 = dma.done.wait [#allocation8], 2048  }
   0xe   :  { %3466 = vsyncadd [#allocation8], 4294965248  ;;  %v3476_v0 = vmov 0   ;;  %v2806_v1 = vld [vmem:[#allocation4 + $0x30] sm:$0xf]  ;;  %v93_v17 = vld [vmem:[%s4190_s0 + $0x8] sm:$0xff] }
   0xf   :  { %3054 = vset.pattern.permute.xlu0 %v3476_v0  ;;  %v3012_v2 = vld [vmem:[#allocation4 + $0x34] sm:$0xf0]  ;;  %v3011_v3 = vld [vmem:[#allocation4 + $0x34] sm:$0xf]  ;;  %v2808_v5 = vld [vmem:[#allocation4 + $0x38] sm:$0xf0] }
  0x10   :  { %v3540_v4 = vor.u32 %v3012_v2, %v2806_v1  ;;  %v2798_v6 = vld [vmem:[#allocation4 + $0x20] sm:$0xf]  ;;  %v3010_v7 = vld [vmem:[#allocation4 + $0x24] sm:$0xf0]  ;;  %v3542_v8 = vor.u32 %v3011_v3, %v2808_v5  ;;  %v3009_v9 = vld [vmem:[#allocation4 + $0x24] sm:$0xf]  ;;  %102 = vperm.xlu0 %3054, %v93_v17  }
  0x11   :  { %v2800_v10 = vld [vmem:[#allocation4 + $0x28] sm:$0xf0]  ;;  %v3545_v11 = vor.u32 %v3010_v7, %v2798_v6  ;;  %v2790_v13 = vld [vmem:[#allocation4 + $0x10] sm:$0xf]  ;;  %v3008_v14 = vld [vmem:[#allocation4 + $0x14] sm:$0xf0] }
  0x12   :  { %268 = vmatpush.bf16.msra.mxu2 %v3540_v4  ;;  %281 = vmatpush.bf16.msra.mxu3 %v3542_v8  ;;  %v3548_v12 = vor.u32 %v3009_v9, %v2800_v10  ;;  %v3007_v15 = vld [vmem:[#allocation4 + $0x14] sm:$0xf]  ;;  %v2792_v16 = vld [vmem:[#allocation4 + $0x18] sm:$0xf0]  ;;  %v3554_v18 = vor.u32 %v3008_v14, %v2790_v13  ;;  %v2782_v20 = vld [vmem:[#allocation4] sm:$0xf] }
  0x13   :  { %v3557_v19 = vor.u32 %v3007_v15, %v2792_v16  ;;  %v3006_v21 = vld [vmem:[#allocation4 + $0x4] sm:$0xf0]  ;;  %v3005_v22 = vld [vmem:[#allocation4 + $0x4] sm:$0xf]  ;;  %v2784_v23 = vld [vmem:[#allocation4 + $0x8] sm:$0xf0] }
  0x14   :  { %v3560_v24 = vor.u32 %v3006_v21, %v2782_v20  ;;  %v92_v25 = vld [vmem:[%s4190_s0] sm:$0xff]  ;;  %v3566_v26 = vor.u32 %v3005_v22, %v2784_v23  ;;  %s3477_s0 = smov 64   ;;  %s86_s11 = sshll.u32 %s4198_s8, 4  ;;  %s87_s11 = int_to_ptr.hbm [resolvable:$true] %s86_s11 }
  0x15   :  { %v94_v27 = vld [vmem:[%s4191_s1] sm:$0x3]  ;;  %s3478_s12 = smov [#allocation2]  }
  0x16   :  { %269 = vmatpush.bf16.msra.mxu2 %v3545_v11  ;;  %282 = vmatpush.bf16.msra.mxu3 %v3548_v12  ;;  %v114_v28 = vld [vmem:[%s4193_s3] sm:$0x3]  ;;  %v106_v29 = vperm.slane %v94_v27, 0  ;;  %v107_v37 = vperm.slane %v94_v27, 1  ;;  %s88_s13 = sshll.u32 %s3478_s12, 4  ;;  %s89_s13 = int_to_ptr.vmem [resolvable:$true] %s88_s13 }
  0x17   :  { %v116_v31 = vperm.slane %v114_v28, 0  ;;  %v117_v39 = vperm.slane %v114_v28, 1  ;;  %91 = dma.hbm_to_vmem [thread:$0]  %s87_s11, 2048, %s89_s13, [#allocation3] }
  0x18   :  { %97 = vperm.xlu0 %3054, %v92_v25  }
  0x1a   :  { %270 = vmatpush.bf16.msra.mxu2 %v3554_v18  ;;  %283 = vmatpush.bf16.msra.mxu3 %v3557_v19 }
  0x1e   :  { %271 = vmatpush.bf16.msra.mxu2 %v3560_v24  ;;  %284 = vmatpush.bf16.msra.mxu3 %v3566_v26 }
  0x21   :  { %272 = vmatmul.bf16.vlgmr.msra.gmra.mxu2 %v3476_v0  ;;  %285 = vmatmul.bf16.vlgmr.msra.gmra.mxu3 %v3476_v0 }
  0x82   :  { %v103_v30 = vpop.permute.xlu0 %102 }
  0x83   :  { %v112_v32 = vmul.f32 %v106_v29, %v103_v30  ;;  %v113_v38 = vmul.f32 %v107_v37, %v103_v30  ;;  %v3027_v30 = vld [vmem:[#allocation9 + $0x34] sm:$0xf] }
  0x85   :  { %v3578_v33 = vadd.f32 %v116_v31, %v112_v32  ;;  %v3582_v41 = vadd.f32 %v117_v39, %v113_v38  ;;  %v3025_v32 = vld [vmem:[#allocation9 + $0x24] sm:$0xf]  ;;  %v3028_v38 = vld [vmem:[#allocation9 + $0x34] sm:$0xf0] }
  0x8a   :  { %v98_v34 = vpop.permute.xlu0 %97 }
  0x8b   :  { %v110_v35 = vmul.f32 %v106_v29, %v98_v34  ;;  %v111_v44 = vmul.f32 %v107_v37, %v98_v34  ;;  %v2774_v37 = vld [vmem:[#allocation9 + $0x30] sm:$0xf] }
  0x8d   :  { %v3580_v36 = vadd.f32 %v116_v31, %v110_v35  ;;  %v3587_v47 = vadd.f32 %v117_v39, %v111_v44  ;;  %v2776_v31 = vld [vmem:[#allocation9 + $0x38] sm:$0xf0]  ;;  %v2768_v35 = vld [vmem:[#allocation9 + $0x28] sm:$0xf0]  ;;  %v3602_v39 = vor.u32 %v3028_v38, %v2774_v37  ;;  %v3023_v44 = vld [vmem:[#allocation9 + $0x14] sm:$0xf] }
  0x8e   :  { %v3600_v34 = vor.u32 %v3027_v30, %v2776_v31  ;;  %v2826_v30 = vld [vmem:[#allocation7 + $0x10] sm:$0xf] }
  0x8f   :  { %202 = vmatpush.bf16.msra.mxu0 %v3602_v39  ;;  %559 = vmatpush.bf16.msrb.mxu2 %v3602_v39 }
  0x90   :  { %215 = vmatpush.bf16.msra.mxu1 %v3600_v34  ;;  %572 = vmatpush.bf16.msrb.mxu3 %v3600_v34 }
  0xa4   :  { %v273_v40 = vpop.f32.mrf.mxu2  ;;  %v286_v42 = vpop.f32.mrf.mxu3 }
  0xa5   :  { %v293_v43 = vrot.slane %v286_v42, 1  ;;  %v3591_v49 = vadd.f32 %v286_v42, %v3587_v47  ;;  %v292_v52 = vrot.slane %v273_v40, 1  ;;  %v298_v55 = vadd.f32 %v273_v40, %v3580_v36  ;;  %v2766_v40 = vld [vmem:[#allocation9 + $0x20] sm:$0xf] }
  0xa6   :  { %v3605_v42 = vor.u32 %v3025_v32, %v2768_v35  ;;  %v3016_v35 = vld [vmem:[#allocation7 + $0x14] sm:$0xf0] }
  0xa7   :  { %v3585_v45 = vadd.f32 %v293_v43, %v3582_v41  ;;  %v300_v53 = vadd.f32 %v292_v52, %v3578_v33  ;;  %v2812_v56 = vmul.f32 -1.442695, %v298_v55  ;;  %v3026_v43 = vld [vmem:[#allocation9 + $0x24] sm:$0xf0]  ;;  %v3667_v37 = vor.u32 %v3016_v35, %v2826_v30 }
  0xa8   :  { %216 = vmatpush.bf16.msra.mxu1 %v3605_v42  ;;  %573 = vmatpush.bf16.msrb.mxu3 %v3605_v42 }
  0xa9   :  { %3055 = vtanh.f32 %v3585_v45  ;;  %v2814_v54 = vmul.f32 -1.442695, %v300_v53  ;;  %v3021_v53 = vld [vmem:[#allocation9 + $0x4] sm:$0xf] }
  0xaa   :  { %3057 = vtanh.f32 %v3591_v49 }
  0xab   :  { %3059 = vpow2.f32 %v2814_v54  ;;  %v2752_v54 = vld [vmem:[#allocation9 + $0x8] sm:$0xf0] }
  0xac   :  { %v275_v46 = vpop.f32.mrf.mxu2  ;;  %v288_v48 = vpop.f32.mrf.mxu3  ;;  %3061 = vpow2.f32 %v2812_v56  ;;  %v2750_v56 = vld [vmem:[#allocation9] sm:$0xf] }
  0xad   :  { %v2760_v46 = vld [vmem:[#allocation9 + $0x18] sm:$0xf0]  ;;  %v3609_v48 = vor.u32 %v3026_v43, %v2766_v40  ;;  %v3013_v40 = vld [vmem:[#allocation7 + $0x4] sm:$0xf]  ;;  %v2820_v43 = vld [vmem:[#allocation7 + $0x8] sm:$0xf0] }
  0xae   :  { %v3613_v52 = vor.u32 %v3023_v44, %v2760_v46  ;;  %v2818_v44 = vld [vmem:[#allocation7] sm:$0xf]  ;;  %v3675_v46 = vor.u32 %v3013_v40, %v2820_v43 }
  0xaf   :  { %v3056_v50 = vpop.eup %3055  ;;  %203 = vmatpush.bf16.msra.mxu0 %v3609_v48  ;;  %560 = vmatpush.bf16.msrb.mxu2 %v3609_v48 }
  0xb0   :  { %386 = vrot.lane.b32.xlu1 %v3056_v50, %s3477_s0  ;;  %v3058_v51 = vpop.eup %3057  ;;  %v2758_v50 = vld [vmem:[#allocation9 + $0x10] sm:$0xf]  ;;  %217 = vmatpush.bf16.msra.mxu1 %v3613_v52 }
  0xb1   :  { %v3060_v57 = vpop.eup %3059  ;;  %574 = vmatpush.bf16.msrb.mxu3 %v3613_v52 }
  0xb2   :  { %v316_v58 = vadd.f32 1.0, %v3060_v57  ;;  %v3062_v59 = vpop.eup %3061  ;;  %v3022_v57 = vld [vmem:[#allocation9 + $0x4] sm:$0xf0] }
  0xb3   :  { %v314_v60 = vadd.f32 1.0, %v3062_v59  ;;  %v3625_v59 = vor.u32 %v3022_v57, %v2750_v56 }
  0xb4   :  { %3063 = vrcp.f32 %v316_v58  ;;  %v359_v7 = vand.u32 2147483648, %v316_v58  ;;  %vm353_vm1 = vweird.f32 %v316_v58  ;;  %v357_v9 = vand.u32 2147483647, %v316_v58 }
  0xb5   :  { %3065 = vrcp.f32 %v314_v60  ;;  %v329_v21 = vand.u32 2147483648, %v314_v60  ;;  %vm323_vm5 = vweird.f32 %v314_v60  ;;  %v327_v22 = vand.u32 2147483647, %v314_v60 }
  0xb6   :  { %v360_v14 = vor.u32 1.1754944e-38, %v359_v7  ;;  %vm358_vm3 = vcmp.eq.f32.partialorder %v357_v9, 8.507059e+37  ;;  %v2813_v7 = vmul.f32 -1.442695, %v3591_v49  ;;  %v2836_v49 = vld [vmem:[#allocation7 + $0x28] sm:$0xf0] }
  0xb7   :  { %v330_v25 = vor.u32 1.1754944e-38, %v329_v21  ;;  %vm328_vm7 = vcmp.eq.f32.partialorder %v327_v22, 8.507059e+37 }
  0xb8   :  { %384 = vrot.lane.b32.xlu1 %v3058_v51, %s3477_s0  ;;  %v3024_v51 = vld [vmem:[#allocation9 + $0x14] sm:$0xf0] }
  0xb9   :  { %v3617_v55 = vor.u32 %v3024_v51, %v2758_v50  ;;  %v3014_v50 = vld [vmem:[#allocation7 + $0x4] sm:$0xf0] }
  0xba   :  { %v3064_v61 = vpop.eup %3063  ;;  %v3677_v51 = vor.u32 %v3014_v50, %v2818_v44  ;;  %v148_v50 = vld [vmem:[%s4196_s6] sm:$0x3] }
  0xbb   :  { %v349_v62 = vmul.f32 %v3064_v61, %v316_v58  ;;  %v3066_v1 = vpop.eup %3065  ;;  %vm354_vm0 = vweird.f32 %v3064_v61  ;;  %v3621_v58 = vor.u32 %v3021_v53, %v2752_v54  ;;  %204 = vmatpush.bf16.msra.mxu0 %v3617_v55  ;;  %561 = vmatpush.bf16.msrb.mxu2 %v3617_v55 }
  0xbc   :  { %v319_v3 = vmul.f32 %v3066_v1, %v314_v60  ;;  %vm355_vm2 = vmor %vm353_vm1, %vm354_vm0  ;;  %vm324_vm4 = vweird.f32 %v3066_v1  ;;  %vm421_vm0 = vcmask 1041409   ;;  %vm194_vm1 = vcmask 523264  }
  0xbd   :  { %v350_v63 = vsub.f32 1.0, %v349_v62  ;;  %vm325_vm6 = vmor %vm323_vm5, %vm324_vm4  ;;  %218 = vmatpush.bf16.msra.mxu1 %v3621_v58  ;;  %575 = vmatpush.bf16.msrb.mxu3 %v3621_v58 }
  0xbe   :  { %v320_v6 = vsub.f32 1.0, %v319_v3 }
  0xbf   :  { %v351_v2 = vmul.f32 %v3064_v61, %v350_v63  ;;  %205 = vmatpush.bf16.msra.mxu0 %v3625_v59  ;;  %562 = vmatpush.bf16.msrb.mxu2 %v3625_v59 }
  0xc0   :  { %v321_v13 = vmul.f32 %v3066_v1, %v320_v6  ;;  %219 = vmatmul.bf16.vlgmr.msra.gmra.mxu1 %v3476_v0  ;;  %v2815_v6 = vmul.f32 -1.442695, %v3585_v45  ;;  %v3017_v45 = vld [vmem:[#allocation7 + $0x24] sm:$0xf] }
  0xc1   :  { %v352_v5 = vadd.f32 %v3064_v61, %v351_v2  ;;  %v3655_v22 = vor.u32 %v3017_v45, %v2836_v49 }
  0xc2   :  { %v322_v20 = vadd.f32 %v3066_v1, %v321_v13  ;;  %206 = vmatmul.bf16.vlgmr.msra.gmra.mxu0 %v3476_v0  ;;  %v2844_v13 = vld [vmem:[#allocation7 + $0x38] sm:$0xf0] }
  0xc3   :  { %v356_v10 = vsel %vm355_vm2, %v3064_v61, %v352_v5 }
  0xc4   :  { %v361_v16 = vsel %vm358_vm3, %v360_v14, %v356_v10  ;;  %v326_v23 = vsel %vm325_vm6, %v3066_v1, %v322_v20  ;;  %v3019_v10 = vld [vmem:[#allocation7 + $0x34] sm:$0xf]  ;;  %v2842_v14 = vld [vmem:[#allocation7 + $0x30] sm:$0xf]  ;;  %v2834_v20 = vld [vmem:[#allocation7 + $0x20] sm:$0xf] }
  0xc5   :  { %v331_v28 = vsel %vm328_vm7, %v330_v25, %v326_v23  ;;  %v381_v60 = vmul.f32 0.0, %v361_v16  ;;  %v3018_v23 = vld [vmem:[#allocation7 + $0x24] sm:$0xf0] }
  0xc6   :  { %v380_v63 = vmul.f32 0.0, %v331_v28  ;;  %v3657_v25 = vor.u32 %v3018_v23, %v2834_v20 }
 0x122   :  { %v387_v15 = vpop.permute.xlu1 %386 }
 0x123   :  { %v391_v17 = vmul.f32 %v387_v15, %v361_v16  ;;  %v3646_v15 = vor.u32 %v3019_v10, %v2844_v13  ;;  %v3020_v16 = vld [vmem:[#allocation7 + $0x34] sm:$0xf0] }
 0x125   :  { %396 = vrot.lane.b32.xlu2 %v391_v17, %s3477_s0  ;;  %v3648_v17 = vor.u32 %v3020_v16, %v2842_v14  ;;  %484 = vmatpush.bf16.msrb.mxu1 %v3646_v15 }
 0x126   :  { %766 = vmatpush.bf16.msra.mxu3 %v3646_v15 }
 0x127   :  { %471 = vmatpush.bf16.msrb.mxu0 %v3648_v17  ;;  %753 = vmatpush.bf16.msra.mxu2 %v3648_v17 }
 0x129   :  { %485 = vmatpush.bf16.msrb.mxu1 %v3655_v22 }
 0x12a   :  { %v385_v27 = vpop.permute.xlu1 %384  ;;  %767 = vmatpush.bf16.msra.mxu3 %v3655_v22 }
 0x12b   :  { %v390_v29 = vmul.f32 %v385_v27, %v331_v28  ;;  %472 = vmatpush.bf16.msrb.mxu0 %v3657_v25  ;;  %754 = vmatpush.bf16.msra.mxu2 %v3657_v25  ;;  %v3015_v28 = vld [vmem:[#allocation7 + $0x14] sm:$0xf] }
 0x12d   :  { %394 = vrot.lane.b32.xlu2 %v390_v29, %s3477_s0  ;;  %v2828_v29 = vld [vmem:[#allocation7 + $0x18] sm:$0xf0] }
 0x12e   :  { %v3665_v32 = vor.u32 %v3015_v28, %v2828_v29 }
 0x12f   :  { %473 = vmatpush.bf16.msrb.mxu0 %v3667_v37  ;;  %755 = vmatpush.bf16.msra.mxu2 %v3667_v37 }
 0x130   :  { %486 = vmatpush.bf16.msrb.mxu1 %v3665_v32  ;;  %768 = vmatpush.bf16.msra.mxu3 %v3665_v32 }
 0x133   :  { %474 = vmatpush.bf16.msrb.mxu0 %v3677_v51  ;;  %756 = vmatpush.bf16.msra.mxu2 %v3677_v51 }
 0x134   :  { %487 = vmatpush.bf16.msrb.mxu1 %v3675_v46  ;;  %769 = vmatpush.bf16.msra.mxu3 %v3675_v46 }
 0x137   :  { %585 = vmatpush.bf16.msra.mxu0 %v3540_v4 }
 0x138   :  { %598 = vmatpush.bf16.msra.mxu1 %v3542_v8 }
 0x13b   :  { %586 = vmatpush.bf16.msra.mxu0 %v3545_v11 }
 0x13c   :  { %599 = vmatpush.bf16.msra.mxu1 %v3548_v12 }
 0x13d   :  { %v220_v49 = vpop.f32.mrf.mxu1 }
 0x13f   :  { %587 = vmatpush.bf16.msra.mxu0 %v3554_v18 }
 0x140   :  { %600 = vmatpush.bf16.msra.mxu1 %v3557_v19 }
 0x143   :  { %588 = vmatpush.bf16.msra.mxu0 %v3560_v24 }
 0x144   :  { %601 = vmatpush.bf16.msra.mxu1 %v3566_v26 }
 0x145   :  { %v222_v40 = vpop.f32.mrf.mxu1 }
 0x17f   :  { %v397_v61 = vpop.permute.xlu2 %396 }
 0x180   :  { %v3628_v62 = vadd.f32 %v397_v61, %v381_v60 }
 0x182   :  { %3067 = vtanh.f32 %v3628_v62 }
 0x187   :  { %v395_v1 = vpop.permute.xlu2 %394 }
 0x188   :  { %v3068_v2 = vpop.eup %3067  ;;  %v3637_v3 = vadd.f32 %v395_v1, %v380_v63 }
 0x189   :  { %408 = vrot.lane.b32.xlu0 %v3068_v2, %s3477_s0 }
 0x18a   :  { %3069 = vtanh.f32 %v3637_v3 }
 0x18b   :  { %3071 = vpow2.f32 %v2815_v6 }
 0x18c   :  { %3073 = vpow2.f32 %v2813_v7 }
 0x190   :  { %v3070_v5 = vpop.eup %3069 }
 0x191   :  { %406 = vrot.lane.b32.xlu1 %v3070_v5, %s3477_s0  ;;  %v3072_v9 = vpop.eup %3071 }
 0x192   :  { %v3644_v0 = vadd.f32 1.0, %v3072_v9  ;;  %v3074_v21 = vpop.eup %3073 }
 0x193   :  { %v3661_v27 = vadd.f32 1.0, %v3074_v21  ;;  %v207_v21 = vpop.f32.mrf.mxu0 }
 0x194   :  { %3075 = vrcp.f32 %v3644_v0  ;;  %v374_v63 = vand.u32 2147483648, %v3644_v0  ;;  %vm368_vm9 = vweird.f32 %v3644_v0  ;;  %v372_v1 = vand.u32 2147483647, %v3644_v0 }
 0x195   :  { %3077 = vrcp.f32 %v3661_v27  ;;  %v344_v14 = vand.u32 2147483648, %v3661_v27  ;;  %vm338_vm13 = vweird.f32 %v3661_v27 }
 0x196   :  { %v375_v6 = vor.u32 1.1754944e-38, %v374_v63  ;;  %vm373_vm11 = vcmp.eq.f32.partialorder %v372_v1, 8.507059e+37 }
 0x197   :  { %v345_v20 = vor.u32 1.1754944e-38, %v344_v14 }
 0x19a   :  { %v3076_v31 = vpop.eup %3075 }
 0x19b   :  { %v364_v38 = vmul.f32 %v3076_v31, %v3644_v0  ;;  %v3078_v54 = vpop.eup %3077  ;;  %vm369_vm8 = vweird.f32 %v3076_v31  ;;  %v342_v0 = vand.u32 2147483647, %v3661_v27  ;;  %v209_v43 = vpop.f32.mrf.mxu0 }
 0x19c   :  { %v334_v57 = vmul.f32 %v3078_v54, %v3661_v27  ;;  %vm370_vm10 = vmor %vm368_vm9, %vm369_vm8  ;;  %vm339_vm12 = vweird.f32 %v3078_v54 }
 0x19d   :  { %v365_v53 = vsub.f32 1.0, %v364_v38  ;;  %vm340_vm14 = vmor %vm338_vm13, %vm339_vm12  ;;  %vm343_vm15 = vcmp.eq.f32.partialorder %v342_v0, 8.507059e+37 }
 0x19e   :  { %v335_v61 = vsub.f32 1.0, %v334_v57 }
 0x19f   :  { %v366_v56 = vmul.f32 %v3076_v31, %v365_v53  ;;  %v3722_v53 = vperm.slane %v148_v50, 1 }
 0x1a0   :  { %v336_v5 = vmul.f32 %v3078_v54, %v335_v61 }
 0x1a1   :  { %v367_v60 = vadd.f32 %v3076_v31, %v366_v56 }
 0x1a2   :  { %v337_v13 = vadd.f32 %v3078_v54, %v336_v5 }
 0x1a3   :  { %v371_v2 = vsel %vm370_vm10, %v3076_v31, %v367_v60 }
 0x1a4   :  { %v376_v7 = vsel %vm373_vm11, %v375_v6, %v371_v2  ;;  %v341_v45 = vsel %vm340_vm14, %v3078_v54, %v337_v13 }
 0x1a5   :  { %v346_v23 = vsel %vm343_vm15, %v345_v20, %v341_v45 }
 0x1fb   :  { %v409_v9 = vpop.permute.xlu0 %408 }
 0x1fc   :  { %v413_v10 = vmul.f32 %v409_v9, %v376_v7 }
 0x1fe   :  { %v415_v16 = vpack.c.bf16 %v413_v10, %v413_v10 }
 0x200   :  { %v419_v29 = vunpack.c.l.b16 %v415_v16  ;;  %v3739_v16 = vperm.slane %v148_v50, 0 }
 0x202   :  { %v420_v35 = vrot.slane %v419_v29, 7 }
 0x203   :  { %v407_v28 = vpop.permute.xlu1 %406 }
 0x204   :  { %v412_v30 = vmul.f32 %v407_v28, %v346_v23 }
 0x206   :  { %v414_v31 = vpack.c.bf16 %v412_v30, %v412_v30 }
 0x208   :  { %v418_v38 = vunpack.c.l.b16 %v414_v31 }
 0x20a   :  { %v422_v44 = vsel %vm421_vm0, %v420_v35, %v418_v38 }
 0x20b   :  { %v423_v27 = vpack.c.b16 %v422_v44, %v422_v44 }
 0x20d   :  { %2848 = vmatmul.msk.bf16.vlgmr.msrb.gmra.mxu0 %vm194_vm1, %v423_v27  ;;  %2849 = vmatmul.msk.bf16.vlgmr.msrb.gmra.mxu1 %vm194_vm1, %v423_v27 }
 0x20e   :  { %841 = vmatpush.bf16.msrb.mxu0 %v3602_v39  ;;  %854 = vmatpush.bf16.msrb.mxu1 %v3600_v34 }
 0x212   :  { %842 = vmatpush.bf16.msrb.mxu0 %v3609_v48  ;;  %855 = vmatpush.bf16.msrb.mxu1 %v3605_v42 }
 0x216   :  { %843 = vmatpush.bf16.msrb.mxu0 %v3617_v55  ;;  %856 = vmatpush.bf16.msrb.mxu1 %v3613_v52 }
 0x21a   :  { %844 = vmatpush.bf16.msrb.mxu0 %v3625_v59  ;;  %857 = vmatpush.bf16.msrb.mxu1 %v3621_v58 }
 0x21d   :  { %2854 = vmatmul.msk.bf16.vlgmr.msra.gmra.mxu0 %vm194_vm1, %v423_v27  ;;  %2855 = vmatmul.msk.bf16.vlgmr.msra.gmra.mxu1 %vm194_vm1, %v423_v27 }
 0x21e   :  { %1051 = vmatpush.bf16.msra.mxu1 %v3646_v15  ;;  %1038 = vmatpush.bf16.msra.mxu0 %v3648_v17 }
 0x222   :  { %1052 = vmatpush.bf16.msra.mxu1 %v3655_v22  ;;  %1039 = vmatpush.bf16.msra.mxu0 %v3657_v25 }
 0x226   :  { %1053 = vmatpush.bf16.msra.mxu1 %v3665_v32  ;;  %1040 = vmatpush.bf16.msra.mxu0 %v3667_v37 }
 0x22a   :  { %1054 = vmatpush.bf16.msra.mxu1 %v3675_v46  ;;  %1041 = vmatpush.bf16.msra.mxu0 %v3677_v51 }
 0x28a   :  { %v476_v54 = vpop.f32.mrf.mxu0  ;;  %v489_v56 = vpop.f32.mrf.mxu1 }
 0x28b   :  { %v490_v57 = vadd.f32 %v489_v56, %v220_v49  ;;  %v477_v45 = vadd.f32 %v476_v54, %v207_v21 }
 0x28d   :  { %v3725_v60 = vadd.f32 %v490_v57, %v3722_v53  ;;  %v493_v49 = vadd.f32 %v477_v45, %v3739_v16 }
 0x28f   :  { %3079 = vtanh.f32 %v3725_v60  ;;  %v2850_v20 = vmul.f32 -1.442695, %v493_v49 }
 0x292   :  { %v478_v61 = vpop.f32.mrf.mxu0  ;;  %v491_v63 = vpop.f32.mrf.mxu1 }
 0x295   :  { %v3080_v1 = vpop.eup %3079 }
 0x296   :  { %536 = vrot.lane.b32.xlu2 %v3080_v1, %s3477_s0 }
 0x29a   :  { %v590_v2 = vpop.f32.mrf.mxu0  ;;  %v603_v5 = vpop.f32.mrf.mxu1 }
 0x29b   :  { %v610_v6 = vrot.slane %v603_v5, 7  ;;  %v3730_v7 = vadd.f32 %v603_v5, %v3582_v41  ;;  %v617_v38 = vadd.f32 %v590_v2, %v3578_v33  ;;  %v609_v40 = vrot.slane %v590_v2, 7 }
 0x29d   :  { %3081 = vtanh.f32 %v3730_v7  ;;  %v3734_v9 = vadd.f32 %v610_v6, %v3587_v47  ;;  %v2858_v44 = vmul.f32 -1.442695, %v617_v38  ;;  %v615_v21 = vadd.f32 %v609_v40, %v3580_v36 }
 0x29f   :  { %3083 = vtanh.f32 %v3734_v9  ;;  %v2856_v57 = vmul.f32 -1.442695, %v615_v21 }
 0x2a0   :  { %3085 = vpow2.f32 %v2850_v20 }
 0x2a2   :  { %v592_v10 = vpop.f32.mrf.mxu0  ;;  %v605_v13 = vpop.f32.mrf.mxu1 }
 0x2a3   :  { %v3082_v14 = vpop.eup %3081 }
 0x2a4   :  { %709 = vrot.lane.b32.xlu1 %v3082_v14, %s3477_s0 }
 0x2a5   :  { %v3084_v0 = vpop.eup %3083 }
 0x2a6   :  { %707 = vrot.lane.b32.xlu0 %v3084_v0, %s3477_s0  ;;  %v3086_v23 = vpop.eup %3085 }
 0x2a7   :  { %v501_v28 = vadd.f32 1.0, %v3086_v23 }
 0x2a9   :  { %3087 = vrcp.f32 %v501_v28  ;;  %v514_v27 = vand.u32 2147483648, %v501_v28  ;;  %vm508_vm3 = vweird.f32 %v501_v28  ;;  %v512_v50 = vand.u32 2147483647, %v501_v28 }
 0x2aa   :  { %3089 = vpow2.f32 %v2858_v44 }
 0x2ab   :  { %v515_v56 = vor.u32 1.1754944e-38, %v514_v27  ;;  %vm513_vm5 = vcmp.eq.f32.partialorder %v512_v50, 8.507059e+37  ;;  %3091 = vpow2.f32 %v2856_v57 }
 0x2af   :  { %v3088_v29 = vpop.eup %3087 }
 0x2b0   :  { %v504_v30 = vmul.f32 %v3088_v29, %v501_v28  ;;  %vm509_vm2 = vweird.f32 %v3088_v29  ;;  %v3090_v2 = vpop.eup %3089 }
 0x2b1   :  { %vm510_vm4 = vmor %vm508_vm3, %vm509_vm2  ;;  %v633_v5 = vadd.f32 1.0, %v3090_v2  ;;  %v3092_v6 = vpop.eup %3091 }
 0x2b2   :  { %v505_v31 = vsub.f32 1.0, %v504_v30  ;;  %v631_v10 = vadd.f32 1.0, %v3092_v6 }
 0x2b3   :  { %3093 = vrcp.f32 %v633_v5  ;;  %vm670_vm7 = vweird.f32 %v633_v5 }
 0x2b4   :  { %v506_v35 = vmul.f32 %v3088_v29, %v505_v31  ;;  %3095 = vrcp.f32 %v631_v10  ;;  %v674_v31 = vand.u32 2147483647, %v633_v5  ;;  %vm640_vm11 = vweird.f32 %v631_v10 }
 0x2b5   :  { %v644_v21 = vand.u32 2147483647, %v631_v10 }
 0x2b6   :  { %v507_v43 = vadd.f32 %v3088_v29, %v506_v35  ;;  %vm675_vm10 = vcmp.eq.f32.partialorder %v674_v31, 8.507059e+37 }
 0x2b7   :  { %vm645_vm13 = vcmp.eq.f32.partialorder %v644_v21, 8.507059e+37 }
 0x2b8   :  { %v511_v54 = vsel %vm510_vm4, %v3088_v29, %v507_v43  ;;  %v676_v29 = vand.u32 2147483648, %v633_v5  ;;  %v646_v43 = vand.u32 2147483648, %v631_v10 }
 0x2b9   :  { %v516_v63 = vsel %vm513_vm5, %v515_v56, %v511_v54  ;;  %v3094_v13 = vpop.eup %3093 }
 0x2ba   :  { %v666_v14 = vmul.f32 %v3094_v13, %v633_v5  ;;  %v3096_v0 = vpop.eup %3095  ;;  %vm671_vm6 = vweird.f32 %v3094_v13  ;;  %v677_v38 = vor.u32 1.1754944e-38, %v676_v29  ;;  %v647_v56 = vor.u32 1.1754944e-38, %v646_v43 }
 0x2bb   :  { %v636_v49 = vmul.f32 %v3096_v0, %v631_v10  ;;  %vm672_vm8 = vmor %vm670_vm7, %vm671_vm6  ;;  %vm641_vm9 = vweird.f32 %v3096_v0  ;;  %v534_v2 = vmul.f32 0.0, %v516_v63  ;;  %v2851_v10 = vmul.f32 -1.442695, %v3725_v60 }
 0x2bc   :  { %v667_v45 = vsub.f32 1.0, %v666_v14  ;;  %vm642_vm12 = vmor %vm640_vm11, %vm641_vm9  ;;  %v700_v14 = vrot.slane %v3628_v62, 7 }
 0x2bd   :  { %v637_v23 = vsub.f32 1.0, %v636_v49 }
 0x2be   :  { %v668_v20 = vmul.f32 %v3094_v13, %v667_v45 }
 0x2bf   :  { %v638_v30 = vmul.f32 %v3096_v0, %v637_v23 }
 0x2c0   :  { %v669_v28 = vadd.f32 %v3094_v13, %v668_v20 }
 0x2c1   :  { %v639_v40 = vadd.f32 %v3096_v0, %v638_v30 }
 0x2c2   :  { %v673_v35 = vsel %vm672_vm8, %v3094_v13, %v669_v28 }
 0x2c3   :  { %v678_v27 = vsel %vm675_vm10, %v677_v38, %v673_v35  ;;  %v643_v54 = vsel %vm642_vm12, %v3096_v0, %v639_v40 }
 0x2c4   :  { %v704_v0 = vmul.f32 %v700_v14, %v678_v27 }
 0x2f0   :  { %v537_v61 = vpop.permute.xlu2 %536 }
 0x2f1   :  { %v539_v1 = vmul.f32 %v537_v61, %v516_v63  ;;  %v648_v61 = vsel %vm645_vm13, %v647_v56, %v643_v54  ;;  %v699_v63 = vrot.slane %v3637_v3, 7 }
 0x2f3   :  { %541 = vrot.lane.b32.xlu2 %v539_v1, %s3477_s0  ;;  %v703_v23 = vmul.f32 %v699_v63, %v648_v61 }
 0x316   :  { %v710_v44 = vpop.permute.xlu1 %709 }
 0x317   :  { %v714_v50 = vmul.f32 %v710_v44, %v678_v27 }
 0x318   :  { %v708_v57 = vpop.permute.xlu0 %707 }
 0x319   :  { %719 = vrot.lane.b32.xlu1 %v714_v50, %s3477_s0  ;;  %v713_v1 = vmul.f32 %v708_v57, %v648_v61  ;;  %v2859_v61 = vmul.f32 -1.442695, %v3730_v7 }
 0x31b   :  { %717 = vrot.lane.b32.xlu0 %v713_v1, %s3477_s0  ;;  %v2857_v1 = vmul.f32 -1.442695, %v3734_v9 }
 0x34d   :  { %v542_v5 = vpop.permute.xlu2 %541 }
 0x34e   :  { %v3747_v6 = vadd.f32 %v542_v5, %v534_v2 }
 0x350   :  { %3097 = vtanh.f32 %v3747_v6 }
 0x351   :  { %3099 = vpow2.f32 %v2851_v10 }
 0x356   :  { %v3098_v13 = vpop.eup %3097 }
 0x357   :  { %547 = vrot.lane.b32.xlu2 %v3098_v13, %s3477_s0  ;;  %v3100_v20 = vpop.eup %3099 }
 0x358   :  { %v502_v28 = vadd.f32 1.0, %v3100_v20 }
 0x35a   :  { %v529_v43 = vand.u32 2147483648, %v502_v28  ;;  %vm523_vm15 = vweird.f32 %v502_v28  ;;  %v527_v44 = vand.u32 2147483647, %v502_v28 }
 0x35c   :  { %v530_v21 = vor.u32 1.1754944e-38, %v529_v43  ;;  %vm528_vm3 = vcmp.eq.f32.partialorder %v527_v44, 8.507059e+37 }
 0x38b   :  { %v720_v45 = vpop.permute.xlu1 %719 }
 0x38c   :  { %v3753_v49 = vadd.f32 %v720_v45, %v704_v0 }
 0x38d   :  { %v718_v29 = vpop.permute.xlu0 %717 }
 0x38e   :  { %3101 = vtanh.f32 %v3753_v49  ;;  %v3757_v30 = vadd.f32 %v718_v29, %v703_v23 }
 0x390   :  { %3103 = vtanh.f32 %v3757_v30 }
 0x391   :  { %3105 = vrcp.f32 %v502_v28 }
 0x392   :  { %3107 = vpow2.f32 %v2859_v61 }
 0x393   :  { %3109 = vpow2.f32 %v2857_v1 }
 0x394   :  { %v3102_v60 = vpop.eup %3101 }
 0x395   :  { %731 = vrot.lane.b32.xlu1 %v3102_v60, %s3477_s0 }
 0x396   :  { %v3104_v62 = vpop.eup %3103 }
 0x397   :  { %v3106_v31 = vpop.eup %3105  ;;  %729 = vrot.lane.b32.xlu0 %v3104_v62, %s3477_s0 }
 0x398   :  { %v519_v35 = vmul.f32 %v3106_v31, %v502_v28  ;;  %vm524_vm14 = vweird.f32 %v3106_v31  ;;  %v3108_v2 = vpop.eup %3107 }
 0x399   :  { %vm525_vm2 = vmor %vm523_vm15, %vm524_vm14  ;;  %v3110_v5 = vpop.eup %3109  ;;  %v634_v13 = vadd.f32 1.0, %v3108_v2 }
 0x39a   :  { %v520_v38 = vsub.f32 1.0, %v519_v35  ;;  %v632_v10 = vadd.f32 1.0, %v3110_v5 }
 0x39b   :  { %3111 = vrcp.f32 %v634_v13  ;;  %v691_v7 = vand.u32 2147483648, %v634_v13  ;;  %vm685_vm5 = vweird.f32 %v634_v13  ;;  %v689_v9 = vand.u32 2147483647, %v634_v13 }
 0x39c   :  { %v521_v3 = vmul.f32 %v3106_v31, %v520_v38  ;;  %3113 = vrcp.f32 %v632_v10  ;;  %vm655_vm8 = vweird.f32 %v632_v10  ;;  %v659_v38 = vand.u32 2147483647, %v632_v10 }
 0x39d   :  { %vm690_vm10 = vcmp.eq.f32.partialorder %v689_v9, 8.507059e+37 }
 0x39e   :  { %v522_v40 = vadd.f32 %v3106_v31, %v521_v3  ;;  %v692_v3 = vor.u32 1.1754944e-38, %v691_v7  ;;  %vm660_vm11 = vcmp.eq.f32.partialorder %v659_v38, 8.507059e+37 }
 0x3a0   :  { %v526_v27 = vsel %vm525_vm2, %v3106_v31, %v522_v40  ;;  %v661_v31 = vand.u32 2147483648, %v632_v10 }
 0x3a1   :  { %v531_v50 = vsel %vm528_vm3, %v530_v21, %v526_v27  ;;  %v3112_v14 = vpop.eup %3111 }
 0x3a2   :  { %v3114_v0 = vpop.eup %3113  ;;  %v681_v45 = vmul.f32 %v3112_v14, %v634_v13  ;;  %vm686_vm4 = vweird.f32 %v3112_v14  ;;  %v662_v27 = vor.u32 1.1754944e-38, %v661_v31 }
 0x3a3   :  { %v651_v20 = vmul.f32 %v3114_v0, %v632_v10  ;;  %vm656_vm6 = vweird.f32 %v3114_v0  ;;  %vm687_vm7 = vmor %vm685_vm5, %vm686_vm4 }
 0x3a4   :  { %v682_v63 = vsub.f32 1.0, %v681_v45  ;;  %vm657_vm9 = vmor %vm655_vm8, %vm656_vm6 }
 0x3a5   :  { %v652_v23 = vsub.f32 1.0, %v651_v20 }
 0x3a6   :  { %v683_v28 = vmul.f32 %v3112_v14, %v682_v63 }
 0x3a7   :  { %v653_v29 = vmul.f32 %v3114_v0, %v652_v23 }
 0x3a8   :  { %v684_v60 = vadd.f32 %v3112_v14, %v683_v28 }
 0x3a9   :  { %v654_v62 = vadd.f32 %v3114_v0, %v653_v29 }
 0x3aa   :  { %v688_v35 = vsel %vm687_vm7, %v3112_v14, %v684_v60 }
 0x3ab   :  { %v658_v43 = vsel %vm657_vm9, %v3114_v0, %v654_v62  ;;  %v693_v44 = vsel %vm690_vm10, %v692_v3, %v688_v35 }
 0x3b1   :  { %v548_v54 = vpop.permute.xlu2 %547 }
 0x3b2   :  { %v550_v56 = vmul.f32 %v548_v54, %v531_v50  ;;  %v663_v50 = vsel %vm660_vm11, %v662_v27, %v658_v43 }
 0x3b4   :  { %v551_v57 = vpack.c.bf16 %v550_v56, %v550_v56 }
 0x3b6   :  { %2852 = vmatmul.msk.bf16.vlgmr.msrb.gmra.mxu2 %vm194_vm1, %v551_v57  ;;  %2853 = vmatmul.msk.bf16.vlgmr.msrb.gmra.mxu3 %vm194_vm1, %v551_v57 }
 0x3b7   :  { %880 = vmatpush.bf16.msrb.mxu3 %v3542_v8  ;;  %867 = vmatpush.bf16.msrb.mxu2 %v3540_v4 }
 0x3bb   :  { %881 = vmatpush.bf16.msrb.mxu3 %v3548_v12  ;;  %868 = vmatpush.bf16.msrb.mxu2 %v3545_v11 }
 0x3bf   :  { %882 = vmatpush.bf16.msrb.mxu3 %v3557_v19  ;;  %869 = vmatpush.bf16.msrb.mxu2 %v3554_v18 }
 0x3c3   :  { %883 = vmatpush.bf16.msrb.mxu3 %v3566_v26  ;;  %870 = vmatpush.bf16.msrb.mxu2 %v3560_v24 }
 0x407   :  { %v732_v40 = vpop.permute.xlu1 %731 }
 0x408   :  { %v736_v21 = vmul.f32 %v732_v40, %v693_v44 }
 0x409   :  { %v730_v54 = vpop.permute.xlu0 %729 }
 0x40a   :  { %v735_v56 = vmul.f32 %v730_v54, %v663_v50  ;;  %v738_v57 = vpack.c.bf16 %v736_v21, %v736_v21 }
 0x40c   :  { %v737_v61 = vpack.c.bf16 %v735_v56, %v735_v56  ;;  %v742_v2 = vunpack.c.l.b16 %v738_v57 }
 0x40e   :  { %v741_v1 = vunpack.c.l.b16 %v737_v61 }
 0x410   :  { %v743_v5 = vrot.slane %v741_v1, 1 }
 0x412   :  { %v744_v13 = vsel %vm421_vm0, %v742_v2, %v743_v5 }
 0x413   :  { %v745_v10 = vpack.c.b16 %v744_v13, %v744_v13 }
 0x415   :  { %2860 = vmatmul.msk.bf16.vlgmr.msra.gmra.mxu2 %vm194_vm1, %v745_v10  ;;  %2861 = vmatmul.msk.bf16.vlgmr.msra.gmra.mxu3 %vm194_vm1, %v745_v10 }
 0x416   :  { %1126 = vmatpush.bf16.msra.mxu2 %v3602_v39  ;;  %1139 = vmatpush.bf16.msra.mxu3 %v3600_v34 }
 0x41a   :  { %1127 = vmatpush.bf16.msra.mxu2 %v3609_v48  ;;  %1140 = vmatpush.bf16.msra.mxu3 %v3605_v42 }
 0x41e   :  { %1128 = vmatpush.bf16.msra.mxu2 %v3617_v55  ;;  %1141 = vmatpush.bf16.msra.mxu3 %v3613_v52 }
 0x422   :  { %1129 = vmatpush.bf16.msra.mxu2 %v3625_v59  ;;  %1142 = vmatpush.bf16.msra.mxu3 %v3621_v58 }
 0x425   :  { %2866 = vmatmul.msk.bf16.vlgmr.msrb.gmra.mxu2 %vm194_vm1, %v745_v10  ;;  %2867 = vmatmul.msk.bf16.vlgmr.msrb.gmra.mxu3 %vm194_vm1, %v745_v10 }
 0x426   :  { %1336 = vmatpush.bf16.msrb.mxu3 %v3646_v15  ;;  %1323 = vmatpush.bf16.msrb.mxu2 %v3648_v17 }
 0x42a   :  { %1337 = vmatpush.bf16.msrb.mxu3 %v3655_v22  ;;  %1324 = vmatpush.bf16.msrb.mxu2 %v3657_v25 }
 0x42e   :  { %1338 = vmatpush.bf16.msrb.mxu3 %v3665_v32  ;;  %1325 = vmatpush.bf16.msrb.mxu2 %v3667_v37 }
 0x432   :  { %1339 = vmatpush.bf16.msrb.mxu3 %v3675_v46  ;;  %1326 = vmatpush.bf16.msrb.mxu2 %v3677_v51 }
 0x439   :  { %v564_v14 = vpop.f32.mrf.mxu2  ;;  %v577_v0 = vpop.f32.mrf.mxu3 }
 0x441   :  { %v566_v45 = vpop.f32.mrf.mxu2  ;;  %v579_v20 = vpop.f32.mrf.mxu3 }
 0x498   :  { %v758_v63 = vpop.f32.mrf.mxu2  ;;  %v771_v23 = vpop.f32.mrf.mxu3 }
 0x499   :  { %v772_v28 = vadd.f32 %v771_v23, %v577_v0  ;;  %v759_v50 = vadd.f32 %v758_v63, %v564_v14 }
 0x49b   :  { %v3796_v29 = vadd.f32 %v772_v28, %v3722_v53  ;;  %v775_v54 = vadd.f32 %v759_v50, %v3739_v16 }
 0x49d   :  { %3115 = vtanh.f32 %v3796_v29  ;;  %v2862_v56 = vmul.f32 -1.442695, %v775_v54 }
 0x4a0   :  { %v760_v60 = vpop.f32.mrf.mxu2  ;;  %v773_v7 = vpop.f32.mrf.mxu3 }
 0x4a3   :  { %v3116_v9 = vpop.eup %3115 }
 0x4a4   :  { %818 = vrot.lane.b32.xlu2 %v3116_v9, %s3477_s0 }
 0x4a8   :  { %v872_v62 = vpop.f32.mrf.mxu2  ;;  %v885_v31 = vpop.f32.mrf.mxu3 }
 0x4a9   :  { %v892_v35 = vrot.slane %v885_v31, 6  ;;  %v894_v38 = vrot.slane %v885_v31, 7  ;;  %v891_v13 = vrot.slane %v872_v62, 6  ;;  %v893_v10 = vrot.slane %v872_v62, 7 }
 0x4ab   :  { %v3801_v3 = vadd.f32 %v892_v35, %v3587_v47  ;;  %v3804_v40 = vadd.f32 %v894_v38, %v3582_v41  ;;  %v899_v45 = vadd.f32 %v891_v13, %v3580_v36  ;;  %v901_v20 = vadd.f32 %v893_v10, %v3578_v33 }
 0x4ad   :  { %3117 = vtanh.f32 %v3801_v3  ;;  %v2868_v63 = vmul.f32 -1.442695, %v899_v45  ;;  %v2870_v60 = vmul.f32 -1.442695, %v901_v20 }
 0x4ae   :  { %3119 = vtanh.f32 %v3804_v40 }
 0x4af   :  { %3121 = vpow2.f32 %v2862_v56 }
 0x4b0   :  { %v874_v43 = vpop.f32.mrf.mxu2  ;;  %v887_v44 = vpop.f32.mrf.mxu3 }
 0x4b3   :  { %v3118_v27 = vpop.eup %3117 }
 0x4b4   :  { %v3120_v21 = vpop.eup %3119  ;;  %991 = vrot.lane.b32.xlu0 %v3118_v27, %s3477_s0 }
 0x4b5   :  { %993 = vrot.lane.b32.xlu1 %v3120_v21, %s3477_s0  ;;  %v3122_v57 = vpop.eup %3121 }
 0x4b6   :  { %v783_v61 = vadd.f32 1.0, %v3122_v57 }
 0x4b8   :  { %3123 = vrcp.f32 %v783_v61  ;;  %v796_v14 = vand.u32 2147483648, %v783_v61  ;;  %vm790_vm13 = vweird.f32 %v783_v61  ;;  %v794_v28 = vand.u32 2147483647, %v783_v61 }
 0x4b9   :  { %3125 = vpow2.f32 %v2868_v63 }
 0x4ba   :  { %v797_v9 = vor.u32 1.1754944e-38, %v796_v14  ;;  %vm795_vm15 = vcmp.eq.f32.partialorder %v794_v28, 8.507059e+37  ;;  %3127 = vpow2.f32 %v2870_v60 }
 0x4be   :  { %v3124_v1 = vpop.eup %3123 }
 0x4bf   :  { %v786_v2 = vmul.f32 %v3124_v1, %v783_v61  ;;  %vm791_vm12 = vweird.f32 %v3124_v1  ;;  %v3126_v38 = vpop.eup %3125 }
 0x4c0   :  { %vm792_vm14 = vmor %vm790_vm13, %vm791_vm12  ;;  %v3128_v43 = vpop.eup %3127  ;;  %v915_v44 = vadd.f32 1.0, %v3126_v38 }
 0x4c1   :  { %v787_v5 = vsub.f32 1.0, %v786_v2  ;;  %v917_v27 = vadd.f32 1.0, %v3128_v43 }
 0x4c2   :  { %3129 = vrcp.f32 %v915_v44  ;;  %v930_v10 = vand.u32 2147483648, %v915_v44  ;;  %vm924_vm4 = vweird.f32 %v915_v44  ;;  %v928_v45 = vand.u32 2147483647, %v915_v44 }
 0x4c3   :  { %v788_v0 = vmul.f32 %v3124_v1, %v787_v5  ;;  %3131 = vrcp.f32 %v917_v27  ;;  %vm954_vm5 = vweird.f32 %v917_v27  ;;  %v958_v20 = vand.u32 2147483647, %v917_v27 }
 0x4c4   :  { %v931_v63 = vor.u32 1.1754944e-38, %v930_v10  ;;  %vm929_vm8 = vcmp.eq.f32.partialorder %v928_v45, 8.507059e+37 }
 0x4c5   :  { %v789_v23 = vadd.f32 %v3124_v1, %v788_v0  ;;  %v960_v0 = vand.u32 2147483648, %v917_v27  ;;  %vm959_vm9 = vcmp.eq.f32.partialorder %v958_v20, 8.507059e+37 }
 0x4c7   :  { %v793_v7 = vsel %vm792_vm14, %v3124_v1, %v789_v23  ;;  %v961_v28 = vor.u32 1.1754944e-38, %v960_v0 }
 0x4c8   :  { %v798_v62 = vsel %vm795_vm15, %v797_v9, %v793_v7  ;;  %v3130_v21 = vpop.eup %3129 }
 0x4c9   :  { %v3132_v50 = vpop.eup %3131  ;;  %v920_v54 = vmul.f32 %v3130_v21, %v915_v44  ;;  %vm925_vm2 = vweird.f32 %v3130_v21  ;;  %v816_v43 = vmul.f32 %v798_v62, %v3747_v6 }
 0x4ca   :  { %v950_v56 = vmul.f32 %v3132_v50, %v917_v27  ;;  %vm955_vm3 = vweird.f32 %v3132_v50  ;;  %vm926_vm6 = vmor %vm924_vm4, %vm925_vm2 }
 0x4cb   :  { %v921_v57 = vsub.f32 1.0, %v920_v54  ;;  %vm956_vm7 = vmor %vm954_vm5, %vm955_vm3  ;;  %v983_v54 = vrot.slane %v3757_v30, 7 }
 0x4cc   :  { %v951_v61 = vsub.f32 1.0, %v950_v56  ;;  %v984_v56 = vrot.slane %v3753_v49, 7 }
 0x4cd   :  { %v922_v1 = vmul.f32 %v3130_v21, %v921_v57 }
 0x4ce   :  { %v952_v2 = vmul.f32 %v3132_v50, %v951_v61 }
 0x4cf   :  { %v923_v5 = vadd.f32 %v3130_v21, %v922_v1 }
 0x4d0   :  { %v953_v13 = vadd.f32 %v3132_v50, %v952_v2 }
 0x4d1   :  { %v927_v23 = vsel %vm926_vm6, %v3130_v21, %v923_v5 }
 0x4d2   :  { %v957_v14 = vsel %vm956_vm7, %v3132_v50, %v953_v13  ;;  %v932_v7 = vsel %vm929_vm8, %v931_v63, %v927_v23  ;;  %v2863_v50 = vmul.f32 -1.442695, %v3796_v29 }
 0x4d3   :  { %v987_v57 = vmul.f32 %v983_v54, %v932_v7 }
 0x4fe   :  { %v819_v31 = vpop.permute.xlu2 %818 }
 0x4ff   :  { %v821_v35 = vmul.f32 %v819_v31, %v798_v62  ;;  %v962_v31 = vsel %vm959_vm9, %v961_v28, %v957_v14 }
 0x500   :  { %v988_v61 = vmul.f32 %v984_v56, %v962_v31 }
 0x501   :  { %823 = vrot.lane.b32.xlu2 %v821_v35, %s3477_s0 }
 0x526   :  { %v992_v60 = vpop.permute.xlu0 %991 }
 0x527   :  { %v994_v9 = vpop.permute.xlu1 %993  ;;  %v997_v35 = vmul.f32 %v992_v60, %v932_v7 }
 0x528   :  { %v998_v38 = vmul.f32 %v994_v9, %v962_v31 }
 0x529   :  { %1001 = vrot.lane.b32.xlu0 %v997_v35, %s3477_s0  ;;  %v2869_v35 = vmul.f32 -1.442695, %v3801_v3 }
 0x52a   :  { %1003 = vrot.lane.b32.xlu1 %v998_v38, %s3477_s0  ;;  %v2871_v38 = vmul.f32 -1.442695, %v3804_v40 }
 0x55b   :  { %v824_v44 = vpop.permute.xlu2 %823 }
 0x55c   :  { %v3817_v27 = vadd.f32 %v824_v44, %v816_v43 }
 0x55e   :  { %3133 = vtanh.f32 %v3817_v27 }
 0x55f   :  { %3135 = vpow2.f32 %v2863_v50 }
 0x564   :  { %v3134_v21 = vpop.eup %3133 }
 0x565   :  { %829 = vrot.lane.b32.xlu2 %v3134_v21, %s3477_s0  ;;  %v3136_v2 = vpop.eup %3135 }
 0x566   :  { %v784_v13 = vadd.f32 1.0, %v3136_v2 }
 0x568   :  { %v811_v23 = vand.u32 2147483648, %v784_v13  ;;  %vm805_vm11 = vweird.f32 %v784_v13  ;;  %v809_v14 = vand.u32 2147483647, %v784_v13 }
 0x56a   :  { %v812_v28 = vor.u32 1.1754944e-38, %v811_v23  ;;  %vm810_vm13 = vcmp.eq.f32.partialorder %v809_v14, 8.507059e+37 }
 0x59b   :  { %v1002_v1 = vpop.permute.xlu0 %1001 }
 0x59c   :  { %v1004_v6 = vpop.permute.xlu1 %1003  ;;  %v3824_v62 = vadd.f32 %v1002_v1, %v987_v57 }
 0x59d   :  { %v3826_v5 = vadd.f32 %v1004_v6, %v988_v61 }
 0x59e   :  { %3137 = vtanh.f32 %v3824_v62 }
 0x59f   :  { %3139 = vtanh.f32 %v3826_v5 }
 0x5a0   :  { %3141 = vrcp.f32 %v784_v13 }
 0x5a1   :  { %3143 = vpow2.f32 %v2869_v35 }
 0x5a2   :  { %3145 = vpow2.f32 %v2871_v38 }
 0x5a4   :  { %v3138_v29 = vpop.eup %3137 }
 0x5a5   :  { %v3140_v10 = vpop.eup %3139  ;;  %1013 = vrot.lane.b32.xlu0 %v3138_v29, %s3477_s0 }
 0x5a6   :  { %1015 = vrot.lane.b32.xlu1 %v3140_v10, %s3477_s0  ;;  %v3142_v49 = vpop.eup %3141 }
 0x5a7   :  { %v801_v30 = vmul.f32 %v3142_v49, %v784_v13  ;;  %vm806_vm10 = vweird.f32 %v3142_v49  ;;  %v3144_v43 = vpop.eup %3143 }
 0x5a8   :  { %vm807_vm12 = vmor %vm805_vm11, %vm806_vm10  ;;  %v3146_v44 = vpop.eup %3145  ;;  %v916_v21 = vadd.f32 1.0, %v3144_v43 }
 0x5a9   :  { %v802_v0 = vsub.f32 1.0, %v801_v30  ;;  %v918_v50 = vadd.f32 1.0, %v3146_v44 }
 0x5aa   :  { %3147 = vrcp.f32 %v916_v21  ;;  %v945_v40 = vand.u32 2147483648, %v916_v21  ;;  %vm939_vm2 = vweird.f32 %v916_v21 }
 0x5ab   :  { %v803_v45 = vmul.f32 %v3142_v49, %v802_v0  ;;  %3149 = vrcp.f32 %v918_v50  ;;  %v975_v10 = vand.u32 2147483648, %v918_v50  ;;  %vm969_vm3 = vweird.f32 %v918_v50 }
 0x5ac   :  { %v973_v30 = vand.u32 2147483647, %v918_v50 }
 0x5ad   :  { %v804_v20 = vadd.f32 %v3142_v49, %v803_v45  ;;  %v976_v23 = vor.u32 1.1754944e-38, %v975_v10 }
 0x5ae   :  { %vm974_vm7 = vcmp.eq.f32.partialorder %v973_v30, 8.507059e+37 }
 0x5af   :  { %v808_v63 = vsel %vm807_vm12, %v3142_v49, %v804_v20  ;;  %v943_v49 = vand.u32 2147483647, %v916_v21  ;;  %v946_v20 = vor.u32 1.1754944e-38, %v945_v40 }
 0x5b0   :  { %v813_v60 = vsel %vm810_vm13, %v812_v28, %v808_v63  ;;  %v3148_v54 = vpop.eup %3147 }
 0x5b1   :  { %v3150_v56 = vpop.eup %3149  ;;  %v935_v57 = vmul.f32 %v3148_v54, %v916_v21  ;;  %vm940_vm14 = vweird.f32 %v3148_v54  ;;  %vm944_vm6 = vcmp.eq.f32.partialorder %v943_v49, 8.507059e+37 }
 0x5b2   :  { %v965_v61 = vmul.f32 %v3150_v56, %v918_v50  ;;  %vm970_vm15 = vweird.f32 %v3150_v56  ;;  %vm941_vm4 = vmor %vm939_vm2, %vm940_vm14 }
 0x5b3   :  { %v936_v1 = vsub.f32 1.0, %v935_v57  ;;  %vm971_vm5 = vmor %vm969_vm3, %vm970_vm15 }
 0x5b4   :  { %v966_v2 = vsub.f32 1.0, %v965_v61 }
 0x5b5   :  { %v937_v6 = vmul.f32 %v3148_v54, %v936_v1 }
 0x5b6   :  { %v967_v13 = vmul.f32 %v3150_v56, %v966_v2 }
 0x5b7   :  { %v938_v29 = vadd.f32 %v3148_v54, %v937_v6 }
 0x5b8   :  { %v968_v3 = vadd.f32 %v3150_v56, %v967_v13 }
 0x5b9   :  { %v942_v0 = vsel %vm941_vm4, %v3148_v54, %v938_v29 }
 0x5ba   :  { %v972_v45 = vsel %vm971_vm5, %v3150_v56, %v968_v3  ;;  %v947_v14 = vsel %vm944_vm6, %v946_v20, %v942_v0 }
 0x5bb   :  { %v977_v28 = vsel %vm974_vm7, %v976_v23, %v972_v45 }
 0x5bf   :  { %v830_v7 = vpop.permute.xlu2 %829 }
 0x5c0   :  { %v832_v9 = vmul.f32 %v830_v7, %v813_v60 }
 0x5c2   :  { %v833_v31 = vpack.c.bf16 %v832_v9, %v832_v9 }
 0x5c4   :  { %2864 = vmatmul.msk.bf16.vlgmr.msrb.gmra.mxu0 %vm194_vm1, %v833_v31  ;;  %2865 = vmatmul.msk.bf16.vlgmr.msrb.gmra.mxu1 %vm194_vm1, %v833_v31 }
 0x5c5   :  { %1165 = vmatpush.bf16.msrb.mxu1 %v3542_v8  ;;  %1152 = vmatpush.bf16.msrb.mxu0 %v3540_v4 }
 0x5c9   :  { %1166 = vmatpush.bf16.msrb.mxu1 %v3548_v12  ;;  %1153 = vmatpush.bf16.msrb.mxu0 %v3545_v11 }
 0x5cd   :  { %1167 = vmatpush.bf16.msrb.mxu1 %v3557_v19  ;;  %1154 = vmatpush.bf16.msrb.mxu0 %v3554_v18 }
 0x5d1   :  { %1168 = vmatpush.bf16.msrb.mxu1 %v3566_v26  ;;  %1155 = vmatpush.bf16.msrb.mxu0 %v3560_v24 }
 0x617   :  { %v1014_v63 = vpop.permute.xlu0 %1013 }
 0x618   :  { %v1016_v60 = vpop.permute.xlu1 %1015  ;;  %v1019_v7 = vmul.f32 %v1014_v63, %v947_v14 }
 0x619   :  { %v1020_v9 = vmul.f32 %v1016_v60, %v977_v28 }
 0x61a   :  { %v1021_v31 = vpack.c.bf16 %v1019_v7, %v1019_v7 }
 0x61b   :  { %v1022_v35 = vpack.c.bf16 %v1020_v9, %v1020_v9 }
 0x61c   :  { %v1025_v38 = vunpack.c.l.b16 %v1021_v31 }
 0x61d   :  { %v1026_v43 = vunpack.c.l.b16 %v1022_v35 }
 0x61e   :  { %v1027_v44 = vrot.slane %v1025_v38, 2 }
 0x61f   :  { %v1028_v21 = vrot.slane %v1026_v43, 1 }
 0x621   :  { %v1029_v50 = vsel %vm421_vm0, %v1028_v21, %v1027_v44 }
 0x622   :  { %v1030_v54 = vpack.c.b16 %v1029_v50, %v1029_v50 }
 0x624   :  { %2872 = vmatmul.msk.bf16.vlgmr.msra.gmra.mxu0 %vm194_vm1, %v1030_v54  ;;  %2873 = vmatmul.msk.bf16.vlgmr.msra.gmra.mxu1 %vm194_vm1, %v1030_v54 }
 0x625   :  { %1411 = vmatpush.bf16.msra.mxu0 %v3602_v39  ;;  %1424 = vmatpush.bf16.msra.mxu1 %v3600_v34 }
 0x629   :  { %1412 = vmatpush.bf16.msra.mxu0 %v3609_v48  ;;  %1425 = vmatpush.bf16.msra.mxu1 %v3605_v42 }
 0x62d   :  { %1413 = vmatpush.bf16.msra.mxu0 %v3617_v55  ;;  %1426 = vmatpush.bf16.msra.mxu1 %v3613_v52 }
 0x631   :  { %1414 = vmatpush.bf16.msra.mxu0 %v3625_v59  ;;  %1427 = vmatpush.bf16.msra.mxu1 %v3621_v58 }
 0x634   :  { %2878 = vmatmul.msk.bf16.vlgmr.msrb.gmra.mxu0 %vm194_vm1, %v1030_v54  ;;  %2879 = vmatmul.msk.bf16.vlgmr.msrb.gmra.mxu1 %vm194_vm1, %v1030_v54 }
 0x635   :  { %1621 = vmatpush.bf16.msrb.mxu1 %v3646_v15  ;;  %1608 = vmatpush.bf16.msrb.mxu0 %v3648_v17 }
 0x639   :  { %1622 = vmatpush.bf16.msrb.mxu1 %v3655_v22  ;;  %1609 = vmatpush.bf16.msrb.mxu0 %v3657_v25 }
 0x63d   :  { %1623 = vmatpush.bf16.msrb.mxu1 %v3665_v32  ;;  %1610 = vmatpush.bf16.msrb.mxu0 %v3667_v37 }
 0x641   :  { %v846_v56 = vpop.f32.mrf.mxu0  ;;  %v859_v57 = vpop.f32.mrf.mxu1  ;;  %1624 = vmatpush.bf16.msrb.mxu1 %v3675_v46  ;;  %1611 = vmatpush.bf16.msrb.mxu0 %v3677_v51 }
 0x649   :  { %v848_v61 = vpop.f32.mrf.mxu0  ;;  %v861_v1 = vpop.f32.mrf.mxu1 }
 0x6a1   :  { %v1043_v2 = vpop.f32.mrf.mxu0  ;;  %v1056_v6 = vpop.f32.mrf.mxu1 }
 0x6a2   :  { %v1057_v13 = vadd.f32 %v1056_v6, %v859_v57  ;;  %v1044_v7 = vadd.f32 %v1043_v2, %v846_v56 }
 0x6a4   :  { %v3866_v29 = vadd.f32 %v1057_v13, %v3722_v53  ;;  %v1060_v9 = vadd.f32 %v1044_v7, %v3739_v16 }
 0x6a6   :  { %3151 = vtanh.f32 %v3866_v29  ;;  %v2874_v31 = vmul.f32 -1.442695, %v1060_v9 }
 0x6a9   :  { %v1045_v3 = vpop.f32.mrf.mxu0  ;;  %v1058_v40 = vpop.f32.mrf.mxu1 }
 0x6ac   :  { %v3152_v10 = vpop.eup %3151 }
 0x6ad   :  { %1103 = vrot.lane.b32.xlu2 %v3152_v10, %s3477_s0 }
 0x6b1   :  { %v1157_v49 = vpop.f32.mrf.mxu0  ;;  %v1170_v30 = vpop.f32.mrf.mxu1 }
 0x6b2   :  { %v1177_v0 = vrot.slane %v1170_v30, 5  ;;  %v1179_v45 = vrot.slane %v1170_v30, 6  ;;  %v1176_v50 = vrot.slane %v1157_v49, 5  ;;  %v1178_v54 = vrot.slane %v1157_v49, 6 }
 0x6b4   :  { %v3871_v20 = vadd.f32 %v1177_v0, %v3587_v47  ;;  %v3874_v23 = vadd.f32 %v1179_v45, %v3582_v41  ;;  %v1184_v61 = vadd.f32 %v1176_v50, %v3580_v36  ;;  %v1186_v1 = vadd.f32 %v1178_v54, %v3578_v33 }
 0x6b6   :  { %3153 = vtanh.f32 %v3871_v20  ;;  %v2880_v2 = vmul.f32 -1.442695, %v1184_v61  ;;  %v2882_v3 = vmul.f32 -1.442695, %v1186_v1 }
 0x6b7   :  { %3155 = vtanh.f32 %v3874_v23 }
 0x6b8   :  { %3157 = vpow2.f32 %v2874_v31 }
 0x6b9   :  { %v1159_v14 = vpop.f32.mrf.mxu0  ;;  %v1172_v63 = vpop.f32.mrf.mxu1 }
 0x6bc   :  { %v3154_v28 = vpop.eup %3153 }
 0x6bd   :  { %v3156_v60 = vpop.eup %3155  ;;  %1276 = vrot.lane.b32.xlu0 %v3154_v28, %s3477_s0 }
 0x6be   :  { %1278 = vrot.lane.b32.xlu1 %v3156_v60, %s3477_s0  ;;  %v3158_v35 = vpop.eup %3157 }
 0x6bf   :  { %v1068_v38 = vadd.f32 1.0, %v3158_v35 }
 0x6c1   :  { %3159 = vrcp.f32 %v1068_v38  ;;  %v1081_v56 = vand.u32 2147483648, %v1068_v38  ;;  %vm1075_vm9 = vweird.f32 %v1068_v38  ;;  %v1079_v13 = vand.u32 2147483647, %v1068_v38 }
 0x6c2   :  { %3161 = vpow2.f32 %v2880_v2 }
 0x6c3   :  { %v1082_v10 = vor.u32 1.1754944e-38, %v1081_v56  ;;  %vm1080_vm11 = vcmp.eq.f32.partialorder %v1079_v13, 8.507059e+37  ;;  %3163 = vpow2.f32 %v2882_v3 }
 0x6c7   :  { %v3160_v43 = vpop.eup %3159 }
 0x6c8   :  { %v1071_v44 = vmul.f32 %v3160_v43, %v1068_v38  ;;  %vm1076_vm8 = vweird.f32 %v3160_v43  ;;  %v3162_v45 = vpop.eup %3161 }
 0x6c9   :  { %vm1077_vm10 = vmor %vm1075_vm9, %vm1076_vm8  ;;  %v3164_v14 = vpop.eup %3163  ;;  %v1200_v63 = vadd.f32 1.0, %v3162_v45 }
 0x6ca   :  { %v1072_v21 = vsub.f32 1.0, %v1071_v44  ;;  %v1202_v28 = vadd.f32 1.0, %v3164_v14 }
 0x6cb   :  { %3165 = vrcp.f32 %v1200_v63  ;;  %v1215_v54 = vand.u32 2147483648, %v1200_v63  ;;  %vm1209_vm14 = vweird.f32 %v1200_v63  ;;  %v1213_v61 = vand.u32 2147483647, %v1200_v63 }
 0x6cc   :  { %v1073_v57 = vmul.f32 %v3160_v43, %v1072_v21  ;;  %3167 = vrcp.f32 %v1202_v28  ;;  %vm1239_vm15 = vweird.f32 %v1202_v28  ;;  %v1243_v1 = vand.u32 2147483647, %v1202_v28 }
 0x6cd   :  { %v1216_v2 = vor.u32 1.1754944e-38, %v1215_v54  ;;  %vm1214_vm4 = vcmp.eq.f32.partialorder %v1213_v61, 8.507059e+37 }
 0x6ce   :  { %v1074_v6 = vadd.f32 %v3160_v43, %v1073_v57  ;;  %v1245_v57 = vand.u32 2147483648, %v1202_v28  ;;  %vm1244_vm5 = vcmp.eq.f32.partialorder %v1243_v1, 8.507059e+37 }
 0x6d0   :  { %v1078_v40 = vsel %vm1077_vm10, %v3160_v43, %v1074_v6  ;;  %v1246_v13 = vor.u32 1.1754944e-38, %v1245_v57 }
 0x6d1   :  { %v1083_v49 = vsel %vm1080_vm11, %v1082_v10, %v1078_v40  ;;  %v3166_v60 = vpop.eup %3165 }
 0x6d2   :  { %v3168_v7 = vpop.eup %3167  ;;  %v1205_v9 = vmul.f32 %v3166_v60, %v1200_v63  ;;  %vm1210_vm12 = vweird.f32 %v3166_v60  ;;  %v1101_v14 = vmul.f32 %v1083_v49, %v3817_v27 }
 0x6d3   :  { %v1235_v31 = vmul.f32 %v3168_v7, %v1202_v28  ;;  %vm1240_vm13 = vweird.f32 %v3168_v7  ;;  %vm1211_vm2 = vmor %vm1209_vm14, %vm1210_vm12 }
 0x6d4   :  { %v1206_v35 = vsub.f32 1.0, %v1205_v9  ;;  %vm1241_vm3 = vmor %vm1239_vm15, %vm1240_vm13  ;;  %v1268_v9 = vrot.slane %v3824_v62, 7 }
 0x6d5   :  { %v1236_v38 = vsub.f32 1.0, %v1235_v31  ;;  %v1269_v31 = vrot.slane %v3826_v5, 7 }
 0x6d6   :  { %v1207_v43 = vmul.f32 %v3166_v60, %v1206_v35 }
 0x6d7   :  { %v1237_v44 = vmul.f32 %v3168_v7, %v1236_v38 }
 0x6d8   :  { %v1208_v21 = vadd.f32 %v3166_v60, %v1207_v43 }
 0x6d9   :  { %v1238_v50 = vadd.f32 %v3168_v7, %v1237_v44 }
 0x6da   :  { %v1212_v6 = vsel %vm1211_vm2, %v3166_v60, %v1208_v21 }
 0x6db   :  { %v1242_v56 = vsel %vm1241_vm3, %v3168_v7, %v1238_v50  ;;  %v1217_v40 = vsel %vm1214_vm4, %v1216_v2, %v1212_v6  ;;  %v2875_v7 = vmul.f32 -1.442695, %v3866_v29 }
 0x6dc   :  { %v1272_v35 = vmul.f32 %v1268_v9, %v1217_v40 }
 0x707   :  { %v1104_v30 = vpop.permute.xlu2 %1103 }
 0x708   :  { %v1106_v0 = vmul.f32 %v1104_v30, %v1083_v49  ;;  %v1247_v30 = vsel %vm1244_vm5, %v1246_v13, %v1242_v56 }
 0x709   :  { %v1273_v38 = vmul.f32 %v1269_v31, %v1247_v30 }
 0x70a   :  { %1108 = vrot.lane.b32.xlu2 %v1106_v0, %s3477_s0 }
 0x72f   :  { %v1277_v3 = vpop.permute.xlu0 %1276 }
 0x730   :  { %v1279_v10 = vpop.permute.xlu1 %1278  ;;  %v1282_v0 = vmul.f32 %v1277_v3, %v1217_v40 }
 0x731   :  { %v1283_v45 = vmul.f32 %v1279_v10, %v1247_v30 }
 0x732   :  { %1286 = vrot.lane.b32.xlu0 %v1282_v0, %s3477_s0  ;;  %v2881_v0 = vmul.f32 -1.442695, %v3871_v20 }
 0x733   :  { %1288 = vrot.lane.b32.xlu1 %v1283_v45, %s3477_s0  ;;  %v2883_v45 = vmul.f32 -1.442695, %v3874_v23 }
 0x764   :  { %v1109_v63 = vpop.permute.xlu2 %1108 }
 0x765   :  { %v3887_v28 = vadd.f32 %v1109_v63, %v1101_v14 }
 0x767   :  { %3169 = vtanh.f32 %v3887_v28 }
 0x768   :  { %3171 = vpow2.f32 %v2875_v7 }
 0x76d   :  { %v3170_v60 = vpop.eup %3169 }
 0x76e   :  { %1114 = vrot.lane.b32.xlu2 %v3170_v60, %s3477_s0  ;;  %v3172_v44 = vpop.eup %3171 }
 0x76f   :  { %v1069_v50 = vadd.f32 1.0, %v3172_v44 }
 0x771   :  { %v1096_v6 = vand.u32 2147483648, %v1069_v50  ;;  %vm1090_vm7 = vweird.f32 %v1069_v50  ;;  %v1094_v56 = vand.u32 2147483647, %v1069_v50 }
 0x773   :  { %v1097_v13 = vor.u32 1.1754944e-38, %v1096_v6  ;;  %vm1095_vm9 = vcmp.eq.f32.partialorder %v1094_v56, 8.507059e+37 }
 0x7a4   :  { %v1287_v43 = vpop.permute.xlu0 %1286 }
 0x7a5   :  { %v1289_v27 = vpop.permute.xlu1 %1288  ;;  %v3894_v49 = vadd.f32 %v1287_v43, %v1272_v35 }
 0x7a6   :  { %v3896_v21 = vadd.f32 %v1289_v27, %v1273_v38 }
 0x7a7   :  { %3173 = vtanh.f32 %v3894_v49 }
 0x7a8   :  { %3175 = vtanh.f32 %v3896_v21 }
 0x7a9   :  { %3177 = vrcp.f32 %v1069_v50 }
 0x7aa   :  { %3179 = vpow2.f32 %v2881_v0 }
 0x7ab   :  { %3181 = vpow2.f32 %v2883_v45 }
 0x7ad   :  { %v3174_v29 = vpop.eup %3173 }
 0x7ae   :  { %v3176_v54 = vpop.eup %3175  ;;  %1298 = vrot.lane.b32.xlu0 %v3174_v29, %s3477_s0 }
 0x7af   :  { %1300 = vrot.lane.b32.xlu1 %v3176_v54, %s3477_s0  ;;  %v3178_v62 = vpop.eup %3177 }
 0x7b0   :  { %v1086_v5 = vmul.f32 %v3178_v62, %v1069_v50  ;;  %vm1091_vm6 = vweird.f32 %v3178_v62  ;;  %v3180_v14 = vpop.eup %3179 }
 0x7b1   :  { %vm1092_vm8 = vmor %vm1090_vm7, %vm1091_vm6  ;;  %v3182_v63 = vpop.eup %3181  ;;  %v1201_v60 = vadd.f32 1.0, %v3180_v14 }
 0x7b2   :  { %v1087_v57 = vsub.f32 1.0, %v1086_v5  ;;  %v1203_v7 = vadd.f32 1.0, %v3182_v63 }
 0x7b3   :  { %3183 = vrcp.f32 %v1201_v60  ;;  %v1230_v23 = vand.u32 2147483648, %v1201_v60  ;;  %vm1224_vm12 = vweird.f32 %v1201_v60 }
 0x7b4   :  { %v1088_v61 = vmul.f32 %v3178_v62, %v1087_v57  ;;  %3185 = vrcp.f32 %v1203_v7  ;;  %v1260_v54 = vand.u32 2147483648, %v1203_v7  ;;  %vm1254_vm13 = vweird.f32 %v1203_v7 }
 0x7b5   :  { %v1258_v5 = vand.u32 2147483647, %v1203_v7 }
 0x7b6   :  { %v1089_v1 = vadd.f32 %v3178_v62, %v1088_v61  ;;  %v1261_v6 = vor.u32 1.1754944e-38, %v1260_v54 }
 0x7b7   :  { %vm1259_vm3 = vcmp.eq.f32.partialorder %v1258_v5, 8.507059e+37 }
 0x7b8   :  { %v1093_v2 = vsel %vm1092_vm8, %v3178_v62, %v1089_v1  ;;  %v1228_v62 = vand.u32 2147483647, %v1201_v60  ;;  %v1231_v1 = vor.u32 1.1754944e-38, %v1230_v23 }
 0x7b9   :  { %v1098_v3 = vsel %vm1095_vm9, %v1097_v13, %v1093_v2  ;;  %v3184_v9 = vpop.eup %3183 }
 0x7ba   :  { %v3186_v31 = vpop.eup %3185  ;;  %v1220_v35 = vmul.f32 %v3184_v9, %v1201_v60  ;;  %vm1225_vm10 = vweird.f32 %v3184_v9  ;;  %vm1229_vm2 = vcmp.eq.f32.partialorder %v1228_v62, 8.507059e+37 }
 0x7bb   :  { %v1250_v38 = vmul.f32 %v3186_v31, %v1203_v7  ;;  %vm1255_vm11 = vweird.f32 %v3186_v31  ;;  %vm1226_vm14 = vmor %vm1224_vm12, %vm1225_vm10 }
 0x7bc   :  { %v1221_v43 = vsub.f32 1.0, %v1220_v35  ;;  %vm1256_vm15 = vmor %vm1254_vm13, %vm1255_vm11 }
 0x7bd   :  { %v1251_v44 = vsub.f32 1.0, %v1250_v38 }
 0x7be   :  { %v1222_v27 = vmul.f32 %v3184_v9, %v1221_v43 }
 0x7bf   :  { %v1252_v50 = vmul.f32 %v3186_v31, %v1251_v44 }
 0x7c0   :  { %v1223_v29 = vadd.f32 %v3184_v9, %v1222_v27 }
 0x7c1   :  { %v1253_v20 = vadd.f32 %v3186_v31, %v1252_v50 }
 0x7c2   :  { %v1227_v57 = vsel %vm1226_vm14, %v3184_v9, %v1223_v29 }
 0x7c3   :  { %v1257_v61 = vsel %vm1256_vm15, %v3186_v31, %v1253_v20  ;;  %v1232_v56 = vsel %vm1229_vm2, %v1231_v1, %v1227_v57 }
 0x7c4   :  { %v1262_v13 = vsel %vm1259_vm3, %v1261_v6, %v1257_v61 }
 0x7c8   :  { %v1115_v40 = vpop.permute.xlu2 %1114 }
 0x7c9   :  { %v1117_v10 = vmul.f32 %v1115_v40, %v1098_v3 }
 0x7cb   :  { %v1118_v30 = vpack.c.bf16 %v1117_v10, %v1117_v10 }
 0x7cd   :  { %2876 = vmatmul.msk.bf16.vlgmr.msra.gmra.mxu2 %vm194_vm1, %v1118_v30  ;;  %2877 = vmatmul.msk.bf16.vlgmr.msra.gmra.mxu3 %vm194_vm1, %v1118_v30 }
 0x7ce   :  { %1450 = vmatpush.bf16.msra.mxu3 %v3542_v8  ;;  %1437 = vmatpush.bf16.msra.mxu2 %v3540_v4 }
 0x7d2   :  { %1451 = vmatpush.bf16.msra.mxu3 %v3548_v12  ;;  %1438 = vmatpush.bf16.msra.mxu2 %v3545_v11 }
 0x7d6   :  { %1452 = vmatpush.bf16.msra.mxu3 %v3557_v19  ;;  %1439 = vmatpush.bf16.msra.mxu2 %v3554_v18 }
 0x7da   :  { %1453 = vmatpush.bf16.msra.mxu3 %v3566_v26  ;;  %1440 = vmatpush.bf16.msra.mxu2 %v3560_v24 }
 0x820   :  { %v1299_v2 = vpop.permute.xlu0 %1298 }
 0x821   :  { %v1301_v3 = vpop.permute.xlu1 %1300  ;;  %v1304_v40 = vmul.f32 %v1299_v2, %v1232_v56 }
 0x822   :  { %v1305_v10 = vmul.f32 %v1301_v3, %v1262_v13 }
 0x823   :  { %v1306_v30 = vpack.c.bf16 %v1304_v40, %v1304_v40 }
 0x824   :  { %v1307_v0 = vpack.c.bf16 %v1305_v10, %v1305_v10 }
 0x825   :  { %v1310_v45 = vunpack.c.l.b16 %v1306_v30 }
 0x826   :  { %v1311_v14 = vunpack.c.l.b16 %v1307_v0 }
 0x827   :  { %v1312_v63 = vrot.slane %v1310_v45, 3 }
 0x828   :  { %v1313_v60 = vrot.slane %v1311_v14, 2 }
 0x82a   :  { %v1314_v7 = vsel %vm421_vm0, %v1313_v60, %v1312_v63 }
 0x82b   :  { %v1315_v9 = vpack.c.b16 %v1314_v7, %v1314_v7 }
 0x82d   :  { %2884 = vmatmul.msk.bf16.vlgmr.msrb.gmra.mxu2 %vm194_vm1, %v1315_v9  ;;  %2885 = vmatmul.msk.bf16.vlgmr.msrb.gmra.mxu3 %vm194_vm1, %v1315_v9 }
 0x82e   :  { %1696 = vmatpush.bf16.msrb.mxu2 %v3602_v39  ;;  %1709 = vmatpush.bf16.msrb.mxu3 %v3600_v34 }
 0x832   :  { %1697 = vmatpush.bf16.msrb.mxu2 %v3609_v48  ;;  %1710 = vmatpush.bf16.msrb.mxu3 %v3605_v42 }
 0x836   :  { %1698 = vmatpush.bf16.msrb.mxu2 %v3617_v55  ;;  %1711 = vmatpush.bf16.msrb.mxu3 %v3613_v52 }
 0x83a   :  { %1699 = vmatpush.bf16.msrb.mxu2 %v3625_v59  ;;  %1712 = vmatpush.bf16.msrb.mxu3 %v3621_v58 }
 0x83d   :  { %2890 = vmatmul.msk.bf16.vlgmr.msra.gmra.mxu2 %vm194_vm1, %v1315_v9  ;;  %2891 = vmatmul.msk.bf16.vlgmr.msra.gmra.mxu3 %vm194_vm1, %v1315_v9 }
 0x83e   :  { %1906 = vmatpush.bf16.msra.mxu3 %v3646_v15  ;;  %1893 = vmatpush.bf16.msra.mxu2 %v3648_v17 }
 0x842   :  { %1907 = vmatpush.bf16.msra.mxu3 %v3655_v22  ;;  %1894 = vmatpush.bf16.msra.mxu2 %v3657_v25 }
 0x846   :  { %1908 = vmatpush.bf16.msra.mxu3 %v3665_v32  ;;  %1895 = vmatpush.bf16.msra.mxu2 %v3667_v37 }
 0x84a   :  { %1909 = vmatpush.bf16.msra.mxu3 %v3675_v46  ;;  %1896 = vmatpush.bf16.msra.mxu2 %v3677_v51 }
 0x850   :  { %v1131_v31 = vpop.f32.mrf.mxu2  ;;  %v1144_v35 = vpop.f32.mrf.mxu3 }
 0x858   :  { %v1133_v38 = vpop.f32.mrf.mxu2  ;;  %v1146_v43 = vpop.f32.mrf.mxu3 }
 0x8b0   :  { %v1328_v44 = vpop.f32.mrf.mxu2  ;;  %v1341_v27 = vpop.f32.mrf.mxu3 }
 0x8b1   :  { %v1342_v50 = vadd.f32 %v1341_v27, %v1144_v35  ;;  %v1329_v40 = vadd.f32 %v1328_v44, %v1131_v31 }
 0x8b3   :  { %v3936_v29 = vadd.f32 %v1342_v50, %v3722_v53  ;;  %v1345_v10 = vadd.f32 %v1329_v40, %v3739_v16 }
 0x8b5   :  { %3187 = vtanh.f32 %v3936_v29  ;;  %v2886_v30 = vmul.f32 -1.442695, %v1345_v10 }
 0x8b8   :  { %v1330_v20 = vpop.f32.mrf.mxu2  ;;  %v1343_v23 = vpop.f32.mrf.mxu3 }
 0x8bb   :  { %v3188_v54 = vpop.eup %3187 }
 0x8bc   :  { %1388 = vrot.lane.b32.xlu2 %v3188_v54, %s3477_s0 }
 0x8c0   :  { %v1442_v62 = vpop.f32.mrf.mxu2  ;;  %v1455_v5 = vpop.f32.mrf.mxu3 }
 0x8c1   :  { %v1462_v57 = vrot.slane %v1455_v5, 4  ;;  %v1464_v61 = vrot.slane %v1455_v5, 5  ;;  %v1461_v7 = vrot.slane %v1442_v62, 4  ;;  %v1463_v9 = vrot.slane %v1442_v62, 5 }
 0x8c3   :  { %v3941_v1 = vadd.f32 %v1462_v57, %v3587_v47  ;;  %v3944_v6 = vadd.f32 %v1464_v61, %v3582_v41  ;;  %v1469_v38 = vadd.f32 %v1461_v7, %v3580_v36  ;;  %v1471_v43 = vadd.f32 %v1463_v9, %v3578_v33 }
 0x8c5   :  { %3189 = vtanh.f32 %v3941_v1  ;;  %v2892_v44 = vmul.f32 -1.442695, %v1469_v38  ;;  %v2894_v20 = vmul.f32 -1.442695, %v1471_v43 }
 0x8c6   :  { %3191 = vtanh.f32 %v3944_v6 }
 0x8c7   :  { %3193 = vpow2.f32 %v2886_v30 }
 0x8c8   :  { %v1444_v56 = vpop.f32.mrf.mxu2  ;;  %v1457_v2 = vpop.f32.mrf.mxu3 }
 0x8cb   :  { %v3190_v13 = vpop.eup %3189 }
 0x8cc   :  { %v3192_v3 = vpop.eup %3191  ;;  %1561 = vrot.lane.b32.xlu0 %v3190_v13, %s3477_s0 }
 0x8cd   :  { %1563 = vrot.lane.b32.xlu1 %v3192_v3, %s3477_s0  ;;  %v3194_v0 = vpop.eup %3193 }
 0x8ce   :  { %v1353_v45 = vadd.f32 1.0, %v3194_v0 }
 0x8d0   :  { %3195 = vrcp.f32 %v1353_v45  ;;  %v1366_v31 = vand.u32 2147483648, %v1353_v45  ;;  %vm1360_vm5 = vweird.f32 %v1353_v45  ;;  %v1364_v50 = vand.u32 2147483647, %v1353_v45 }
 0x8d1   :  { %3197 = vpow2.f32 %v2892_v44 }
 0x8d2   :  { %v1367_v54 = vor.u32 1.1754944e-38, %v1366_v31  ;;  %vm1365_vm7 = vcmp.eq.f32.partialorder %v1364_v50, 8.507059e+37  ;;  %3199 = vpow2.f32 %v2894_v20 }
 0x8d6   :  { %v3196_v14 = vpop.eup %3195 }
 0x8d7   :  { %v1356_v63 = vmul.f32 %v3196_v14, %v1353_v45  ;;  %vm1361_vm4 = vweird.f32 %v3196_v14  ;;  %v3198_v61 = vpop.eup %3197 }
 0x8d8   :  { %vm1362_vm6 = vmor %vm1360_vm5, %vm1361_vm4  ;;  %v3200_v56 = vpop.eup %3199  ;;  %v1485_v2 = vadd.f32 1.0, %v3198_v61 }
 0x8d9   :  { %v1357_v60 = vsub.f32 1.0, %v1356_v63  ;;  %v1487_v13 = vadd.f32 1.0, %v3200_v56 }
 0x8da   :  { %3201 = vrcp.f32 %v1485_v2  ;;  %v1500_v9 = vand.u32 2147483648, %v1485_v2  ;;  %vm1494_vm10 = vweird.f32 %v1485_v2  ;;  %v1498_v38 = vand.u32 2147483647, %v1485_v2 }
 0x8db   :  { %v1358_v35 = vmul.f32 %v3196_v14, %v1357_v60  ;;  %3203 = vrcp.f32 %v1487_v13  ;;  %vm1524_vm11 = vweird.f32 %v1487_v13  ;;  %v1528_v43 = vand.u32 2147483647, %v1487_v13 }
 0x8dc   :  { %v1501_v44 = vor.u32 1.1754944e-38, %v1500_v9  ;;  %vm1499_vm14 = vcmp.eq.f32.partialorder %v1498_v38, 8.507059e+37 }
 0x8dd   :  { %v1359_v27 = vadd.f32 %v3196_v14, %v1358_v35  ;;  %v1530_v35 = vand.u32 2147483648, %v1487_v13  ;;  %vm1529_vm15 = vcmp.eq.f32.partialorder %v1528_v43, 8.507059e+37 }
 0x8df   :  { %v1363_v23 = vsel %vm1362_vm6, %v3196_v14, %v1359_v27  ;;  %v1531_v50 = vor.u32 1.1754944e-38, %v1530_v35 }
 0x8e0   :  { %v1368_v62 = vsel %vm1365_vm7, %v1367_v54, %v1363_v23  ;;  %v3202_v3 = vpop.eup %3201 }
 0x8e1   :  { %v3204_v40 = vpop.eup %3203  ;;  %v1490_v10 = vmul.f32 %v3202_v3, %v1485_v2  ;;  %vm1495_vm8 = vweird.f32 %v3202_v3  ;;  %v1386_v56 = vmul.f32 %v1368_v62, %v3887_v28 }
 0x8e2   :  { %v1520_v30 = vmul.f32 %v3204_v40, %v1487_v13  ;;  %vm1525_vm9 = vweird.f32 %v3204_v40  ;;  %vm1496_vm12 = vmor %vm1494_vm10, %vm1495_vm8 }
 0x8e3   :  { %v1491_v0 = vsub.f32 1.0, %v1490_v10  ;;  %vm1526_vm13 = vmor %vm1524_vm11, %vm1525_vm9  ;;  %v1553_v10 = vrot.slane %v3894_v49, 7 }
 0x8e4   :  { %v1521_v45 = vsub.f32 1.0, %v1520_v30  ;;  %v1554_v30 = vrot.slane %v3896_v21, 7 }
 0x8e5   :  { %v1492_v14 = vmul.f32 %v3202_v3, %v1491_v0 }
 0x8e6   :  { %v1522_v63 = vmul.f32 %v3204_v40, %v1521_v45 }
 0x8e7   :  { %v1493_v60 = vadd.f32 %v3202_v3, %v1492_v14 }
 0x8e8   :  { %v1523_v7 = vadd.f32 %v3204_v40, %v1522_v63 }
 0x8e9   :  { %v1497_v27 = vsel %vm1496_vm12, %v3202_v3, %v1493_v60 }
 0x8ea   :  { %v1527_v31 = vsel %vm1526_vm13, %v3204_v40, %v1523_v7  ;;  %v1502_v23 = vsel %vm1499_vm14, %v1501_v44, %v1497_v27  ;;  %v2887_v40 = vmul.f32 -1.442695, %v3936_v29 }
 0x8eb   :  { %v1557_v0 = vmul.f32 %v1553_v10, %v1502_v23 }
 0x916   :  { %v1389_v5 = vpop.permute.xlu2 %1388 }
 0x917   :  { %v1391_v57 = vmul.f32 %v1389_v5, %v1368_v62  ;;  %v1532_v5 = vsel %vm1529_vm15, %v1531_v50, %v1527_v31 }
 0x918   :  { %v1558_v45 = vmul.f32 %v1554_v30, %v1532_v5 }
 0x919   :  { %1393 = vrot.lane.b32.xlu2 %v1391_v57, %s3477_s0 }
 0x93e   :  { %v1562_v20 = vpop.permute.xlu0 %1561 }
 0x93f   :  { %v1564_v54 = vpop.permute.xlu1 %1563  ;;  %v1567_v57 = vmul.f32 %v1562_v20, %v1502_v23 }
 0x940   :  { %v1568_v61 = vmul.f32 %v1564_v54, %v1532_v5 }
 0x941   :  { %1571 = vrot.lane.b32.xlu0 %v1567_v57, %s3477_s0  ;;  %v2893_v57 = vmul.f32 -1.442695, %v3941_v1 }
 0x942   :  { %1573 = vrot.lane.b32.xlu1 %v1568_v61, %s3477_s0  ;;  %v2895_v61 = vmul.f32 -1.442695, %v3944_v6 }
 0x973   :  { %v1394_v2 = vpop.permute.xlu2 %1393 }
 0x974   :  { %v3957_v13 = vadd.f32 %v1394_v2, %v1386_v56 }
 0x976   :  { %3205 = vtanh.f32 %v3957_v13 }
 0x977   :  { %3207 = vpow2.f32 %v2887_v40 }
 0x97c   :  { %v3206_v3 = vpop.eup %3205 }
 0x97d   :  { %1399 = vrot.lane.b32.xlu2 %v3206_v3, %s3477_s0  ;;  %v3208_v63 = vpop.eup %3207 }
 0x97e   :  { %v1354_v7 = vadd.f32 1.0, %v3208_v63 }
 0x980   :  { %v1381_v27 = vand.u32 2147483648, %v1354_v7  ;;  %vm1375_vm3 = vweird.f32 %v1354_v7  ;;  %v1379_v31 = vand.u32 2147483647, %v1354_v7 }
 0x982   :  { %v1382_v50 = vor.u32 1.1754944e-38, %v1381_v27  ;;  %vm1380_vm5 = vcmp.eq.f32.partialorder %v1379_v31, 8.507059e+37 }
 0x9b3   :  { %v1572_v14 = vpop.permute.xlu0 %1571 }
 0x9b4   :  { %v1574_v28 = vpop.permute.xlu1 %1573  ;;  %v3964_v62 = vadd.f32 %v1572_v14, %v1557_v0 }
 0x9b5   :  { %v3966_v60 = vadd.f32 %v1574_v28, %v1558_v45 }
 0x9b6   :  { %3209 = vtanh.f32 %v3964_v62 }
 0x9b7   :  { %3211 = vtanh.f32 %v3966_v60 }
 0x9b8   :  { %3213 = vrcp.f32 %v1354_v7 }
 0x9b9   :  { %3215 = vpow2.f32 %v2893_v57 }
 0x9ba   :  { %3217 = vpow2.f32 %v2895_v61 }
 0x9bc   :  { %v3210_v29 = vpop.eup %3209 }
 0x9bd   :  { %v3212_v9 = vpop.eup %3211  ;;  %1583 = vrot.lane.b32.xlu0 %v3210_v29, %s3477_s0 }
 0x9be   :  { %1585 = vrot.lane.b32.xlu1 %v3212_v9, %s3477_s0  ;;  %v3214_v49 = vpop.eup %3213 }
 0x9bf   :  { %v1371_v21 = vmul.f32 %v3214_v49, %v1354_v7  ;;  %vm1376_vm2 = vweird.f32 %v3214_v49  ;;  %v3216_v56 = vpop.eup %3215 }
 0x9c0   :  { %vm1377_vm4 = vmor %vm1375_vm3, %vm1376_vm2  ;;  %v3218_v2 = vpop.eup %3217  ;;  %v1486_v3 = vadd.f32 1.0, %v3216_v56 }
 0x9c1   :  { %v1372_v35 = vsub.f32 1.0, %v1371_v21  ;;  %v1488_v40 = vadd.f32 1.0, %v3218_v2 }
 0x9c2   :  { %3219 = vrcp.f32 %v1486_v3  ;;  %v1515_v6 = vand.u32 2147483648, %v1486_v3  ;;  %vm1509_vm8 = vweird.f32 %v1486_v3 }
 0x9c3   :  { %v1373_v38 = vmul.f32 %v3214_v49, %v1372_v35  ;;  %3221 = vrcp.f32 %v1488_v40  ;;  %v1545_v9 = vand.u32 2147483648, %v1488_v40  ;;  %vm1539_vm9 = vweird.f32 %v1488_v40 }
 0x9c4   :  { %v1543_v21 = vand.u32 2147483647, %v1488_v40 }
 0x9c5   :  { %v1374_v43 = vadd.f32 %v3214_v49, %v1373_v38  ;;  %v1546_v27 = vor.u32 1.1754944e-38, %v1545_v9 }
 0x9c6   :  { %vm1544_vm13 = vcmp.eq.f32.partialorder %v1543_v21, 8.507059e+37 }
 0x9c7   :  { %v1378_v44 = vsel %vm1377_vm4, %v3214_v49, %v1374_v43  ;;  %v1513_v49 = vand.u32 2147483647, %v1486_v3  ;;  %v1516_v43 = vor.u32 1.1754944e-38, %v1515_v6 }
 0x9c8   :  { %v1383_v20 = vsel %vm1380_vm5, %v1382_v50, %v1378_v44  ;;  %v3220_v10 = vpop.eup %3219 }
 0x9c9   :  { %v3222_v30 = vpop.eup %3221  ;;  %v1505_v0 = vmul.f32 %v3220_v10, %v1486_v3  ;;  %vm1510_vm6 = vweird.f32 %v3220_v10  ;;  %vm1514_vm12 = vcmp.eq.f32.partialorder %v1513_v49, 8.507059e+37 }
 0x9ca   :  { %v1535_v45 = vmul.f32 %v3222_v30, %v1488_v40  ;;  %vm1540_vm7 = vweird.f32 %v3222_v30  ;;  %vm1511_vm10 = vmor %vm1509_vm8, %vm1510_vm6 }
 0x9cb   :  { %v1506_v14 = vsub.f32 1.0, %v1505_v0  ;;  %vm1541_vm11 = vmor %vm1539_vm9, %vm1540_vm7 }
 0x9cc   :  { %v1536_v63 = vsub.f32 1.0, %v1535_v45 }
 0x9cd   :  { %v1507_v28 = vmul.f32 %v3220_v10, %v1506_v14 }
 0x9ce   :  { %v1537_v7 = vmul.f32 %v3222_v30, %v1536_v63 }
 0x9cf   :  { %v1508_v29 = vadd.f32 %v3220_v10, %v1507_v28 }
 0x9d0   :  { %v1538_v1 = vadd.f32 %v3222_v30, %v1537_v7 }
 0x9d1   :  { %v1512_v35 = vsel %vm1511_vm10, %v3220_v10, %v1508_v29 }
 0x9d2   :  { %v1542_v38 = vsel %vm1541_vm11, %v3222_v30, %v1538_v1  ;;  %v1517_v31 = vsel %vm1514_vm12, %v1516_v43, %v1512_v35 }
 0x9d3   :  { %v1547_v50 = vsel %vm1544_vm13, %v1546_v27, %v1542_v38 }
 0x9d7   :  { %v1400_v23 = vpop.permute.xlu2 %1399 }
 0x9d8   :  { %v1402_v54 = vmul.f32 %v1400_v23, %v1383_v20 }
 0x9da   :  { %v1403_v5 = vpack.c.bf16 %v1402_v54, %v1402_v54 }
 0x9dc   :  { %2888 = vmatmul.msk.bf16.vlgmr.msra.gmra.mxu0 %vm194_vm1, %v1403_v5  ;;  %2889 = vmatmul.msk.bf16.vlgmr.msra.gmra.mxu1 %vm194_vm1, %v1403_v5 }
 0x9dd   :  { %1735 = vmatpush.bf16.msra.mxu1 %v3542_v8  ;;  %1722 = vmatpush.bf16.msra.mxu0 %v3540_v4 }
 0x9e1   :  { %1736 = vmatpush.bf16.msra.mxu1 %v3548_v12  ;;  %1723 = vmatpush.bf16.msra.mxu0 %v3545_v11 }
 0x9e5   :  { %1737 = vmatpush.bf16.msra.mxu1 %v3557_v19  ;;  %1724 = vmatpush.bf16.msra.mxu0 %v3554_v18 }
 0x9e9   :  { %1738 = vmatpush.bf16.msra.mxu1 %v3566_v26  ;;  %1725 = vmatpush.bf16.msra.mxu0 %v3560_v24 }
 0xa2f   :  { %v1584_v44 = vpop.permute.xlu0 %1583 }
 0xa30   :  { %v1586_v20 = vpop.permute.xlu1 %1585  ;;  %v1589_v23 = vmul.f32 %v1584_v44, %v1517_v31 }
 0xa31   :  { %v1590_v54 = vmul.f32 %v1586_v20, %v1547_v50 }
 0xa32   :  { %v1591_v5 = vpack.c.bf16 %v1589_v23, %v1589_v23 }
 0xa33   :  { %v1592_v57 = vpack.c.bf16 %v1590_v54, %v1590_v54 }
 0xa34   :  { %v1595_v61 = vunpack.c.l.b16 %v1591_v5 }
 0xa35   :  { %v1596_v56 = vunpack.c.l.b16 %v1592_v57 }
 0xa36   :  { %v1597_v2 = vrot.slane %v1595_v61, 4 }
 0xa37   :  { %v1598_v3 = vrot.slane %v1596_v56, 3 }
 0xa39   :  { %v1599_v40 = vsel %vm421_vm0, %v1598_v3, %v1597_v2 }
 0xa3a   :  { %v1600_v10 = vpack.c.b16 %v1599_v40, %v1599_v40 }
 0xa3c   :  { %2896 = vmatmul.msk.bf16.vlgmr.msrb.gmra.mxu0 %vm194_vm1, %v1600_v10  ;;  %2897 = vmatmul.msk.bf16.vlgmr.msrb.gmra.mxu1 %vm194_vm1, %v1600_v10 }
 0xa3d   :  { %1981 = vmatpush.bf16.msrb.mxu0 %v3602_v39  ;;  %1994 = vmatpush.bf16.msrb.mxu1 %v3600_v34 }
 0xa41   :  { %1982 = vmatpush.bf16.msrb.mxu0 %v3609_v48  ;;  %1995 = vmatpush.bf16.msrb.mxu1 %v3605_v42 }
 0xa45   :  { %1983 = vmatpush.bf16.msrb.mxu0 %v3617_v55  ;;  %1996 = vmatpush.bf16.msrb.mxu1 %v3613_v52 }
 0xa49   :  { %1984 = vmatpush.bf16.msrb.mxu0 %v3625_v59  ;;  %1997 = vmatpush.bf16.msrb.mxu1 %v3621_v58 }
 0xa4c   :  { %2902 = vmatmul.msk.bf16.vlgmr.msra.gmra.mxu0 %vm194_vm1, %v1600_v10  ;;  %2903 = vmatmul.msk.bf16.vlgmr.msra.gmra.mxu1 %vm194_vm1, %v1600_v10 }
 0xa4d   :  { %2191 = vmatpush.bf16.msra.mxu1 %v3646_v15  ;;  %2178 = vmatpush.bf16.msra.mxu0 %v3648_v17 }
 0xa51   :  { %2192 = vmatpush.bf16.msra.mxu1 %v3655_v22  ;;  %2179 = vmatpush.bf16.msra.mxu0 %v3657_v25 }
 0xa55   :  { %2193 = vmatpush.bf16.msra.mxu1 %v3665_v32  ;;  %2180 = vmatpush.bf16.msra.mxu0 %v3667_v37 }
 0xa59   :  { %v1416_v30 = vpop.f32.mrf.mxu0  ;;  %v1429_v0 = vpop.f32.mrf.mxu1  ;;  %2194 = vmatpush.bf16.msra.mxu1 %v3675_v46  ;;  %2181 = vmatpush.bf16.msra.mxu0 %v3677_v51 }
 0xa61   :  { %v1418_v45 = vpop.f32.mrf.mxu0  ;;  %v1431_v14 = vpop.f32.mrf.mxu1 }
 0xab9   :  { %v1613_v63 = vpop.f32.mrf.mxu0  ;;  %v1626_v28 = vpop.f32.mrf.mxu1 }
 0xaba   :  { %v1627_v7 = vadd.f32 %v1626_v28, %v1429_v0  ;;  %v1614_v23 = vadd.f32 %v1613_v63, %v1416_v30 }
 0xabc   :  { %v4006_v29 = vadd.f32 %v1627_v7, %v3722_v53  ;;  %v1630_v54 = vadd.f32 %v1614_v23, %v3739_v16 }
 0xabe   :  { %3223 = vtanh.f32 %v4006_v29  ;;  %v2898_v5 = vmul.f32 -1.442695, %v1630_v54 }
 0xac1   :  { %v1615_v1 = vpop.f32.mrf.mxu0  ;;  %v1628_v6 = vpop.f32.mrf.mxu1 }
 0xac4   :  { %v3224_v9 = vpop.eup %3223 }
 0xac5   :  { %1673 = vrot.lane.b32.xlu2 %v3224_v9, %s3477_s0 }
 0xac9   :  { %v1727_v49 = vpop.f32.mrf.mxu0  ;;  %v1740_v21 = vpop.f32.mrf.mxu1 }
 0xaca   :  { %v1747_v35 = vrot.slane %v1740_v21, 3  ;;  %v1749_v38 = vrot.slane %v1740_v21, 4  ;;  %v1746_v40 = vrot.slane %v1727_v49, 3  ;;  %v1748_v10 = vrot.slane %v1727_v49, 4 }
 0xacc   :  { %v4011_v43 = vadd.f32 %v1747_v35, %v3587_v47  ;;  %v4014_v27 = vadd.f32 %v1749_v38, %v3582_v41  ;;  %v1754_v45 = vadd.f32 %v1746_v40, %v3580_v36  ;;  %v1756_v14 = vadd.f32 %v1748_v10, %v3578_v33 }
 0xace   :  { %3225 = vtanh.f32 %v4011_v43  ;;  %v2904_v63 = vmul.f32 -1.442695, %v1754_v45  ;;  %v2906_v1 = vmul.f32 -1.442695, %v1756_v14 }
 0xacf   :  { %3227 = vtanh.f32 %v4014_v27 }
 0xad0   :  { %3229 = vpow2.f32 %v2898_v5 }
 0xad1   :  { %v1729_v31 = vpop.f32.mrf.mxu0  ;;  %v1742_v44 = vpop.f32.mrf.mxu1 }
 0xad4   :  { %v3226_v50 = vpop.eup %3225 }
 0xad5   :  { %v3228_v20 = vpop.eup %3227  ;;  %1846 = vrot.lane.b32.xlu0 %v3226_v50, %s3477_s0 }
 0xad6   :  { %1848 = vrot.lane.b32.xlu1 %v3228_v20, %s3477_s0  ;;  %v3230_v57 = vpop.eup %3229 }
 0xad7   :  { %v1638_v61 = vadd.f32 1.0, %v3230_v57 }
 0xad9   :  { %3231 = vrcp.f32 %v1638_v61  ;;  %v1651_v30 = vand.u32 2147483648, %v1638_v61  ;;  %vm1645_vm15 = vweird.f32 %v1638_v61  ;;  %v1649_v7 = vand.u32 2147483647, %v1638_v61 }
 0xada   :  { %3233 = vpow2.f32 %v2904_v63 }
 0xadb   :  { %v1652_v9 = vor.u32 1.1754944e-38, %v1651_v30  ;;  %vm1650_vm3 = vcmp.eq.f32.partialorder %v1649_v7, 8.507059e+37  ;;  %3235 = vpow2.f32 %v2906_v1 }
 0xadf   :  { %v3232_v56 = vpop.eup %3231 }
 0xae0   :  { %v1641_v2 = vmul.f32 %v3232_v56, %v1638_v61  ;;  %vm1646_vm14 = vweird.f32 %v3232_v56  ;;  %v3234_v38 = vpop.eup %3233 }
 0xae1   :  { %vm1647_vm2 = vmor %vm1645_vm15, %vm1646_vm14  ;;  %v3236_v31 = vpop.eup %3235  ;;  %v1770_v44 = vadd.f32 1.0, %v3234_v38 }
 0xae2   :  { %v1642_v3 = vsub.f32 1.0, %v1641_v2  ;;  %v1772_v50 = vadd.f32 1.0, %v3236_v31 }
 0xae3   :  { %3237 = vrcp.f32 %v1770_v44  ;;  %v1785_v10 = vand.u32 2147483648, %v1770_v44  ;;  %vm1779_vm6 = vweird.f32 %v1770_v44  ;;  %v1783_v45 = vand.u32 2147483647, %v1770_v44 }
 0xae4   :  { %v1643_v0 = vmul.f32 %v3232_v56, %v1642_v3  ;;  %3239 = vrcp.f32 %v1772_v50  ;;  %vm1809_vm7 = vweird.f32 %v1772_v50  ;;  %v1813_v14 = vand.u32 2147483647, %v1772_v50 }
 0xae5   :  { %v1786_v63 = vor.u32 1.1754944e-38, %v1785_v10  ;;  %vm1784_vm10 = vcmp.eq.f32.partialorder %v1783_v45, 8.507059e+37 }
 0xae6   :  { %v1644_v28 = vadd.f32 %v3232_v56, %v1643_v0  ;;  %v1815_v0 = vand.u32 2147483648, %v1772_v50  ;;  %vm1814_vm11 = vcmp.eq.f32.partialorder %v1813_v14, 8.507059e+37 }
 0xae8   :  { %v1648_v6 = vsel %vm1647_vm2, %v3232_v56, %v1644_v28  ;;  %v1816_v7 = vor.u32 1.1754944e-38, %v1815_v0 }
 0xae9   :  { %v1653_v49 = vsel %vm1650_vm3, %v1652_v9, %v1648_v6  ;;  %v3238_v20 = vpop.eup %3237 }
 0xaea   :  { %v3240_v23 = vpop.eup %3239  ;;  %v1775_v54 = vmul.f32 %v3238_v20, %v1770_v44  ;;  %vm1780_vm4 = vweird.f32 %v3238_v20  ;;  %v1671_v31 = vmul.f32 %v1653_v49, %v3957_v13 }
 0xaeb   :  { %v1805_v5 = vmul.f32 %v3240_v23, %v1772_v50  ;;  %vm1810_vm5 = vweird.f32 %v3240_v23  ;;  %vm1781_vm8 = vmor %vm1779_vm6, %vm1780_vm4 }
 0xaec   :  { %v1776_v57 = vsub.f32 1.0, %v1775_v54  ;;  %vm1811_vm9 = vmor %vm1809_vm7, %vm1810_vm5  ;;  %v1838_v54 = vrot.slane %v3964_v62, 7 }
 0xaed   :  { %v1806_v61 = vsub.f32 1.0, %v1805_v5  ;;  %v1839_v5 = vrot.slane %v3966_v60, 7 }
 0xaee   :  { %v1777_v56 = vmul.f32 %v3238_v20, %v1776_v57 }
 0xaef   :  { %v1807_v2 = vmul.f32 %v3240_v23, %v1806_v61 }
 0xaf0   :  { %v1778_v3 = vadd.f32 %v3238_v20, %v1777_v56 }
 0xaf1   :  { %v1808_v40 = vadd.f32 %v3240_v23, %v1807_v2 }
 0xaf2   :  { %v1782_v28 = vsel %vm1781_vm8, %v3238_v20, %v1778_v3 }
 0xaf3   :  { %v1812_v30 = vsel %vm1811_vm9, %v3240_v23, %v1808_v40  ;;  %v1787_v6 = vsel %vm1784_vm10, %v1786_v63, %v1782_v28  ;;  %v2899_v23 = vmul.f32 -1.442695, %v4006_v29 }
 0xaf4   :  { %v1842_v57 = vmul.f32 %v1838_v54, %v1787_v6 }
 0xb1f   :  { %v1674_v21 = vpop.permute.xlu2 %1673 }
 0xb20   :  { %v1676_v35 = vmul.f32 %v1674_v21, %v1653_v49  ;;  %v1817_v21 = vsel %vm1814_vm11, %v1816_v7, %v1812_v30 }
 0xb21   :  { %v1843_v61 = vmul.f32 %v1839_v5, %v1817_v21 }
 0xb22   :  { %1678 = vrot.lane.b32.xlu2 %v1676_v35, %s3477_s0 }
 0xb47   :  { %v1847_v1 = vpop.permute.xlu0 %1846 }
 0xb48   :  { %v1849_v9 = vpop.permute.xlu1 %1848  ;;  %v1852_v35 = vmul.f32 %v1847_v1, %v1787_v6 }
 0xb49   :  { %v1853_v38 = vmul.f32 %v1849_v9, %v1817_v21 }
 0xb4a   :  { %1856 = vrot.lane.b32.xlu0 %v1852_v35, %s3477_s0  ;;  %v2905_v35 = vmul.f32 -1.442695, %v4011_v43 }
 0xb4b   :  { %1858 = vrot.lane.b32.xlu1 %v1853_v38, %s3477_s0  ;;  %v2907_v38 = vmul.f32 -1.442695, %v4014_v27 }
 0xb7c   :  { %v1679_v44 = vpop.permute.xlu2 %1678 }
 0xb7d   :  { %v4027_v50 = vadd.f32 %v1679_v44, %v1671_v31 }
 0xb7f   :  { %3241 = vtanh.f32 %v4027_v50 }
 0xb80   :  { %3243 = vpow2.f32 %v2899_v23 }
 0xb85   :  { %v3242_v20 = vpop.eup %3241 }
 0xb86   :  { %1684 = vrot.lane.b32.xlu2 %v3242_v20, %s3477_s0  ;;  %v3244_v2 = vpop.eup %3243 }
 0xb87   :  { %v1639_v40 = vadd.f32 1.0, %v3244_v2 }
 0xb89   :  { %v1666_v28 = vand.u32 2147483648, %v1639_v40  ;;  %vm1660_vm13 = vweird.f32 %v1639_v40  ;;  %v1664_v30 = vand.u32 2147483647, %v1639_v40 }
 0xb8b   :  { %v1667_v7 = vor.u32 1.1754944e-38, %v1666_v28  ;;  %vm1665_vm15 = vcmp.eq.f32.partialorder %v1664_v30, 8.507059e+37 }
 0xbbc   :  { %v1857_v56 = vpop.permute.xlu0 %1856 }
 0xbbd   :  { %v1859_v13 = vpop.permute.xlu1 %1858  ;;  %v4034_v49 = vadd.f32 %v1857_v56, %v1842_v57 }
 0xbbe   :  { %v4036_v3 = vadd.f32 %v1859_v13, %v1843_v61 }
 0xbbf   :  { %3245 = vtanh.f32 %v4034_v49 }
 0xbc0   :  { %3247 = vtanh.f32 %v4036_v3 }
 0xbc1   :  { %3249 = vrcp.f32 %v1639_v40 }
 0xbc2   :  { %3251 = vpow2.f32 %v2905_v35 }
 0xbc3   :  { %3253 = vpow2.f32 %v2907_v38 }
 0xbc5   :  { %v3246_v29 = vpop.eup %3245 }
 0xbc6   :  { %v3248_v10 = vpop.eup %3247  ;;  %1868 = vrot.lane.b32.xlu0 %v3246_v29, %s3477_s0 }
 0xbc7   :  { %1870 = vrot.lane.b32.xlu1 %v3248_v10, %s3477_s0  ;;  %v3250_v62 = vpop.eup %3249 }
 0xbc8   :  { %v1656_v60 = vmul.f32 %v3250_v62, %v1639_v40  ;;  %vm1661_vm12 = vweird.f32 %v3250_v62  ;;  %v3252_v31 = vpop.eup %3251 }
 0xbc9   :  { %vm1662_vm14 = vmor %vm1660_vm13, %vm1661_vm12  ;;  %v3254_v44 = vpop.eup %3253  ;;  %v1771_v20 = vadd.f32 1.0, %v3252_v31 }
 0xbca   :  { %v1657_v0 = vsub.f32 1.0, %v1656_v60  ;;  %v1773_v23 = vadd.f32 1.0, %v3254_v44 }
 0xbcb   :  { %3255 = vrcp.f32 %v1771_v20  ;;  %v1800_v27 = vand.u32 2147483648, %v1771_v20  ;;  %vm1794_vm4 = vweird.f32 %v1771_v20 }
 0xbcc   :  { %v1658_v45 = vmul.f32 %v3250_v62, %v1657_v0  ;;  %3257 = vrcp.f32 %v1773_v23  ;;  %v1830_v10 = vand.u32 2147483648, %v1773_v23  ;;  %vm1824_vm5 = vweird.f32 %v1773_v23 }
 0xbcd   :  { %v1828_v60 = vand.u32 2147483647, %v1773_v23 }
 0xbce   :  { %v1659_v14 = vadd.f32 %v3250_v62, %v1658_v45  ;;  %v1831_v28 = vor.u32 1.1754944e-38, %v1830_v10 }
 0xbcf   :  { %vm1829_vm9 = vcmp.eq.f32.partialorder %v1828_v60, 8.507059e+37 }
 0xbd0   :  { %v1663_v63 = vsel %vm1662_vm14, %v3250_v62, %v1659_v14  ;;  %v1798_v62 = vand.u32 2147483647, %v1771_v20  ;;  %v1801_v14 = vor.u32 1.1754944e-38, %v1800_v27 }
 0xbd1   :  { %v1668_v1 = vsel %vm1665_vm15, %v1667_v7, %v1663_v63  ;;  %v3256_v54 = vpop.eup %3255 }
 0xbd2   :  { %v3258_v5 = vpop.eup %3257  ;;  %v1790_v57 = vmul.f32 %v3256_v54, %v1771_v20  ;;  %vm1795_vm2 = vweird.f32 %v3256_v54  ;;  %vm1799_vm8 = vcmp.eq.f32.partialorder %v1798_v62, 8.507059e+37 }
 0xbd3   :  { %v1820_v61 = vmul.f32 %v3258_v5, %v1773_v23  ;;  %vm1825_vm3 = vweird.f32 %v3258_v5  ;;  %vm1796_vm6 = vmor %vm1794_vm4, %vm1795_vm2 }
 0xbd4   :  { %v1791_v56 = vsub.f32 1.0, %v1790_v57  ;;  %vm1826_vm7 = vmor %vm1824_vm5, %vm1825_vm3 }
 0xbd5   :  { %v1821_v2 = vsub.f32 1.0, %v1820_v61 }
 0xbd6   :  { %v1792_v13 = vmul.f32 %v3256_v54, %v1791_v56 }
 0xbd7   :  { %v1822_v40 = vmul.f32 %v3258_v5, %v1821_v2 }
 0xbd8   :  { %v1793_v29 = vadd.f32 %v3256_v54, %v1792_v13 }
 0xbd9   :  { %v1823_v43 = vadd.f32 %v3258_v5, %v1822_v40 }
 0xbda   :  { %v1797_v0 = vsel %vm1796_vm6, %v3256_v54, %v1793_v29 }
 0xbdb   :  { %v1827_v45 = vsel %vm1826_vm7, %v3258_v5, %v1823_v43  ;;  %v1802_v30 = vsel %vm1799_vm8, %v1801_v14, %v1797_v0 }
 0xbdc   :  { %v1832_v7 = vsel %vm1829_vm9, %v1831_v28, %v1827_v45 }
 0xbe0   :  { %v1685_v6 = vpop.permute.xlu2 %1684 }
 0xbe1   :  { %v1687_v9 = vmul.f32 %v1685_v6, %v1668_v1 }
 0xbe3   :  { %v1688_v21 = vpack.c.bf16 %v1687_v9, %v1687_v9 }
 0xbe5   :  { %2900 = vmatmul.msk.bf16.vlgmr.msrb.gmra.mxu2 %vm194_vm1, %v1688_v21  ;;  %2901 = vmatmul.msk.bf16.vlgmr.msrb.gmra.mxu3 %vm194_vm1, %v1688_v21 }
 0xbe6   :  { %2020 = vmatpush.bf16.msrb.mxu3 %v3542_v8  ;;  %2007 = vmatpush.bf16.msrb.mxu2 %v3540_v4 }
 0xbea   :  { %2021 = vmatpush.bf16.msrb.mxu3 %v3548_v12  ;;  %2008 = vmatpush.bf16.msrb.mxu2 %v3545_v11 }
 0xbee   :  { %2022 = vmatpush.bf16.msrb.mxu3 %v3557_v19  ;;  %2009 = vmatpush.bf16.msrb.mxu2 %v3554_v18 }
 0xbf2   :  { %2023 = vmatpush.bf16.msrb.mxu3 %v3566_v26  ;;  %2010 = vmatpush.bf16.msrb.mxu2 %v3560_v24 }
 0xc38   :  { %v1869_v63 = vpop.permute.xlu0 %1868 }
 0xc39   :  { %v1871_v1 = vpop.permute.xlu1 %1870  ;;  %v1874_v6 = vmul.f32 %v1869_v63, %v1802_v30 }
 0xc3a   :  { %v1875_v9 = vmul.f32 %v1871_v1, %v1832_v7 }
 0xc3b   :  { %v1876_v21 = vpack.c.bf16 %v1874_v6, %v1874_v6 }
 0xc3c   :  { %v1877_v35 = vpack.c.bf16 %v1875_v9, %v1875_v9 }
 0xc3d   :  { %v1880_v38 = vunpack.c.l.b16 %v1876_v21 }
 0xc3e   :  { %v1881_v31 = vunpack.c.l.b16 %v1877_v35 }
 0xc3f   :  { %v1882_v44 = vrot.slane %v1880_v38, 5 }
 0xc40   :  { %v1883_v20 = vrot.slane %v1881_v31, 4 }
 0xc42   :  { %v1884_v23 = vsel %vm421_vm0, %v1883_v20, %v1882_v44 }
 0xc43   :  { %v1885_v54 = vpack.c.b16 %v1884_v23, %v1884_v23 }
 0xc45   :  { %2908 = vmatmul.msk.bf16.vlgmr.msra.gmra.mxu2 %vm194_vm1, %v1885_v54  ;;  %2909 = vmatmul.msk.bf16.vlgmr.msra.gmra.mxu3 %vm194_vm1, %v1885_v54 }
 0xc46   :  { %2266 = vmatpush.bf16.msra.mxu2 %v3602_v39  ;;  %2279 = vmatpush.bf16.msra.mxu3 %v3600_v34 }
 0xc4a   :  { %2267 = vmatpush.bf16.msra.mxu2 %v3609_v48  ;;  %2280 = vmatpush.bf16.msra.mxu3 %v3605_v42 }
 0xc4e   :  { %2268 = vmatpush.bf16.msra.mxu2 %v3617_v55  ;;  %2281 = vmatpush.bf16.msra.mxu3 %v3613_v52 }
 0xc52   :  { %2269 = vmatpush.bf16.msra.mxu2 %v3625_v59  ;;  %2282 = vmatpush.bf16.msra.mxu3 %v3621_v58 }
 0xc55   :  { %2914 = vmatmul.msk.bf16.vlgmr.msrb.gmra.mxu2 %vm194_vm1, %v1885_v54  ;;  %2915 = vmatmul.msk.bf16.vlgmr.msrb.gmra.mxu3 %vm194_vm1, %v1885_v54 }
 0xc56   :  { %2476 = vmatpush.bf16.msrb.mxu3 %v3646_v15  ;;  %2463 = vmatpush.bf16.msrb.mxu2 %v3648_v17 }
 0xc5a   :  { %2477 = vmatpush.bf16.msrb.mxu3 %v3655_v22  ;;  %2464 = vmatpush.bf16.msrb.mxu2 %v3657_v25 }
 0xc5e   :  { %2478 = vmatpush.bf16.msrb.mxu3 %v3665_v32  ;;  %2465 = vmatpush.bf16.msrb.mxu2 %v3667_v37 }
 0xc62   :  { %2479 = vmatpush.bf16.msrb.mxu3 %v3675_v46  ;;  %2466 = vmatpush.bf16.msrb.mxu2 %v3677_v51 }
 0xc68   :  { %v1701_v34 = vpop.f32.mrf.mxu2  ;;  %v1714_v39 = vpop.f32.mrf.mxu3 }
 0xc70   :  { %v1703_v42 = vpop.f32.mrf.mxu2  ;;  %v1716_v48 = vpop.f32.mrf.mxu3 }
 0xcc8   :  { %v1898_v52 = vpop.f32.mrf.mxu2  ;;  %v1911_v55 = vpop.f32.mrf.mxu3 }
 0xcc9   :  { %v1912_v58 = vadd.f32 %v1911_v55, %v1714_v39  ;;  %v1899_v13 = vadd.f32 %v1898_v52, %v1701_v34 }
 0xccb   :  { %v4076_v59 = vadd.f32 %v1912_v58, %v3722_v53  ;;  %v1915_v40 = vadd.f32 %v1899_v13, %v3739_v16 }
 0xccd   :  { %3259 = vtanh.f32 %v4076_v59  ;;  %v2910_v29 = vmul.f32 -1.442695, %v1915_v40 }
 0xcd0   :  { %v1900_v15 = vpop.f32.mrf.mxu2  ;;  %v1913_v17 = vpop.f32.mrf.mxu3 }
 0xcd3   :  { %v3260_v22 = vpop.eup %3259 }
 0xcd4   :  { %1958 = vrot.lane.b32.xlu2 %v3260_v22, %s3477_s0 }
 0xcd8   :  { %v2012_v25 = vpop.f32.mrf.mxu2  ;;  %v2025_v32 = vpop.f32.mrf.mxu3 }
 0xcd9   :  { %v2032_v37 = vrot.slane %v2025_v32, 2  ;;  %v2034_v46 = vrot.slane %v2025_v32, 3  ;;  %v2031_v0 = vrot.slane %v2012_v25, 2  ;;  %v2033_v45 = vrot.slane %v2012_v25, 3 }
 0xcdb   :  { %v4081_v51 = vadd.f32 %v2032_v37, %v3587_v47  ;;  %v4084_v5 = vadd.f32 %v2034_v46, %v3582_v41  ;;  %v2039_v28 = vadd.f32 %v2031_v0, %v3580_v36  ;;  %v2041_v30 = vadd.f32 %v2033_v45, %v3578_v33 }
 0xcdd   :  { %3261 = vtanh.f32 %v4081_v51  ;;  %v2916_v1 = vmul.f32 -1.442695, %v2039_v28  ;;  %v2918_v9 = vmul.f32 -1.442695, %v2041_v30  ;;  %v2911_v28 = vmul.f32 -1.442695, %v4076_v59 }
 0xcde   :  { %3263 = vtanh.f32 %v4084_v5  ;;  %v2123_v30 = vrot.slane %v4034_v49, 7 }
 0xcdf   :  { %3265 = vpow2.f32 %v2910_v29 }
 0xce0   :  { %v2014_v57 = vpop.f32.mrf.mxu2  ;;  %v2027_v61 = vpop.f32.mrf.mxu3 }
 0xce3   :  { %v3262_v56 = vpop.eup %3261 }
 0xce4   :  { %v3264_v2 = vpop.eup %3263  ;;  %2131 = vrot.lane.b32.xlu0 %v3262_v56, %s3477_s0 }
 0xce5   :  { %2133 = vrot.lane.b32.xlu1 %v3264_v2, %s3477_s0  ;;  %v3266_v43 = vpop.eup %3265 }
 0xce6   :  { %v1923_v27 = vadd.f32 1.0, %v3266_v43 }
 0xce8   :  { %3267 = vrcp.f32 %v1923_v27  ;;  %v1936_v7 = vand.u32 2147483648, %v1923_v27  ;;  %vm1930_vm11 = vweird.f32 %v1923_v27  ;;  %v1934_v6 = vand.u32 2147483647, %v1923_v27 }
 0xce9   :  { %3269 = vpow2.f32 %v2916_v1 }
 0xcea   :  { %v1937_v35 = vor.u32 1.1754944e-38, %v1936_v7  ;;  %vm1935_vm13 = vcmp.eq.f32.partialorder %v1934_v6, 8.507059e+37  ;;  %3271 = vpow2.f32 %v2918_v9 }
 0xcee   :  { %v3268_v10 = vpop.eup %3267 }
 0xcef   :  { %v1926_v62 = vmul.f32 %v3268_v10, %v1923_v27  ;;  %vm1931_vm10 = vweird.f32 %v3268_v10  ;;  %v3270_v20 = vpop.eup %3269 }
 0xcf0   :  { %vm1932_vm12 = vmor %vm1930_vm11, %vm1931_vm10  ;;  %v3272_v23 = vpop.eup %3271  ;;  %v2055_v54 = vadd.f32 1.0, %v3270_v20 }
 0xcf1   :  { %v1927_v60 = vsub.f32 1.0, %v1926_v62  ;;  %v2057_v34 = vadd.f32 1.0, %v3272_v23 }
 0xcf2   :  { %3273 = vrcp.f32 %v2055_v54  ;;  %v2070_v32 = vand.u32 2147483648, %v2055_v54  ;;  %vm2064_vm2 = vweird.f32 %v2055_v54  ;;  %v2068_v46 = vand.u32 2147483647, %v2055_v54 }
 0xcf3   :  { %v1928_v14 = vmul.f32 %v3268_v10, %v1927_v60  ;;  %3275 = vrcp.f32 %v2057_v34  ;;  %v2100_v37 = vand.u32 2147483648, %v2057_v34  ;;  %vm2094_vm3 = vweird.f32 %v2057_v34 }
 0xcf4   :  { %v2098_v57 = vand.u32 2147483647, %v2057_v34  ;;  %v2071_v2 = vor.u32 1.1754944e-38, %v2070_v32  ;;  %vm2069_vm6 = vcmp.eq.f32.partialorder %v2068_v46, 8.507059e+37 }
 0xcf5   :  { %v1929_v63 = vadd.f32 %v3268_v10, %v1928_v14  ;;  %v2101_v13 = vor.u32 1.1754944e-38, %v2100_v37 }
 0xcf6   :  { %vm2099_vm7 = vcmp.eq.f32.partialorder %v2098_v57, 8.507059e+37 }
 0xcf7   :  { %v1933_v21 = vsel %vm1932_vm12, %v3268_v10, %v1929_v63  ;;  %v2124_v63 = vrot.slane %v4036_v3, 7 }
 0xcf8   :  { %v1938_v31 = vsel %vm1935_vm13, %v1937_v35, %v1933_v21  ;;  %v3274_v39 = vpop.eup %3273 }
 0xcf9   :  { %v3276_v42 = vpop.eup %3275  ;;  %v2060_v48 = vmul.f32 %v3274_v39, %v2055_v54  ;;  %vm2065_vm14 = vweird.f32 %v3274_v39  ;;  %v1956_v60 = vmul.f32 %v1938_v31, %v4027_v50 }
 0xcfa   :  { %v2090_v52 = vmul.f32 %v3276_v42, %v2057_v34  ;;  %vm2095_vm15 = vweird.f32 %v3276_v42  ;;  %vm2066_vm4 = vmor %vm2064_vm2, %vm2065_vm14 }
 0xcfb   :  { %v2061_v55 = vsub.f32 1.0, %v2060_v48  ;;  %vm2096_vm5 = vmor %vm2094_vm3, %vm2095_vm15 }
 0xcfc   :  { %v2091_v58 = vsub.f32 1.0, %v2090_v52 }
 0xcfd   :  { %v2062_v15 = vmul.f32 %v3274_v39, %v2061_v55 }
 0xcfe   :  { %v2092_v17 = vmul.f32 %v3276_v42, %v2091_v58 }
 0xcff   :  { %v2063_v22 = vadd.f32 %v3274_v39, %v2062_v15  ;;  %v2917_v15 = vmul.f32 -1.442695, %v4081_v51 }
 0xd00   :  { %v2093_v25 = vadd.f32 %v3276_v42, %v2092_v17  ;;  %v2919_v17 = vmul.f32 -1.442695, %v4084_v5 }
 0xd01   :  { %v2067_v61 = vsel %vm2066_vm4, %v3274_v39, %v2063_v22 }
 0xd02   :  { %v2097_v56 = vsel %vm2096_vm5, %v3276_v42, %v2093_v25  ;;  %v2072_v29 = vsel %vm2069_vm6, %v2071_v2, %v2067_v61 }
 0xd03   :  { %v2102_v27 = vsel %vm2099_vm7, %v2101_v13, %v2097_v56  ;;  %v2127_v7 = vmul.f32 %v2123_v30, %v2072_v29 }
 0xd04   :  { %v2128_v1 = vmul.f32 %v2124_v63, %v2102_v27 }
 0xd2e   :  { %v1959_v38 = vpop.permute.xlu2 %1958 }
 0xd2f   :  { %v1961_v44 = vmul.f32 %v1959_v38, %v1938_v31 }
 0xd31   :  { %1963 = vrot.lane.b32.xlu2 %v1961_v44, %s3477_s0 }
 0xd56   :  { %v2132_v40 = vpop.permute.xlu0 %2131 }
 0xd57   :  { %v2134_v43 = vpop.permute.xlu1 %2133  ;;  %v2137_v10 = vmul.f32 %v2132_v40, %v2072_v29 }
 0xd58   :  { %v2138_v62 = vmul.f32 %v2134_v43, %v2102_v27 }
 0xd59   :  { %2141 = vrot.lane.b32.xlu0 %v2137_v10, %s3477_s0 }
 0xd5a   :  { %2143 = vrot.lane.b32.xlu1 %v2138_v62, %s3477_s0 }
 0xd8b   :  { %v1964_v0 = vpop.permute.xlu2 %1963 }
 0xd8c   :  { %v4097_v45 = vadd.f32 %v1964_v0, %v1956_v60 }
 0xd8e   :  { %3277 = vtanh.f32 %v4097_v45 }
 0xd8f   :  { %3279 = vpow2.f32 %v2911_v28 }
 0xd94   :  { %v3278_v14 = vpop.eup %3277 }
 0xd95   :  { %1969 = vrot.lane.b32.xlu2 %v3278_v14, %s3477_s0  ;;  %v3280_v9 = vpop.eup %3279 }
 0xd96   :  { %v1924_v38 = vadd.f32 1.0, %v3280_v9 }
 0xd98   :  { %v1951_v54 = vand.u32 2147483648, %v1924_v38  ;;  %vm1945_vm9 = vweird.f32 %v1924_v38  ;;  %v1949_v34 = vand.u32 2147483647, %v1924_v38 }
 0xd9a   :  { %v1952_v42 = vor.u32 1.1754944e-38, %v1951_v54  ;;  %vm1950_vm11 = vcmp.eq.f32.partialorder %v1949_v34, 8.507059e+37 }
 0xdcb   :  { %v2142_v6 = vpop.permute.xlu0 %2141 }
 0xdcc   :  { %v2144_v50 = vpop.permute.xlu1 %2143  ;;  %v4104_v21 = vadd.f32 %v2142_v6, %v2127_v7 }
 0xdcd   :  { %v4106_v35 = vadd.f32 %v2144_v50, %v2128_v1 }
 0xdce   :  { %3281 = vtanh.f32 %v4104_v21 }
 0xdcf   :  { %3283 = vtanh.f32 %v4106_v35 }
 0xdd0   :  { %3285 = vrcp.f32 %v1924_v38 }
 0xdd1   :  { %3287 = vpow2.f32 %v2917_v15 }
 0xdd2   :  { %3289 = vpow2.f32 %v2919_v17 }
 0xdd4   :  { %v3282_v59 = vpop.eup %3281 }
 0xdd5   :  { %v3284_v31 = vpop.eup %3283  ;;  %2153 = vrot.lane.b32.xlu0 %v3282_v59, %s3477_s0 }
 0xdd6   :  { %2155 = vrot.lane.b32.xlu1 %v3284_v31, %s3477_s0  ;;  %v3286_v49 = vpop.eup %3285 }
 0xdd7   :  { %v1941_v3 = vmul.f32 %v3286_v49, %v1924_v38  ;;  %vm1946_vm8 = vweird.f32 %v3286_v49 }
 0xdd8   :  { %vm1947_vm10 = vmor %vm1945_vm9, %vm1946_vm8 }
 0xdd9   :  { %v1942_v44 = vsub.f32 1.0, %v1941_v3 }
 0xddb   :  { %v1943_v20 = vmul.f32 %v3286_v49, %v1942_v44 }
 0xddd   :  { %v1944_v23 = vadd.f32 %v3286_v49, %v1943_v20 }
 0xddf   :  { %v1948_v39 = vsel %vm1947_vm10, %v3286_v49, %v1944_v23 }
 0xde0   :  { %v1953_v48 = vsel %vm1950_vm11, %v1952_v42, %v1948_v39 }
 0xdef   :  { %v1970_v52 = vpop.permute.xlu2 %1969 }
 0xdf0   :  { %v1972_v55 = vmul.f32 %v1970_v52, %v1953_v48 }
 0xdf2   :  { %v1973_v58 = vpack.c.bf16 %v1972_v55, %v1972_v55 }
 0xdf4   :  { %2912 = vmatmul.msk.bf16.vlgmr.msrb.gmra.mxu0 %vm194_vm1, %v1973_v58  ;;  %2913 = vmatmul.msk.bf16.vlgmr.msrb.gmra.mxu1 %vm194_vm1, %v1973_v58 }
 0xdf5   :  { %2305 = vmatpush.bf16.msrb.mxu1 %v3542_v8  ;;  %2292 = vmatpush.bf16.msrb.mxu0 %v3540_v4  ;;  %v3288_v8 = vpop.eup %3287 }
 0xdf6   :  { %v3290_v4 = vpop.eup %3289  ;;  %v2056_v22 = vadd.f32 1.0, %v3288_v8 }
 0xdf8   :  { %3291 = vrcp.f32 %v2056_v22  ;;  %v2085_v5 = vand.u32 2147483648, %v2056_v22  ;;  %vm2079_vm14 = vweird.f32 %v2056_v22  ;;  %v2083_v61 = vand.u32 2147483647, %v2056_v22 }
 0xdf9   :  { %2306 = vmatpush.bf16.msrb.mxu1 %v3548_v12  ;;  %2293 = vmatpush.bf16.msrb.mxu0 %v3545_v11  ;;  %v2058_v12 = vadd.f32 1.0, %v3290_v4 }
 0xdfa   :  { %v2086_v40 = vor.u32 1.1754944e-38, %v2085_v5  ;;  %vm2084_vm4 = vcmp.eq.f32.partialorder %v2083_v61, 8.507059e+37 }
 0xdfb   :  { %3293 = vrcp.f32 %v2058_v12  ;;  %v2115_v57 = vand.u32 2147483648, %v2058_v12  ;;  %vm2109_vm15 = vweird.f32 %v2058_v12  ;;  %v2113_v56 = vand.u32 2147483647, %v2058_v12 }
 0xdfd   :  { %2307 = vmatpush.bf16.msrb.mxu1 %v3557_v19  ;;  %2294 = vmatpush.bf16.msrb.mxu0 %v3554_v18  ;;  %v2116_v29 = vor.u32 1.1754944e-38, %v2115_v57  ;;  %vm2114_vm5 = vcmp.eq.f32.partialorder %v2113_v56, 8.507059e+37 }
 0xdfe   :  { %v3292_v11 = vpop.eup %3291 }
 0xdff   :  { %v2075_v25 = vmul.f32 %v3292_v11, %v2056_v22  ;;  %vm2080_vm12 = vweird.f32 %v3292_v11 }
 0xe00   :  { %vm2081_vm2 = vmor %vm2079_vm14, %vm2080_vm12 }
 0xe01   :  { %2308 = vmatpush.bf16.msrb.mxu1 %v3566_v26  ;;  %2295 = vmatpush.bf16.msrb.mxu0 %v3560_v24  ;;  %v3294_v19 = vpop.eup %3293  ;;  %v2076_v32 = vsub.f32 1.0, %v2075_v25 }
 0xe02   :  { %v2105_v18 = vmul.f32 %v3294_v19, %v2058_v12  ;;  %vm2110_vm13 = vweird.f32 %v3294_v19 }
 0xe03   :  { %v2077_v37 = vmul.f32 %v3292_v11, %v2076_v32  ;;  %vm2111_vm3 = vmor %vm2109_vm15, %vm2110_vm13 }
 0xe04   :  { %v2106_v26 = vsub.f32 1.0, %v2105_v18 }
 0xe05   :  { %v2078_v46 = vadd.f32 %v3292_v11, %v2077_v37 }
 0xe06   :  { %v2107_v24 = vmul.f32 %v3294_v19, %v2106_v26 }
 0xe07   :  { %v2082_v2 = vsel %vm2081_vm2, %v3292_v11, %v2078_v46 }
 0xe08   :  { %v2108_v51 = vadd.f32 %v3294_v19, %v2107_v24  ;;  %v2087_v43 = vsel %vm2084_vm4, %v2086_v40, %v2082_v2 }
 0xe0a   :  { %v2112_v13 = vsel %vm2111_vm3, %v3294_v19, %v2108_v51 }
 0xe0b   :  { %v2117_v10 = vsel %vm2114_vm5, %v2116_v29, %v2112_v13 }
 0xe47   :  { %v2154_v27 = vpop.permute.xlu0 %2153 }
 0xe48   :  { %v2156_v62 = vpop.permute.xlu1 %2155  ;;  %v2159_v60 = vmul.f32 %v2154_v27, %v2087_v43 }
 0xe49   :  { %v2160_v0 = vmul.f32 %v2156_v62, %v2117_v10 }
 0xe4a   :  { %v2161_v14 = vpack.c.bf16 %v2159_v60, %v2159_v60 }
 0xe4b   :  { %v2162_v28 = vpack.c.bf16 %v2160_v0, %v2160_v0 }
 0xe4c   :  { %v2165_v30 = vunpack.c.l.b16 %v2161_v14 }
 0xe4d   :  { %v2166_v63 = vunpack.c.l.b16 %v2162_v28 }
 0xe4e   :  { %v2167_v7 = vrot.slane %v2165_v30, 6 }
 0xe4f   :  { %v2168_v1 = vrot.slane %v2166_v63, 5 }
 0xe51   :  { %v2169_v6 = vsel %vm421_vm0, %v2168_v1, %v2167_v7 }
 0xe52   :  { %v2170_v9 = vpack.c.b16 %v2169_v6, %v2169_v6 }
 0xe54   :  { %2920 = vmatmul.msk.bf16.vlgmr.msra.gmra.mxu0 %vm194_vm1, %v2170_v9  ;;  %2921 = vmatmul.msk.bf16.vlgmr.msra.gmra.mxu1 %vm194_vm1, %v2170_v9 }
 0xe64   :  { %2926 = vmatmul.msk.bf16.vlgmr.msrb.gmra.mxu0 %vm194_vm1, %v2170_v9  ;;  %2927 = vmatmul.msk.bf16.vlgmr.msrb.gmra.mxu1 %vm194_vm1, %v2170_v9 }
 0xe71   :  { %v1986_v50 = vpop.f32.mrf.mxu0  ;;  %v1999_v38 = vpop.f32.mrf.mxu1 }
 0xe79   :  { %v1988_v59 = vpop.f32.mrf.mxu0  ;;  %v2001_v31 = vpop.f32.mrf.mxu1 }
 0xed1   :  { %v2183_v49 = vpop.f32.mrf.mxu0  ;;  %v2196_v3 = vpop.f32.mrf.mxu1 }
 0xed2   :  { %v2197_v44 = vadd.f32 %v2196_v3, %v1999_v38  ;;  %v2184_v22 = vadd.f32 %v2183_v49, %v1986_v50 }
 0xed4   :  { %v4130_v20 = vadd.f32 %v2197_v44, %v3722_v53  ;;  %v2200_v12 = vadd.f32 %v2184_v22, %v3739_v16  ;;  %v2408_v22 = vrot.slane %v4104_v21, 7 }
 0xed6   :  { %3295 = vtanh.f32 %v4130_v20 }
 0xed9   :  { %v2185_v23 = vpop.f32.mrf.mxu0  ;;  %v2198_v54 = vpop.f32.mrf.mxu1 }
 0xedc   :  { %v3296_v34 = vpop.eup %3295 }
 0xedd   :  { %2243 = vrot.lane.b32.xlu2 %v3296_v34, %s3477_s0 }
 0xee1   :  { %v2297_v39 = vpop.f32.mrf.mxu0  ;;  %v2310_v42 = vpop.f32.mrf.mxu1 }
 0xee2   :  { %v2317_v48 = vrot.slane %v2310_v42, 1  ;;  %v2319_v52 = vrot.slane %v2310_v42, 2  ;;  %v2316_v32 = vrot.slane %v2297_v39, 1  ;;  %v2318_v26 = vrot.slane %v2297_v39, 2 }
 0xee4   :  { %v4135_v55 = vadd.f32 %v2317_v48, %v3587_v47  ;;  %v4138_v58 = vadd.f32 %v2319_v52, %v3582_v41  ;;  %v2922_v47 = vmul.f32 -1.442695, %v2200_v12  ;;  %v2324_v24 = vadd.f32 %v2316_v32, %v3580_v36 }
 0xee5   :  { %v2326_v46 = vadd.f32 %v2318_v26, %v3578_v33  ;;  %v2409_v12 = vrot.slane %v4106_v35, 7 }
 0xee6   :  { %3297 = vtanh.f32 %v4135_v55  ;;  %v2928_v57 = vmul.f32 -1.442695, %v2324_v24 }
 0xee7   :  { %3299 = vtanh.f32 %v4138_v58  ;;  %v2930_v56 = vmul.f32 -1.442695, %v2326_v46 }
 0xee8   :  { %3301 = vpow2.f32 %v2922_v47 }
 0xee9   :  { %v2299_v15 = vpop.f32.mrf.mxu0  ;;  %v2312_v17 = vpop.f32.mrf.mxu1 }
 0xeec   :  { %v3298_v8 = vpop.eup %3297 }
 0xeed   :  { %v3300_v4 = vpop.eup %3299  ;;  %2416 = vrot.lane.b32.xlu0 %v3298_v8, %s3477_s0 }
 0xeee   :  { %2418 = vrot.lane.b32.xlu1 %v3300_v4, %s3477_s0  ;;  %v3302_v11 = vpop.eup %3301  ;;  %v2923_v4 = vmul.f32 -1.442695, %v4130_v20 }
 0xeef   :  { %v2208_v41 = vadd.f32 1.0, %v3302_v11 }
 0xef1   :  { %3303 = vrcp.f32 %v2208_v41  ;;  %v2221_v5 = vand.u32 2147483648, %v2208_v41  ;;  %vm2215_vm7 = vweird.f32 %v2208_v41  ;;  %v2219_v61 = vand.u32 2147483647, %v2208_v41 }
 0xef2   :  { %3305 = vpow2.f32 %v2928_v57 }
 0xef3   :  { %v2222_v13 = vor.u32 1.1754944e-38, %v2221_v5  ;;  %vm2220_vm9 = vcmp.eq.f32.partialorder %v2219_v61, 8.507059e+37  ;;  %3307 = vpow2.f32 %v2930_v56 }
 0xef7   :  { %v3304_v19 = vpop.eup %3303 }
 0xef8   :  { %v2211_v25 = vmul.f32 %v3304_v19, %v2208_v41  ;;  %vm2216_vm6 = vweird.f32 %v3304_v19  ;;  %v3306_v36 = vpop.eup %3305 }
 0xef9   :  { %vm2217_vm8 = vmor %vm2215_vm7, %vm2216_vm6  ;;  %v3308_v33 = vpop.eup %3307  ;;  %v2340_v27 = vadd.f32 1.0, %v3306_v36 }
 0xefa   :  { %v2212_v18 = vsub.f32 1.0, %v2211_v25  ;;  %v2342_v10 = vadd.f32 1.0, %v3308_v33 }
 0xefb   :  { %3309 = vrcp.f32 %v2340_v27  ;;  %v2355_v9 = vand.u32 2147483648, %v2340_v27  ;;  %vm2349_vm12 = vweird.f32 %v2340_v27  ;;  %v2353_v38 = vand.u32 2147483647, %v2340_v27 }
 0xefc   :  { %v2213_v37 = vmul.f32 %v3304_v19, %v2212_v18  ;;  %3311 = vrcp.f32 %v2342_v10  ;;  %v2385_v50 = vand.u32 2147483648, %v2342_v10  ;;  %vm2379_vm13 = vweird.f32 %v2342_v10 }
 0xefd   :  { %v2383_v59 = vand.u32 2147483647, %v2342_v10  ;;  %v2356_v3 = vor.u32 1.1754944e-38, %v2355_v9  ;;  %vm2354_vm2 = vcmp.eq.f32.partialorder %v2353_v38, 8.507059e+37 }
 0xefe   :  { %v2214_v51 = vadd.f32 %v3304_v19, %v2213_v37  ;;  %v2386_v44 = vor.u32 1.1754944e-38, %v2385_v50 }
 0xeff   :  { %vm2384_vm3 = vcmp.eq.f32.partialorder %v2383_v59, 8.507059e+37 }
 0xf00   :  { %v2218_v2 = vsel %vm2217_vm8, %v3304_v19, %v2214_v51 }
 0xf01   :  { %v2223_v29 = vsel %vm2220_vm9, %v2222_v13, %v2218_v2  ;;  %v3310_v62 = vpop.eup %3309 }
 0xf02   :  { %v3312_v60 = vpop.eup %3311  ;;  %v2345_v0 = vmul.f32 %v3310_v62, %v2340_v27  ;;  %vm2350_vm10 = vweird.f32 %v3310_v62  ;;  %v2241_v52 = vmul.f32 %v2223_v29, %v4097_v45 }
 0xf03   :  { %v2375_v14 = vmul.f32 %v3312_v60, %v2342_v10  ;;  %vm2380_vm11 = vweird.f32 %v3312_v60  ;;  %vm2351_vm14 = vmor %vm2349_vm12, %vm2350_vm10 }
 0xf04   :  { %v2346_v28 = vsub.f32 1.0, %v2345_v0  ;;  %vm2381_vm15 = vmor %vm2379_vm13, %vm2380_vm11 }
 0xf05   :  { %v2376_v30 = vsub.f32 1.0, %v2375_v14 }
 0xf06   :  { %v2347_v63 = vmul.f32 %v3310_v62, %v2346_v28 }
 0xf07   :  { %v2377_v7 = vmul.f32 %v3312_v60, %v2376_v30 }
 0xf08   :  { %v2348_v1 = vadd.f32 %v3310_v62, %v2347_v63 }
 0xf09   :  { %v2378_v6 = vadd.f32 %v3312_v60, %v2377_v7 }
 0xf0a   :  { %v2352_v31 = vsel %vm2351_vm14, %v3310_v62, %v2348_v1 }
 0xf0b   :  { %v2382_v49 = vsel %vm2381_vm15, %v3312_v60, %v2378_v6  ;;  %v2357_v54 = vsel %vm2354_vm2, %v2356_v3, %v2352_v31 }
 0xf0c   :  { %v2387_v39 = vsel %vm2384_vm3, %v2386_v44, %v2382_v49  ;;  %v2412_v47 = vmul.f32 %v2408_v22, %v2357_v54 }
 0xf0d   :  { %v2413_v11 = vmul.f32 %v2409_v12, %v2387_v39 }
 0xf37   :  { %v2244_v40 = vpop.permute.xlu2 %2243 }
 0xf38   :  { %v2246_v43 = vmul.f32 %v2244_v40, %v2223_v29  ;;  %v2929_v29 = vmul.f32 -1.442695, %v4135_v55 }
 0xf3a   :  { %2248 = vrot.lane.b32.xlu2 %v2246_v43, %s3477_s0  ;;  %v2931_v43 = vmul.f32 -1.442695, %v4138_v58 }
 0xf5f   :  { %v2417_v23 = vpop.permute.xlu0 %2416 }
 0xf60   :  { %v2419_v34 = vpop.permute.xlu1 %2418  ;;  %v2422_v42 = vmul.f32 %v2417_v23, %v2357_v54 }
 0xf61   :  { %v2423_v48 = vmul.f32 %v2419_v34, %v2387_v39 }
 0xf62   :  { %2426 = vrot.lane.b32.xlu0 %v2422_v42, %s3477_s0 }
 0xf63   :  { %2428 = vrot.lane.b32.xlu1 %v2423_v48, %s3477_s0 }
 0xf94   :  { %v2249_v15 = vpop.permute.xlu2 %2248 }
 0xf95   :  { %v4151_v17 = vadd.f32 %v2249_v15, %v2241_v52 }
 0xf97   :  { %3313 = vtanh.f32 %v4151_v17 }
 0xf98   :  { %3315 = vpow2.f32 %v2923_v4 }
 0xf9d   :  { %v3314_v8 = vpop.eup %3313 }
 0xf9e   :  { %2254 = vrot.lane.b32.xlu2 %v3314_v8, %s3477_s0  ;;  %v3316_v19 = vpop.eup %3315 }
 0xf9f   :  { %v2209_v32 = vadd.f32 1.0, %v3316_v19 }
 0xfa1   :  { %v2236_v51 = vand.u32 2147483648, %v2209_v32  ;;  %vm2230_vm5 = vweird.f32 %v2209_v32  ;;  %v2234_v5 = vand.u32 2147483647, %v2209_v32 }
 0xfa3   :  { %v2237_v61 = vor.u32 1.1754944e-38, %v2236_v51  ;;  %vm2235_vm7 = vcmp.eq.f32.partialorder %v2234_v5, 8.507059e+37 }
 0xfd4   :  { %v2427_v41 = vpop.permute.xlu0 %2426 }
 0xfd5   :  { %v2429_v45 = vpop.permute.xlu1 %2428  ;;  %v2432_v25 = vadd.f32 %v2427_v41, %v2412_v47 }
 0xfd6   :  { %v2433_v18 = vadd.f32 %v2429_v45, %v2413_v11 }
 0xfd7   :  { %3317 = vtanh.f32 %v2432_v25 }
 0xfd8   :  { %3319 = vtanh.f32 %v2433_v18 }
 0xfd9   :  { %3321 = vrcp.f32 %v2209_v32 }
 0xfda   :  { %3323 = vpow2.f32 %v2929_v29 }
 0xfdb   :  { %3325 = vpow2.f32 %v2931_v43 }
 0xfdd   :  { %v3318_v26 = vpop.eup %3317 }
 0xfde   :  { %v3320_v37 = vpop.eup %3319  ;;  %2438 = vrot.lane.b32.xlu0 %v3318_v26, %s3477_s0 }
 0xfdf   :  { %2440 = vrot.lane.b32.xlu1 %v3320_v37, %s3477_s0  ;;  %v3322_v21 = vpop.eup %3321 }
 0xfe0   :  { %v2226_v20 = vmul.f32 %v3322_v21, %v2209_v32  ;;  %vm2231_vm4 = vweird.f32 %v3322_v21  ;;  %v3324_v36 = vpop.eup %3323 }
 0xfe1   :  { %vm2232_vm6 = vmor %vm2230_vm5, %vm2231_vm4  ;;  %v3326_v33 = vpop.eup %3325  ;;  %v2341_v27 = vadd.f32 1.0, %v3324_v36 }
 0xfe2   :  { %v2227_v35 = vsub.f32 1.0, %v2226_v20  ;;  %v2343_v10 = vadd.f32 1.0, %v3326_v33 }
 0xfe3   :  { %3327 = vrcp.f32 %v2341_v27  ;;  %v2370_v58 = vand.u32 2147483648, %v2341_v27  ;;  %vm2364_vm10 = vweird.f32 %v2341_v27  ;;  %v2368_v9 = vand.u32 2147483647, %v2341_v27 }
 0xfe4   :  { %v2228_v24 = vmul.f32 %v3322_v21, %v2227_v35  ;;  %3329 = vrcp.f32 %v2343_v10  ;;  %v2400_v6 = vand.u32 2147483648, %v2343_v10  ;;  %vm2394_vm11 = vweird.f32 %v2343_v10 }
 0xfe5   :  { %v2398_v50 = vand.u32 2147483647, %v2343_v10  ;;  %v2371_v31 = vor.u32 1.1754944e-38, %v2370_v58  ;;  %vm2369_vm14 = vcmp.eq.f32.partialorder %v2368_v9, 8.507059e+37 }
 0xfe6   :  { %v2229_v46 = vadd.f32 %v3322_v21, %v2228_v24  ;;  %v2401_v49 = vor.u32 1.1754944e-38, %v2400_v6 }
 0xfe7   :  { %vm2399_vm15 = vcmp.eq.f32.partialorder %v2398_v50, 8.507059e+37 }
 0xfe8   :  { %v2233_v57 = vsel %vm2232_vm6, %v3322_v21, %v2229_v46 }
 0xfe9   :  { %v2238_v56 = vsel %vm2235_vm7, %v2237_v61, %v2233_v57  ;;  %v3328_v62 = vpop.eup %3327 }
 0xfea   :  { %v3330_v60 = vpop.eup %3329  ;;  %v2360_v0 = vmul.f32 %v3328_v62, %v2341_v27  ;;  %vm2365_vm8 = vweird.f32 %v3328_v62 }
 0xfeb   :  { %v2390_v14 = vmul.f32 %v3330_v60, %v2343_v10  ;;  %vm2395_vm9 = vweird.f32 %v3330_v60  ;;  %vm2366_vm12 = vmor %vm2364_vm10, %vm2365_vm8 }
 0xfec   :  { %v2361_v28 = vsub.f32 1.0, %v2360_v0  ;;  %vm2396_vm13 = vmor %vm2394_vm11, %vm2395_vm9 }
 0xfed   :  { %v2391_v30 = vsub.f32 1.0, %v2390_v14 }
 0xfee   :  { %v2362_v63 = vmul.f32 %v3328_v62, %v2361_v28 }
 0xfef   :  { %v2392_v7 = vmul.f32 %v3330_v60, %v2391_v30 }
 0xff0   :  { %v2363_v1 = vadd.f32 %v3328_v62, %v2362_v63 }
 0xff1   :  { %v2393_v55 = vadd.f32 %v3330_v60, %v2392_v7 }
 0xff2   :  { %v2367_v38 = vsel %vm2366_vm12, %v3328_v62, %v2363_v1 }
 0xff3   :  { %v2397_v59 = vsel %vm2396_vm13, %v3330_v60, %v2393_v55  ;;  %v2372_v3 = vsel %vm2369_vm14, %v2371_v31, %v2367_v38 }
 0xff4   :  { %v2402_v23 = vsel %vm2399_vm15, %v2401_v49, %v2397_v59 }
 0xff8   :  { %v2255_v2 = vpop.permute.xlu2 %2254 }
 0xff9   :  { %v2257_v13 = vmul.f32 %v2255_v2, %v2238_v56 }
 0xffb   :  { %v2258_v40 = vpack.c.bf16 %v2257_v13, %v2257_v13 }
 0xffd   :  { %2924 = vmatmul.msk.bf16.vlgmr.msra.gmra.mxu2 %vm194_vm1, %v2258_v40  ;;  %2925 = vmatmul.msk.bf16.vlgmr.msra.gmra.mxu3 %vm194_vm1, %v2258_v40 }
0x1050   :  { %v2439_v44 = vpop.permute.xlu0 %2438 }
0x1051   :  { %v2441_v54 = vpop.permute.xlu1 %2440  ;;  %v2444_v34 = vmul.f32 %v2439_v44, %v2372_v3 }
0x1052   :  { %v2445_v39 = vmul.f32 %v2441_v54, %v2402_v23 }
0x1053   :  { %v2446_v42 = vpack.c.bf16 %v2444_v34, %v2444_v34 }
0x1054   :  { %v2447_v48 = vpack.c.bf16 %v2445_v39, %v2445_v39 }
0x1055   :  { %v2450_v52 = vunpack.c.l.b16 %v2446_v42 }
0x1056   :  { %v2451_v15 = vunpack.c.l.b16 %v2447_v48 }
0x1057   :  { %v2452_v8 = vrot.slane %v2450_v52, 7 }
0x1058   :  { %v2453_v4 = vrot.slane %v2451_v15, 6 }
0x105a   :  { %v2454_v22 = vsel %vm421_vm0, %v2453_v4, %v2452_v8 }
0x105b   :  { %v2455_v12 = vpack.c.b16 %v2454_v22, %v2454_v22 }
0x105d   :  { %2932 = vmatmul.msk.bf16.vlgmr.msrb.gmra.mxu2 %vm194_vm1, %v2455_v12  ;;  %2933 = vmatmul.msk.bf16.vlgmr.msrb.gmra.mxu3 %vm194_vm1, %v2455_v12 }
0x1080   :  { %v2271_v47 = vpop.f32.mrf.mxu2  ;;  %v2284_v11 = vpop.f32.mrf.mxu3 }
0x1088   :  { %v2273_v41 = vpop.f32.mrf.mxu2  ;;  %v2286_v19 = vpop.f32.mrf.mxu3 }
0x10e0   :  { %v2468_v45 = vpop.f32.mrf.mxu2  ;;  %v2481_v25 = vpop.f32.mrf.mxu3 }
0x10e1   :  { %v2482_v18 = vadd.f32 %v2481_v25, %v2284_v11  ;;  %v2469_v20 = vadd.f32 %v2468_v45, %v2271_v47 }
0x10e3   :  { %v2486_v32 = vadd.f32 %v2482_v18, %v3722_v53  ;;  %v2485_v35 = vadd.f32 %v2469_v20, %v3739_v16 }
0x10e5   :  { %3331 = vtanh.f32 %v2486_v32  ;;  %v2934_v24 = vmul.f32 -1.442695, %v2485_v35  ;;  %v2935_v60 = vmul.f32 -1.442695, %v2486_v32 }
0x10e7   :  { %3333 = vpow2.f32 %v2934_v24 }
0x10e8   :  { %v2470_v26 = vpop.f32.mrf.mxu2  ;;  %v2483_v37 = vpop.f32.mrf.mxu3 }
0x10eb   :  { %v3332_v21 = vpop.eup %3331 }
0x10ec   :  { %2528 = vrot.lane.b32.xlu2 %v3332_v21, %s3477_s0 }
0x10ed   :  { %v3334_v46 = vpop.eup %3333 }
0x10ee   :  { %v2493_v51 = vadd.f32 1.0, %v3334_v46 }
0x10f0   :  { %3335 = vrcp.f32 %v2493_v51  ;;  %v2506_v53 = vand.u32 2147483648, %v2493_v51  ;;  %vm2500_vm2 = vweird.f32 %v2493_v51  ;;  %v2504_v13 = vand.u32 2147483647, %v2493_v51 }
0x10f2   :  { %v2507_v29 = vor.u32 1.1754944e-38, %v2506_v53  ;;  %vm2505_vm4 = vcmp.eq.f32.partialorder %v2504_v13, 8.507059e+37 }
0x10f6   :  { %v3336_v5 = vpop.eup %3335 }
0x10f7   :  { %v2496_v57 = vmul.f32 %v3336_v5, %v2493_v51  ;;  %vm2501_vm0 = vweird.f32 %v3336_v5 }
0x10f8   :  { %vm2502_vm3 = vmor %vm2500_vm2, %vm2501_vm0 }
0x10f9   :  { %v2497_v61 = vsub.f32 1.0, %v2496_v57 }
0x10fb   :  { %v2498_v56 = vmul.f32 %v3336_v5, %v2497_v61 }
0x10fd   :  { %v2499_v2 = vadd.f32 %v3336_v5, %v2498_v56 }
0x10ff   :  { %v2503_v40 = vsel %vm2502_vm3, %v3336_v5, %v2499_v2 }
0x1100   :  { %v2508_v16 = vsel %vm2505_vm4, %v2507_v29, %v2503_v40 }
0x1101   :  { %v2526_v33 = vmul.f32 %v2508_v16, %v4151_v17 }
0x1146   :  { %v2529_v43 = vpop.permute.xlu2 %2528 }
0x1147   :  { %v2531_v36 = vmul.f32 %v2529_v43, %v2508_v16 }
0x1149   :  { %2533 = vrot.lane.b32.xlu0 %v2531_v36, %s3477_s0 }
0x11bb   :  { %v2534_v27 = vpop.permute.xlu0 %2533 }
0x11bc   :  { %v2536_v10 = vadd.f32 %v2534_v27, %v2526_v33 }
0x11be   :  { %3337 = vtanh.f32 %v2536_v10 }
0x11bf   :  { %3339 = vpow2.f32 %v2935_v60 }
0x11c4   :  { %v3338_v62 = vpop.eup %3337 }
0x11c5   :  { %2539 = vrot.lane.b32.xlu1 %v3338_v62, %s3477_s0  ;;  %v3340_v0 = vpop.eup %3339 }
0x11c6   :  { %v2494_v14 = vadd.f32 1.0, %v3340_v0 }
0x11c8   :  { %3341 = vrcp.f32 %v2494_v14  ;;  %v2521_v17 = vand.u32 2147483648, %v2494_v14  ;;  %vm2515_vm6 = vweird.f32 %v2494_v14  ;;  %v2519_v55 = vand.u32 2147483647, %v2494_v14 }
0x11ca   :  { %v2522_v6 = vor.u32 1.1754944e-38, %v2521_v17  ;;  %vm2520_vm8 = vcmp.eq.f32.partialorder %v2519_v55, 8.507059e+37 }
0x11ce   :  { %v3342_v28 = vpop.eup %3341 }
0x11cf   :  { %v2511_v30 = vmul.f32 %v3342_v28, %v2494_v14  ;;  %vm2516_vm5 = vweird.f32 %v3342_v28 }
0x11d0   :  { %vm2517_vm7 = vmor %vm2515_vm6, %vm2516_vm5 }
0x11d1   :  { %v2512_v63 = vsub.f32 1.0, %v2511_v30 }
0x11d3   :  { %v2513_v7 = vmul.f32 %v3342_v28, %v2512_v63 }
0x11d5   :  { %v2514_v1 = vadd.f32 %v3342_v28, %v2513_v7 }
0x11d7   :  { %v2518_v58 = vsel %vm2517_vm7, %v3342_v28, %v2514_v1 }
0x11d8   :  { %v2523_v9 = vsel %vm2520_vm8, %v2522_v6, %v2518_v58 }
0x1237   :  { %v2540_v50 = vpop.permute.xlu1 %2539 }
0x1238   :  { %v4176_v38 = vmul.f32 %v2540_v50, %v2523_v9 }
0x1239   :  { %3467 = dma.done.wait [#allocation3], 2048 }
0x123a   :  { %3468 = vsyncadd [#allocation3], 4294965248  ;;  %v2986_v59 = vld [vmem:[#allocation2 + $0x60] sm:$0xf]  ;;  %v3043_v31 = vld [vmem:[#allocation2 + $0x6c] sm:$0xf0]  ;;  %v2547_v62 = vpack.c.bf16 %v4176_v38, %v4176_v38 }
0x123b   :  { %v3041_v49 = vld [vmem:[#allocation2 + $0x64] sm:$0xf]  ;;  %v2987_v3 = vor.u32 %v3043_v31, %v2986_v59  ;;  %v2988_v44 = vld [vmem:[#allocation2 + $0x70] sm:$0xf0]  ;;  %v2994_v23 = vld [vmem:[#allocation2 + $0x68] sm:$0xf] }
0x123c   :  { %v3044_v54 = vld [vmem:[#allocation2 + $0x74] sm:$0xf0]  ;;  %v2991_v34 = vor.u32 %v3041_v49, %v2988_v44  ;;  %v3042_v42 = vld [vmem:[#allocation2 + $0x6c] sm:$0xf]  ;;  %v2996_v48 = vld [vmem:[#allocation2 + $0x78] sm:$0xf0] }
0x123d   :  { %v2995_v39 = vor.u32 %v3044_v54, %v2994_v23  ;;  %v2970_v52 = vld [vmem:[#allocation2 + $0x40] sm:$0xf]  ;;  %2661 = vmatpush.bf16.msra.mxu0 %v2987_v3  ;;  %v2999_v15 = vor.u32 %v3042_v42, %v2996_v48  ;;  %v3039_v8 = vld [vmem:[#allocation2 + $0x4c] sm:$0xf0]  ;;  %v3037_v4 = vld [vmem:[#allocation2 + $0x44] sm:$0xf] }
0x123e   :  { %v2972_v22 = vld [vmem:[#allocation2 + $0x50] sm:$0xf0]  ;;  %2674 = vmatpush.bf16.msra.mxu1 %v2991_v34  ;;  %v2971_v12 = vor.u32 %v3039_v8, %v2970_v52  ;;  %v2978_v11 = vld [vmem:[#allocation2 + $0x48] sm:$0xf]  ;;  %v3040_v41 = vld [vmem:[#allocation2 + $0x54] sm:$0xf0] }
0x123f   :  { %2687 = vmatpush.bf16.msra.mxu2 %v2995_v39  ;;  %v2975_v47 = vor.u32 %v3037_v4, %v2972_v22  ;;  %v3038_v19 = vld [vmem:[#allocation2 + $0x4c] sm:$0xf]  ;;  %2700 = vmatpush.bf16.msra.mxu3 %v2999_v15  ;;  %v2979_v45 = vor.u32 %v3040_v41, %v2978_v11  ;;  %v2980_v25 = vld [vmem:[#allocation2 + $0x58] sm:$0xf0]  ;;  %v2954_v18 = vld [vmem:[#allocation2 + $0x20] sm:$0xf] }
0x1240   :  { %v3035_v32 = vld [vmem:[#allocation2 + $0x2c] sm:$0xf0]  ;;  %v2983_v26 = vor.u32 %v3038_v19, %v2980_v25  ;;  %v3033_v37 = vld [vmem:[#allocation2 + $0x24] sm:$0xf]  ;;  %v2956_v21 = vld [vmem:[#allocation2 + $0x30] sm:$0xf0] }
0x1241   :  { %v2962_v20 = vld [vmem:[#allocation2 + $0x28] sm:$0xf]  ;;  %2662 = vmatpush.bf16.msra.mxu0 %v2971_v12  ;;  %v2955_v35 = vor.u32 %v3035_v32, %v2954_v18  ;;  %v3036_v24 = vld [vmem:[#allocation2 + $0x34] sm:$0xf0]  ;;  %v3034_v46 = vld [vmem:[#allocation2 + $0x2c] sm:$0xf]  ;;  %v2959_v5 = vor.u32 %v3033_v37, %v2956_v21 }
0x1242   :  { %v2964_v51 = vld [vmem:[#allocation2 + $0x38] sm:$0xf0]  ;;  %2675 = vmatpush.bf16.msra.mxu1 %v2975_v47  ;;  %v2963_v57 = vor.u32 %v3036_v24, %v2962_v20  ;;  %v2938_v61 = vld [vmem:[#allocation2] sm:$0xf]  ;;  %v3031_v56 = vld [vmem:[#allocation2 + $0xc] sm:$0xf0] }
0x1243   :  { %2688 = vmatpush.bf16.msra.mxu2 %v2979_v45  ;;  %v3029_v2 = vld [vmem:[#allocation2 + $0x4] sm:$0xf]  ;;  %2701 = vmatpush.bf16.msra.mxu3 %v2983_v26  ;;  %v2967_v53 = vor.u32 %v3034_v46, %v2964_v51  ;;  %v2940_v13 = vld [vmem:[#allocation2 + $0x10] sm:$0xf0]  ;;  %v2946_v40 = vld [vmem:[#allocation2 + $0x8] sm:$0xf]  ;;  %v2939_v36 = vor.u32 %v3031_v56, %v2938_v61 }
0x1244   :  { %v3032_v29 = vld [vmem:[#allocation2 + $0x14] sm:$0xf0]  ;;  %v3030_v43 = vld [vmem:[#allocation2 + $0xc] sm:$0xf]  ;;  %v2948_v16 = vld [vmem:[#allocation2 + $0x18] sm:$0xf0]  ;;  %v2943_v33 = vor.u32 %v3029_v2, %v2940_v13 }
0x1245   :  { %2663 = vmatpush.bf16.msra.mxu0 %v2955_v35  ;;  %v2947_v27 = vor.u32 %v3032_v29, %v2946_v40  ;;  %v2951_v10 = vor.u32 %v3030_v43, %v2948_v16  ;;  %v2564_v60 = vld [vmem:[%s4197_s7] sm:$0xf]  ;;  %vm2718_vm9 = vcmask 1045508   ;;  %s3479_s15 = smov [#allocation10]   ;;  %s2731_s18 = sshll.u32 %s4199_s9, 4  ;;  %vm2720_vm10 = vcmask 1043456   ;;  %s2732_s18 = int_to_ptr.hbm [resolvable:$true] %s2731_s18 }
0x1246   :  { %2676 = vmatpush.bf16.msra.mxu1 %v2959_v5  ;;  %v2567_v14 = vperm.slane %v2564_v60, 1  ;;  %v2568_v30 = vperm.slane %v2564_v60, 2  ;;  %v2566_v63 = vperm.slane %v2564_v60, 0  ;;  %v2569_v1 = vperm.slane %v2564_v60, 3  ;;  %s2729_s7 = sshll.u32 %s3479_s15, 4  ;;  %s2730_s7 = int_to_ptr.vmem [resolvable:$true] %s2729_s7 }
0x1247   :  { %2689 = vmatpush.bf16.msra.mxu2 %v2963_v57  ;;  %2702 = vmatpush.bf16.msra.mxu3 %v2967_v53 }
0x1249   :  { %2664 = vmatpush.bf16.msra.mxu0 %v2939_v36 }
0x124a   :  { %2677 = vmatpush.bf16.msra.mxu1 %v2943_v33 }
0x124b   :  { %2690 = vmatpush.bf16.msra.mxu2 %v2947_v27  ;;  %2703 = vmatpush.bf16.msra.mxu3 %v2951_v10 }
0x124c   :  { %3000 = vmatmul.msk.bf16.vlgmr.msra.gmra.mxu0 %vm194_vm1, %v2547_v62 }
0x124d   :  { %3001 = vmatmul.msk.bf16.vlgmr.msra.gmra.mxu1 %vm194_vm1, %v2547_v62 }
0x124e   :  { %3002 = vmatmul.msk.bf16.vlgmr.msra.gmra.mxu2 %vm194_vm1, %v2547_v62  ;;  %3003 = vmatmul.msk.bf16.vlgmr.msra.gmra.mxu3 %vm194_vm1, %v2547_v62  ;;  %vm2716_vm1 = vcmask 1041408  }
0x12c9   :  { %v2666_v0 = vpop.f32.mrf.mxu0 }
0x12ca   :  { %v2679_v28 = vpop.f32.mrf.mxu1  ;;  %v2667_v9 = vadd.f32 %v2666_v0, %v2566_v63 }
0x12cb   :  { %v2680_v7 = vadd.f32 %v2679_v28, %v2567_v14 }
0x12cd   :  { %v2713_v50 = vrot.slane %v2680_v7, 6 }
0x12cf   :  { %v2717_v3 = vsel %vm2716_vm1, %v2667_v9, %v2713_v50 }
0x12d1   :  { %v2692_v17 = vpop.f32.mrf.mxu2  ;;  %v2705_v58 = vpop.f32.mrf.mxu3 }
0x12d2   :  { %v2693_v55 = vadd.f32 %v2692_v17, %v2568_v30  ;;  %v2668_v6 = vpop.f32.mrf.mxu0  ;;  %v2706_v38 = vadd.f32 %v2705_v58, %v2569_v1  ;;  %v2681_v59 = vpop.f32.mrf.mxu1 }
0x12d4   :  { %v2714_v31 = vrot.slane %v2693_v55, 4  ;;  %v2715_v49 = vrot.slane %v2706_v38, 2 }
0x12d6   :  { %v2719_v44 = vsel %vm2718_vm9, %v2714_v31, %v2715_v49 }
0x12d7   :  { %v2721_v23 = vsel %vm2720_vm10, %v2717_v3, %v2719_v44 }
0x12d8   :  { %2723 = vst [vmem:[#allocation10] sm:$0xff] %v2721_v23 }
0x12d9   :  { %v2694_v54 = vpop.f32.mrf.mxu2  ;;  %v2707_v34 = vpop.f32.mrf.mxu3  ;;  %2734 = dma.vmem_to_hbm [thread:$0]  %s2730_s7, 128, %s2732_s18, [#allocation6]  }
0x12da   :  { %3469 = dma.done.wait [#allocation6], 128  }
0x12db   :  { %3470 = vsyncadd [#allocation6], 4294967168 }
0x12dc   :  { %2739 = vsyncpa [#allocation5], 1 }
0x12dd   :  { %2740 = vsyncpa [#allocation8], 1 }
0x12de   :  { %2741 = vsyncpa [#allocation6], 1 }
0x12df   :  { %2742 = vsyncmov [#allocation3] }
0x12e2   :  { %s2743_s19 = vpop.sfrf %2742 }
0x12e3   :  { %p3004_p0 = scmp.ne.s32.totalorder %s2743_s19, 0 }
0x12e5   :  { %2747 = shalt.err (%p3004_p0)  }

</bundles_post_ra>
